<compile_context>
chip_gen: v5e
topology: v5e:2x2
jax: 0.10.0
libtpu: 0.0.40
codegen_flags: <defaults>
</compile_context>

<pallas_src>
import jax
import jax.numpy as jnp
from jax.experimental import pallas as pl
from jax.experimental.pallas import tpu as pltpu

# ----------------------------- hyperparameters ------------------------------
NUM_FEATURES = 32        # E  (d_model)
NUM_LAYERS   = 2         # L
NUM_HEAD     = 4         # H
OBSERV_STEP  = 8         # T  (dim 1 of the input; the dense maps T -> P)
PRED_STEP    = 4         # P
DIM_FF       = 2048      # PyTorch TransformerEncoderLayer default dim_feedforward
SEQ0         = 2         # A  (dim 0 of the input; attention sequence axis)
HEAD_DIM     = NUM_FEATURES // NUM_HEAD
LN_EPS       = 1e-5


# ------------------------------ kernel helpers ------------------------------
def _layer_norm(x, w, b):
    """w, b have shape (1, E) and broadcast over rows."""
    mu = jnp.mean(x, axis=-1, keepdims=True)
    var = jnp.mean(jnp.square(x - mu), axis=-1, keepdims=True)
    return (x - mu) * jax.lax.rsqrt(var + LN_EPS) * w + b


def _mm(a, b):
    """Plain NN matmul with f32 accumulation (MXU)."""
    return jnp.dot(a, b, preferred_element_type=jnp.float32)


# --------------------------------- kernel -----------------------------------
def transformer_kernel(x_ref, seg_ref, segt_ref, dmat_ref, dbias_ref,
                       wq_ref, bq_ref, wk_ref, bk_ref, wv_ref, bv_ref,
                       wo_ref, bo_ref, ln1w_ref, ln1b_ref,
                       w1_ref, b1_ref, w2_ref, b2_ref, ln2w_ref, ln2b_ref,
                       o_ref):
    T = OBSERV_STEP
    x = x_ref[...]                                    # (A*T, E) f32, row = a*T + t
    seg = seg_ref[...]                                # (E, H) 0/1 head-segment sum
    segt = segt_ref[...]                              # (H, E) head broadcast

    for l in range(NUM_LAYERS):                       # statically unrolled layer loop
        xb = x.astype(jnp.bfloat16)

        # ---- multi-head self-attention, vectorized over (t, h); A == 2 ----
        # (1/sqrt(head_dim) is pre-folded into wq/bq host-side)
        q = _mm(xb, wq_ref[l]) + bq_ref[l]            # (A*T, E) f32
        k = _mm(xb, wk_ref[l]) + bk_ref[l]
        v = _mm(xb, wv_ref[l]) + bv_ref[l]

        q0, q1 = q[0:T], q[T:2 * T]                   # (T, E) sublane-aligned slices
        k0, k1 = k[0:T], k[T:2 * T]
        v0, v1 = v[0:T], v[T:2 * T]

        # per-(t, h) scores for all 4 (a, b) pairs in ONE segmented lane reduction
        qk = jnp.concatenate([q0 * k0, q0 * k1, q1 * k0, q1 * k1], axis=0)   # (4T, E)
        s = _mm(qk, seg)                                                     # (4T, H)
        s00, s01 = s[0:T], s[T:2 * T]
        s10, s11 = s[2 * T:3 * T], s[3 * T:4 * T]

        # exact softmax over the 2-element attention axis
        m0 = jnp.maximum(s00, s01)
        e00 = jnp.exp(s00 - m0)
        e01 = jnp.exp(s01 - m0)
        r0 = pl.reciprocal(e00 + e01)
        m1 = jnp.maximum(s10, s11)
        e10 = jnp.exp(s10 - m1)
        e11 = jnp.exp(s11 - m1)
        r1 = pl.reciprocal(e10 + e11)

        # broadcast per-head weights back to E lanes in ONE (4T,H)@(H,E) matmul
        p = jnp.concatenate([e00 * r0, e01 * r0, e10 * r1, e11 * r1], axis=0)  # (4T, H)
        w = _mm(p, segt)                                                       # (4T, E)
        w00, w01 = w[0:T], w[T:2 * T]
        w10, w11 = w[2 * T:3 * T], w[3 * T:4 * T]

        ctx = jnp.concatenate([w00 * v0 + w01 * v1,
                               w10 * v0 + w11 * v1], axis=0)        # (A*T, E)

        # single out_proj matmul per layer
        attn = _mm(ctx.astype(jnp.bfloat16), wo_ref[l]) + bo_ref[l]
        x = _layer_norm(x + attn, ln1w_ref[l], ln1b_ref[l])

        # ---- feed-forward (relu), dim_feedforward = 2048; bf16 intermediate ----
        h1 = _mm(x.astype(jnp.bfloat16), w1_ref[l]).astype(jnp.bfloat16) + b1_ref[l]
        h1 = jnp.maximum(h1, jnp.array(0, h1.dtype))                    # (A*T, F) bf16
        ff = _mm(h1, w2_ref[l]) + b2_ref[l]                             # (A*T, E) f32
        x = _layer_norm(x + ff, ln2w_ref[l], ln2b_ref[l])

    # ---- time-mixing Linear (T -> P), folded into one block-diagonal matmul ----
    o_ref[...] = _mm(dmat_ref[...], x.astype(jnp.bfloat16)) + dbias_ref[...]


# ------------------------- one-time host-side weight prep --------------------
def prepare_params(params):
    """Transpose / split / cast weights once; reuse the result across forward calls."""
    A, T, E = SEQ0, OBSERV_STEP, NUM_FEATURES
    H, Dh, F, L, P = NUM_HEAD, HEAD_DIM, DIM_FF, NUM_LAYERS, PRED_STEP
    scale = 1.0 / (Dh ** 0.5)

    in_w, in_b = params['in_w'], params['in_b']
    # split in_proj into q/k/v, pre-transpose to (in, out), fold softmax scale into q
    wq = (jnp.transpose(in_w[:, 0:E, :], (0, 2, 1)) * scale).astype(jnp.bfloat16)
    wk = jnp.transpose(in_w[:, E:2 * E, :], (0, 2, 1)).astype(jnp.bfloat16)
    wv = jnp.transpose(in_w[:, 2 * E:3 * E, :], (0, 2, 1)).astype(jnp.bfloat16)
    bq = (in_b[:, 0:E] * scale).reshape(L, 1, E).astype(jnp.float32)
    bk = in_b[:, E:2 * E].reshape(L, 1, E).astype(jnp.float32)
    bv = in_b[:, 2 * E:3 * E].reshape(L, 1, E).astype(jnp.float32)
    wo = jnp.transpose(params['out_w'], (0, 2, 1)).astype(jnp.bfloat16)       # (L,E,E)
    bo = params['out_b'].reshape(L, 1, E).astype(jnp.float32)
    w1 = jnp.transpose(params['ff1_w'], (0, 2, 1)).astype(jnp.bfloat16)       # (L,E,F)
    b1 = params['ff1_b'].reshape(L, 1, F).astype(jnp.bfloat16)
    w2 = jnp.transpose(params['ff2_w'], (0, 2, 1)).astype(jnp.bfloat16)       # (L,F,E)
    b2 = params['ff2_b'].reshape(L, 1, E).astype(jnp.float32)
    ln1w = params['ln1_w'].reshape(L, 1, E).astype(jnp.float32)
    ln1b = params['ln1_b'].reshape(L, 1, E).astype(jnp.float32)
    ln2w = params['ln2_w'].reshape(L, 1, E).astype(jnp.float32)
    ln2b = params['ln2_b'].reshape(L, 1, E).astype(jnp.float32)

    # head-segment matrices: seg[e, h] = 1 if lane e belongs to head h
    seg = (jnp.arange(E)[:, None] // Dh == jnp.arange(H)[None, :]).astype(jnp.float32)
    segt = seg.T

    # fold the time-mixing Linear into one matrix (block-diagonal over a):
    #   dmat[a*P + p, b*T + t] = Wd[p, t] * (a == b)
    eye_a = jnp.eye(A, dtype=jnp.float32)
    dmat = jnp.einsum('ab,pt->apbt', eye_a,
                      params['dense_w']).reshape(A * P, A * T).astype(jnp.bfloat16)
    dbias = jnp.broadcast_to(jnp.tile(params['dense_b'], A)[:, None],
                             (A * P, E)).astype(jnp.float32)

    return (seg, segt, dmat, dbias,
            wq, bq, wk, bk, wv, bv, wo, bo, ln1w, ln1b,
            w1, b1, w2, b2, ln2w, ln2b)


# --------------------------------- wrapper -----------------------------------
def _forward(x, prepped):
    A, T, E = x.shape
    P = PRED_STEP
    assert A == 2, "attention closed-form specialized for dim0 == 2"

    # kernel-internal layout: rows ordered (a, t) -> a*T + t  (plain reshape)
    x2 = x.reshape(A * T, E).astype(jnp.float32)

    vmem = pl.BlockSpec(memory_space=pltpu.MemorySpace.VMEM)
    out = pl.pallas_call(
        transformer_kernel,
        out_shape=jax.ShapeDtypeStruct((A * P, E), jnp.float32),
        in_specs=[vmem] * (1 + len(prepped)),
        out_specs=vmem,
    )(x2, *prepped)

    return out.reshape(A, P, E)          # (dim0, pred_step, num_features)


transformer_forward = jax.jit(_forward)


# --------------------------- deterministic params ----------------------------
def build_params(key):
    E, F, L = NUM_FEATURES, DIM_FF, NUM_LAYERS
    keys = jax.random.split(key, 10)

    def nrm(k, shape, s=0.05):
        return jax.random.normal(k, shape, jnp.float32) * s

    return dict(
        in_w=nrm(keys[0], (L, 3 * E, E)),        # MHA in_proj_weight per layer
        in_b=nrm(keys[1], (L, 3 * E)),
        out_w=nrm(keys[2], (L, E, E)),           # MHA out_proj per layer
        out_b=nrm(keys[3], (L, E)),
        ln1_w=jnp.ones((L, E), jnp.float32),
        ln1_b=jnp.zeros((L, E), jnp.float32),
        ff1_w=nrm(keys[4], (L, F, E)),           # linear1 (E -> F), torch orientation
        ff1_b=nrm(keys[5], (L, F)),
        ff2_w=nrm(keys[6], (L, E, F)),           # linear2 (F -> E), torch orientation
        ff2_b=nrm(keys[7], (L, E)),
        ln2_w=jnp.ones((L, E), jnp.float32),
        ln2_b=jnp.zeros((L, E), jnp.float32),
        dense_w=nrm(keys[8], (PRED_STEP, OBSERV_STEP)),   # Linear(T -> P)
        dense_b=nrm(keys[9], (PRED_STEP,)),
    )


if __name__ == "__main__":
    key = jax.random.PRNGKey(0)
    pkey, xkey = jax.random.split(key)
    params = build_params(pkey)

    # one-time weight preparation, reused across calls
    prepped = jax.block_until_ready(prepare_params(params))

    # module input: (dim0, observ_step, num_features)
    x = jax.random.normal(xkey, (SEQ0, OBSERV_STEP, NUM_FEATURES), jnp.float32)

    y = transformer_forward(x, prepped)
    y = jax.block_until_ready(y)

    assert y.shape == (SEQ0, PRED_STEP, NUM_FEATURES), y.shape
    assert bool(jnp.all(jnp.isfinite(y)))
    print("KERNEL_OK")
</pallas_src>

<mosaic_0001>
module attributes {stable_mosaic.version = 11 : i64} {
  func.func @transformer_kernel(%arg0: memref<16x32xf32, #tpu.memory_space<vmem>>, %arg1: memref<32x4xf32, #tpu.memory_space<vmem>>, %arg2: memref<4x32xf32, #tpu.memory_space<vmem>>, %arg3: memref<8x16xbf16, #tpu.memory_space<vmem>>, %arg4: memref<8x32xf32, #tpu.memory_space<vmem>>, %arg5: memref<2x32x32xbf16, #tpu.memory_space<vmem>>, %arg6: memref<2x1x32xf32, #tpu.memory_space<vmem>>, %arg7: memref<2x32x32xbf16, #tpu.memory_space<vmem>>, %arg8: memref<2x1x32xf32, #tpu.memory_space<vmem>>, %arg9: memref<2x32x32xbf16, #tpu.memory_space<vmem>>, %arg10: memref<2x1x32xf32, #tpu.memory_space<vmem>>, %arg11: memref<2x32x32xbf16, #tpu.memory_space<vmem>>, %arg12: memref<2x1x32xf32, #tpu.memory_space<vmem>>, %arg13: memref<2x1x32xf32, #tpu.memory_space<vmem>>, %arg14: memref<2x1x32xf32, #tpu.memory_space<vmem>>, %arg15: memref<2x32x2048xbf16, #tpu.memory_space<vmem>>, %arg16: memref<2x1x2048xbf16, #tpu.memory_space<vmem>>, %arg17: memref<2x2048x32xbf16, #tpu.memory_space<vmem>>, %arg18: memref<2x1x32xf32, #tpu.memory_space<vmem>>, %arg19: memref<2x1x32xf32, #tpu.memory_space<vmem>>, %arg20: memref<2x1x32xf32, #tpu.memory_space<vmem>>, %arg21: memref<8x32xf32, #tpu.memory_space<vmem>>) attributes {dimension_semantics = [], scalar_prefetch = 0 : i64, scratch_operands = 0 : i64, tpu.core_type = #tpu.core_type<tc>} {
    %c0 = arith.constant 0 : index
    %c0_0 = arith.constant 0 : index
    %0 = vector.load %arg0[%c0, %c0_0] : memref<16x32xf32, #tpu.memory_space<vmem>>, vector<16x32xf32>
    %c0_1 = arith.constant 0 : index
    %c0_2 = arith.constant 0 : index
    %1 = vector.load %arg1[%c0_1, %c0_2] : memref<32x4xf32, #tpu.memory_space<vmem>>, vector<32x4xf32>
    %c0_3 = arith.constant 0 : index
    %c0_4 = arith.constant 0 : index
    %2 = vector.load %arg2[%c0_3, %c0_4] : memref<4x32xf32, #tpu.memory_space<vmem>>, vector<4x32xf32>
    %3 = arith.truncf %0 : vector<16x32xf32> to vector<16x32xbf16>
    %c0_5 = arith.constant 0 : index
    %c0_6 = arith.constant 0 : index
    %c0_7 = arith.constant 0 : index
    %4 = vector.load %arg5[%c0_5, %c0_6, %c0_7] : memref<2x32x32xbf16, #tpu.memory_space<vmem>>, vector<1x32x32xbf16>
    %5 = vector.shape_cast %4 : vector<1x32x32xbf16> to vector<32x32xbf16>
    %cst = arith.constant dense<0.000000e+00> : vector<16x32xf32>
    %6 = tpu.matmul %3, %5, %cst {dimension_numbers = #tpu.dot_dimension_numbers<[1], [0], [0], [1], [0, 0, 1, 1], [], []>} : vector<16x32xbf16>, vector<32x32xbf16>, vector<16x32xf32> -> vector<16x32xf32>
    %c0_8 = arith.constant 0 : index
    %c0_9 = arith.constant 0 : index
    %c0_10 = arith.constant 0 : index
    %7 = vector.load %arg6[%c0_8, %c0_9, %c0_10] : memref<2x1x32xf32, #tpu.memory_space<vmem>>, vector<1x1x32xf32>
    %8 = vector.shape_cast %7 : vector<1x1x32xf32> to vector<1x32xf32>
    %9 = vector.broadcast %8 : vector<1x32xf32> to vector<16x32xf32>
    %10 = arith.addf %6, %9 : vector<16x32xf32>
    %c0_11 = arith.constant 0 : index
    %c0_12 = arith.constant 0 : index
    %c0_13 = arith.constant 0 : index
    %11 = vector.load %arg7[%c0_11, %c0_12, %c0_13] : memref<2x32x32xbf16, #tpu.memory_space<vmem>>, vector<1x32x32xbf16>
    %12 = vector.shape_cast %11 : vector<1x32x32xbf16> to vector<32x32xbf16>
    %cst_14 = arith.constant dense<0.000000e+00> : vector<16x32xf32>
    %13 = tpu.matmul %3, %12, %cst_14 {dimension_numbers = #tpu.dot_dimension_numbers<[1], [0], [0], [1], [0, 0, 1, 1], [], []>} : vector<16x32xbf16>, vector<32x32xbf16>, vector<16x32xf32> -> vector<16x32xf32>
    %c0_15 = arith.constant 0 : index
    %c0_16 = arith.constant 0 : index
    %c0_17 = arith.constant 0 : index
    %14 = vector.load %arg8[%c0_15, %c0_16, %c0_17] : memref<2x1x32xf32, #tpu.memory_space<vmem>>, vector<1x1x32xf32>
    %15 = vector.shape_cast %14 : vector<1x1x32xf32> to vector<1x32xf32>
    %16 = vector.broadcast %15 : vector<1x32xf32> to vector<16x32xf32>
    %17 = arith.addf %13, %16 : vector<16x32xf32>
    %c0_18 = arith.constant 0 : index
    %c0_19 = arith.constant 0 : index
    %c0_20 = arith.constant 0 : index
    %18 = vector.load %arg9[%c0_18, %c0_19, %c0_20] : memref<2x32x32xbf16, #tpu.memory_space<vmem>>, vector<1x32x32xbf16>
    %19 = vector.shape_cast %18 : vector<1x32x32xbf16> to vector<32x32xbf16>
    %cst_21 = arith.constant dense<0.000000e+00> : vector<16x32xf32>
    %20 = tpu.matmul %3, %19, %cst_21 {dimension_numbers = #tpu.dot_dimension_numbers<[1], [0], [0], [1], [0, 0, 1, 1], [], []>} : vector<16x32xbf16>, vector<32x32xbf16>, vector<16x32xf32> -> vector<16x32xf32>
    %c0_22 = arith.constant 0 : index
    %c0_23 = arith.constant 0 : index
    %c0_24 = arith.constant 0 : index
    %21 = vector.load %arg10[%c0_22, %c0_23, %c0_24] : memref<2x1x32xf32, #tpu.memory_space<vmem>>, vector<1x1x32xf32>
    %22 = vector.shape_cast %21 : vector<1x1x32xf32> to vector<1x32xf32>
    %23 = vector.broadcast %22 : vector<1x32xf32> to vector<16x32xf32>
    %24 = arith.addf %20, %23 : vector<16x32xf32>
    %25 = vector.extract_strided_slice %10 {offsets = [0, 0], sizes = [8, 32], strides = [1, 1]} : vector<16x32xf32> to vector<8x32xf32>
    %26 = vector.extract_strided_slice %10 {offsets = [8, 0], sizes = [8, 32], strides = [1, 1]} : vector<16x32xf32> to vector<8x32xf32>
    %27 = vector.extract_strided_slice %17 {offsets = [0, 0], sizes = [8, 32], strides = [1, 1]} : vector<16x32xf32> to vector<8x32xf32>
    %28 = vector.extract_strided_slice %17 {offsets = [8, 0], sizes = [8, 32], strides = [1, 1]} : vector<16x32xf32> to vector<8x32xf32>
    %29 = vector.extract_strided_slice %24 {offsets = [0, 0], sizes = [8, 32], strides = [1, 1]} : vector<16x32xf32> to vector<8x32xf32>
    %30 = vector.extract_strided_slice %24 {offsets = [8, 0], sizes = [8, 32], strides = [1, 1]} : vector<16x32xf32> to vector<8x32xf32>
    %31 = arith.mulf %25, %27 : vector<8x32xf32>
    %32 = arith.mulf %25, %28 : vector<8x32xf32>
    %33 = arith.mulf %26, %27 : vector<8x32xf32>
    %34 = arith.mulf %26, %28 : vector<8x32xf32>
    %35 = tpu.concatenate %31, %32, %33, %34 in 0 : vector<8x32xf32>, vector<8x32xf32>, vector<8x32xf32>, vector<8x32xf32> -> vector<32x32xf32>
    %cst_25 = arith.constant dense<0.000000e+00> : vector<32x4xf32>
    %36 = tpu.matmul %35, %1, %cst_25 {dimension_numbers = #tpu.dot_dimension_numbers<[1], [0], [0], [1], [0, 0, 1, 1], [], []>} : vector<32x32xf32>, vector<32x4xf32>, vector<32x4xf32> -> vector<32x4xf32>
    %37 = vector.extract_strided_slice %36 {offsets = [0, 0], sizes = [8, 4], strides = [1, 1]} : vector<32x4xf32> to vector<8x4xf32>
    %38 = vector.extract_strided_slice %36 {offsets = [8, 0], sizes = [8, 4], strides = [1, 1]} : vector<32x4xf32> to vector<8x4xf32>
    %39 = vector.extract_strided_slice %36 {offsets = [16, 0], sizes = [8, 4], strides = [1, 1]} : vector<32x4xf32> to vector<8x4xf32>
    %40 = vector.extract_strided_slice %36 {offsets = [24, 0], sizes = [8, 4], strides = [1, 1]} : vector<32x4xf32> to vector<8x4xf32>
    %41 = arith.maximumf %37, %38 : vector<8x4xf32>
    %42 = arith.subf %37, %41 : vector<8x4xf32>
    %43 = math.exp %42 : vector<8x4xf32>
    %44 = arith.subf %38, %41 : vector<8x4xf32>
    %45 = math.exp %44 : vector<8x4xf32>
    %46 = arith.addf %43, %45 : vector<8x4xf32>
    %47 = tpu.reciprocal %46 : vector<8x4xf32> -> vector<8x4xf32>
    %48 = arith.maximumf %39, %40 : vector<8x4xf32>
    %49 = arith.subf %39, %48 : vector<8x4xf32>
    %50 = math.exp %49 : vector<8x4xf32>
    %51 = arith.subf %40, %48 : vector<8x4xf32>
    %52 = math.exp %51 : vector<8x4xf32>
    %53 = arith.addf %50, %52 : vector<8x4xf32>
    %54 = tpu.reciprocal %53 : vector<8x4xf32> -> vector<8x4xf32>
    %55 = arith.mulf %43, %47 : vector<8x4xf32>
    %56 = arith.mulf %45, %47 : vector<8x4xf32>
    %57 = arith.mulf %50, %54 : vector<8x4xf32>
    %58 = arith.mulf %52, %54 : vector<8x4xf32>
    %59 = tpu.concatenate %55, %56, %57, %58 in 0 : vector<8x4xf32>, vector<8x4xf32>, vector<8x4xf32>, vector<8x4xf32> -> vector<32x4xf32>
    %cst_26 = arith.constant dense<0.000000e+00> : vector<32x32xf32>
    %60 = tpu.matmul %59, %2, %cst_26 {dimension_numbers = #tpu.dot_dimension_numbers<[1], [0], [0], [1], [0, 0, 1, 1], [], []>} : vector<32x4xf32>, vector<4x32xf32>, vector<32x32xf32> -> vector<32x32xf32>
    %61 = vector.extract_strided_slice %60 {offsets = [0, 0], sizes = [8, 32], strides = [1, 1]} : vector<32x32xf32> to vector<8x32xf32>
    %62 = vector.extract_strided_slice %60 {offsets = [8, 0], sizes = [8, 32], strides = [1, 1]} : vector<32x32xf32> to vector<8x32xf32>
    %63 = vector.extract_strided_slice %60 {offsets = [16, 0], sizes = [8, 32], strides = [1, 1]} : vector<32x32xf32> to vector<8x32xf32>
    %64 = vector.extract_strided_slice %60 {offsets = [24, 0], sizes = [8, 32], strides = [1, 1]} : vector<32x32xf32> to vector<8x32xf32>
    %65 = arith.mulf %61, %29 : vector<8x32xf32>
    %66 = arith.mulf %62, %30 : vector<8x32xf32>
    %67 = arith.addf %65, %66 : vector<8x32xf32>
    %68 = arith.mulf %63, %29 : vector<8x32xf32>
    %69 = arith.mulf %64, %30 : vector<8x32xf32>
    %70 = arith.addf %68, %69 : vector<8x32xf32>
    %71 = tpu.concatenate %67, %70 in 0 : vector<8x32xf32>, vector<8x32xf32> -> vector<16x32xf32>
    %72 = arith.truncf %71 : vector<16x32xf32> to vector<16x32xbf16>
    %c0_27 = arith.constant 0 : index
    %c0_28 = arith.constant 0 : index
    %c0_29 = arith.constant 0 : index
    %73 = vector.load %arg11[%c0_27, %c0_28, %c0_29] : memref<2x32x32xbf16, #tpu.memory_space<vmem>>, vector<1x32x32xbf16>
    %74 = vector.shape_cast %73 : vector<1x32x32xbf16> to vector<32x32xbf16>
    %cst_30 = arith.constant dense<0.000000e+00> : vector<16x32xf32>
    %75 = tpu.matmul %72, %74, %cst_30 {dimension_numbers = #tpu.dot_dimension_numbers<[1], [0], [0], [1], [0, 0, 1, 1], [], []>} : vector<16x32xbf16>, vector<32x32xbf16>, vector<16x32xf32> -> vector<16x32xf32>
    %c0_31 = arith.constant 0 : index
    %c0_32 = arith.constant 0 : index
    %c0_33 = arith.constant 0 : index
    %76 = vector.load %arg12[%c0_31, %c0_32, %c0_33] : memref<2x1x32xf32, #tpu.memory_space<vmem>>, vector<1x1x32xf32>
    %77 = vector.shape_cast %76 : vector<1x1x32xf32> to vector<1x32xf32>
    %78 = vector.broadcast %77 : vector<1x32xf32> to vector<16x32xf32>
    %79 = arith.addf %75, %78 : vector<16x32xf32>
    %80 = arith.addf %0, %79 : vector<16x32xf32>
    %c0_34 = arith.constant 0 : index
    %c0_35 = arith.constant 0 : index
    %c0_36 = arith.constant 0 : index
    %81 = vector.load %arg13[%c0_34, %c0_35, %c0_36] : memref<2x1x32xf32, #tpu.memory_space<vmem>>, vector<1x1x32xf32>
    %82 = vector.shape_cast %81 : vector<1x1x32xf32> to vector<1x32xf32>
    %c0_37 = arith.constant 0 : index
    %c0_38 = arith.constant 0 : index
    %c0_39 = arith.constant 0 : index
    %83 = vector.load %arg14[%c0_37, %c0_38, %c0_39] : memref<2x1x32xf32, #tpu.memory_space<vmem>>, vector<1x1x32xf32>
    %84 = vector.shape_cast %83 : vector<1x1x32xf32> to vector<1x32xf32>
    %cst_40 = arith.constant dense<0.000000e+00> : vector<16xf32>
    %85 = vector.multi_reduction <add>, %80, %cst_40 [1] : vector<16x32xf32> to vector<16xf32>
    %86 = vector.shape_cast %85 : vector<16xf32> to vector<16x1xf32>
    %cst_41 = arith.constant 3.200000e+01 : f32
    %87 = vector.broadcast %cst_41 : f32 to vector<16x1xf32>
    %88 = arith.divf %86, %87 : vector<16x1xf32>
    %89 = vector.broadcast %88 : vector<16x1xf32> to vector<16x32xf32>
    %90 = arith.subf %80, %89 : vector<16x32xf32>
    %91 = arith.mulf %90, %90 : vector<16x32xf32>
    %cst_42 = arith.constant dense<0.000000e+00> : vector<16xf32>
    %92 = vector.multi_reduction <add>, %91, %cst_42 [1] : vector<16x32xf32> to vector<16xf32>
    %93 = vector.shape_cast %92 : vector<16xf32> to vector<16x1xf32>
    %cst_43 = arith.constant 3.200000e+01 : f32
    %94 = vector.broadcast %cst_43 : f32 to vector<16x1xf32>
    %95 = arith.divf %93, %94 : vector<16x1xf32>
    %96 = vector.broadcast %88 : vector<16x1xf32> to vector<16x32xf32>
    %97 = arith.subf %80, %96 : vector<16x32xf32>
    %cst_44 = arith.constant 9.99999974E-6 : f32
    %98 = vector.broadcast %cst_44 : f32 to vector<16x1xf32>
    %99 = arith.addf %95, %98 : vector<16x1xf32>
    %100 = math.rsqrt %99 : vector<16x1xf32>
    %101 = vector.broadcast %100 : vector<16x1xf32> to vector<16x32xf32>
    %102 = arith.mulf %97, %101 : vector<16x32xf32>
    %103 = vector.broadcast %82 : vector<1x32xf32> to vector<16x32xf32>
    %104 = arith.mulf %102, %103 : vector<16x32xf32>
    %105 = vector.broadcast %84 : vector<1x32xf32> to vector<16x32xf32>
    %106 = arith.addf %104, %105 : vector<16x32xf32>
    %107 = arith.truncf %106 : vector<16x32xf32> to vector<16x32xbf16>
    %c0_45 = arith.constant 0 : index
    %c0_46 = arith.constant 0 : index
    %c0_47 = arith.constant 0 : index
    %108 = vector.load %arg15[%c0_45, %c0_46, %c0_47] : memref<2x32x2048xbf16, #tpu.memory_space<vmem>>, vector<1x32x2048xbf16>
    %109 = vector.shape_cast %108 : vector<1x32x2048xbf16> to vector<32x2048xbf16>
    %cst_48 = arith.constant dense<0.000000e+00> : vector<16x2048xf32>
    %110 = tpu.matmul %107, %109, %cst_48 {dimension_numbers = #tpu.dot_dimension_numbers<[1], [0], [0], [1], [0, 0, 1, 1], [], []>} : vector<16x32xbf16>, vector<32x2048xbf16>, vector<16x2048xf32> -> vector<16x2048xf32>
    %111 = arith.truncf %110 : vector<16x2048xf32> to vector<16x2048xbf16>
    %c0_49 = arith.constant 0 : index
    %c0_50 = arith.constant 0 : index
    %c0_51 = arith.constant 0 : index
    %112 = vector.load %arg16[%c0_49, %c0_50, %c0_51] : memref<2x1x2048xbf16, #tpu.memory_space<vmem>>, vector<1x1x2048xbf16>
    %113 = vector.shape_cast %112 : vector<1x1x2048xbf16> to vector<1x2048xbf16>
    %114 = vector.broadcast %113 : vector<1x2048xbf16> to vector<16x2048xbf16>
    %115 = arith.addf %111, %114 : vector<16x2048xbf16>
    %cst_52 = arith.constant 0.000000e+00 : bf16
    %116 = vector.broadcast %cst_52 : bf16 to vector<16x2048xbf16>
    %117 = arith.maximumf %115, %116 : vector<16x2048xbf16>
    %c0_53 = arith.constant 0 : index
    %c0_54 = arith.constant 0 : index
    %c0_55 = arith.constant 0 : index
    %118 = vector.load %arg17[%c0_53, %c0_54, %c0_55] : memref<2x2048x32xbf16, #tpu.memory_space<vmem>>, vector<1x2048x32xbf16>
    %119 = vector.shape_cast %118 : vector<1x2048x32xbf16> to vector<2048x32xbf16>
    %cst_56 = arith.constant dense<0.000000e+00> : vector<16x32xf32>
    %120 = tpu.matmul %117, %119, %cst_56 {dimension_numbers = #tpu.dot_dimension_numbers<[1], [0], [0], [1], [0, 0, 1, 1], [], []>} : vector<16x2048xbf16>, vector<2048x32xbf16>, vector<16x32xf32> -> vector<16x32xf32>
    %c0_57 = arith.constant 0 : index
    %c0_58 = arith.constant 0 : index
    %c0_59 = arith.constant 0 : index
    %121 = vector.load %arg18[%c0_57, %c0_58, %c0_59] : memref<2x1x32xf32, #tpu.memory_space<vmem>>, vector<1x1x32xf32>
    %122 = vector.shape_cast %121 : vector<1x1x32xf32> to vector<1x32xf32>
    %123 = vector.broadcast %122 : vector<1x32xf32> to vector<16x32xf32>
    %124 = arith.addf %120, %123 : vector<16x32xf32>
    %125 = arith.addf %106, %124 : vector<16x32xf32>
    %c0_60 = arith.constant 0 : index
    %c0_61 = arith.constant 0 : index
    %c0_62 = arith.constant 0 : index
    %126 = vector.load %arg19[%c0_60, %c0_61, %c0_62] : memref<2x1x32xf32, #tpu.memory_space<vmem>>, vector<1x1x32xf32>
    %127 = vector.shape_cast %126 : vector<1x1x32xf32> to vector<1x32xf32>
    %c0_63 = arith.constant 0 : index
    %c0_64 = arith.constant 0 : index
    %c0_65 = arith.constant 0 : index
    %128 = vector.load %arg20[%c0_63, %c0_64, %c0_65] : memref<2x1x32xf32, #tpu.memory_space<vmem>>, vector<1x1x32xf32>
    %129 = vector.shape_cast %128 : vector<1x1x32xf32> to vector<1x32xf32>
    %cst_66 = arith.constant dense<0.000000e+00> : vector<16xf32>
    %130 = vector.multi_reduction <add>, %125, %cst_66 [1] : vector<16x32xf32> to vector<16xf32>
    %131 = vector.shape_cast %130 : vector<16xf32> to vector<16x1xf32>
    %cst_67 = arith.constant 3.200000e+01 : f32
    %132 = vector.broadcast %cst_67 : f32 to vector<16x1xf32>
    %133 = arith.divf %131, %132 : vector<16x1xf32>
    %134 = vector.broadcast %133 : vector<16x1xf32> to vector<16x32xf32>
    %135 = arith.subf %125, %134 : vector<16x32xf32>
    %136 = arith.mulf %135, %135 : vector<16x32xf32>
    %cst_68 = arith.constant dense<0.000000e+00> : vector<16xf32>
    %137 = vector.multi_reduction <add>, %136, %cst_68 [1] : vector<16x32xf32> to vector<16xf32>
    %138 = vector.shape_cast %137 : vector<16xf32> to vector<16x1xf32>
    %cst_69 = arith.constant 3.200000e+01 : f32
    %139 = vector.broadcast %cst_69 : f32 to vector<16x1xf32>
    %140 = arith.divf %138, %139 : vector<16x1xf32>
    %141 = vector.broadcast %133 : vector<16x1xf32> to vector<16x32xf32>
    %142 = arith.subf %125, %141 : vector<16x32xf32>
    %cst_70 = arith.constant 9.99999974E-6 : f32
    %143 = vector.broadcast %cst_70 : f32 to vector<16x1xf32>
    %144 = arith.addf %140, %143 : vector<16x1xf32>
    %145 = math.rsqrt %144 : vector<16x1xf32>
    %146 = vector.broadcast %145 : vector<16x1xf32> to vector<16x32xf32>
    %147 = arith.mulf %142, %146 : vector<16x32xf32>
    %148 = vector.broadcast %127 : vector<1x32xf32> to vector<16x32xf32>
    %149 = arith.mulf %147, %148 : vector<16x32xf32>
    %150 = vector.broadcast %129 : vector<1x32xf32> to vector<16x32xf32>
    %151 = arith.addf %149, %150 : vector<16x32xf32>
    %152 = arith.truncf %151 : vector<16x32xf32> to vector<16x32xbf16>
    %c1 = arith.constant 1 : index
    %c0_71 = arith.constant 0 : index
    %c0_72 = arith.constant 0 : index
    %153 = vector.load %arg5[%c1, %c0_71, %c0_72] : memref<2x32x32xbf16, #tpu.memory_space<vmem>>, vector<1x32x32xbf16>
    %154 = vector.shape_cast %153 : vector<1x32x32xbf16> to vector<32x32xbf16>
    %cst_73 = arith.constant dense<0.000000e+00> : vector<16x32xf32>
    %155 = tpu.matmul %152, %154, %cst_73 {dimension_numbers = #tpu.dot_dimension_numbers<[1], [0], [0], [1], [0, 0, 1, 1], [], []>} : vector<16x32xbf16>, vector<32x32xbf16>, vector<16x32xf32> -> vector<16x32xf32>
    %c1_74 = arith.constant 1 : index
    %c0_75 = arith.constant 0 : index
    %c0_76 = arith.constant 0 : index
    %156 = vector.load %arg6[%c1_74, %c0_75, %c0_76] : memref<2x1x32xf32, #tpu.memory_space<vmem>>, vector<1x1x32xf32>
    %157 = vector.shape_cast %156 : vector<1x1x32xf32> to vector<1x32xf32>
    %158 = vector.broadcast %157 : vector<1x32xf32> to vector<16x32xf32>
    %159 = arith.addf %155, %158 : vector<16x32xf32>
    %c1_77 = arith.constant 1 : index
    %c0_78 = arith.constant 0 : index
    %c0_79 = arith.constant 0 : index
    %160 = vector.load %arg7[%c1_77, %c0_78, %c0_79] : memref<2x32x32xbf16, #tpu.memory_space<vmem>>, vector<1x32x32xbf16>
    %161 = vector.shape_cast %160 : vector<1x32x32xbf16> to vector<32x32xbf16>
    %cst_80 = arith.constant dense<0.000000e+00> : vector<16x32xf32>
    %162 = tpu.matmul %152, %161, %cst_80 {dimension_numbers = #tpu.dot_dimension_numbers<[1], [0], [0], [1], [0, 0, 1, 1], [], []>} : vector<16x32xbf16>, vector<32x32xbf16>, vector<16x32xf32> -> vector<16x32xf32>
    %c1_81 = arith.constant 1 : index
    %c0_82 = arith.constant 0 : index
    %c0_83 = arith.constant 0 : index
    %163 = vector.load %arg8[%c1_81, %c0_82, %c0_83] : memref<2x1x32xf32, #tpu.memory_space<vmem>>, vector<1x1x32xf32>
    %164 = vector.shape_cast %163 : vector<1x1x32xf32> to vector<1x32xf32>
    %165 = vector.broadcast %164 : vector<1x32xf32> to vector<16x32xf32>
    %166 = arith.addf %162, %165 : vector<16x32xf32>
    %c1_84 = arith.constant 1 : index
    %c0_85 = arith.constant 0 : index
    %c0_86 = arith.constant 0 : index
    %167 = vector.load %arg9[%c1_84, %c0_85, %c0_86] : memref<2x32x32xbf16, #tpu.memory_space<vmem>>, vector<1x32x32xbf16>
    %168 = vector.shape_cast %167 : vector<1x32x32xbf16> to vector<32x32xbf16>
    %cst_87 = arith.constant dense<0.000000e+00> : vector<16x32xf32>
    %169 = tpu.matmul %152, %168, %cst_87 {dimension_numbers = #tpu.dot_dimension_numbers<[1], [0], [0], [1], [0, 0, 1, 1], [], []>} : vector<16x32xbf16>, vector<32x32xbf16>, vector<16x32xf32> -> vector<16x32xf32>
    %c1_88 = arith.constant 1 : index
    %c0_89 = arith.constant 0 : index
    %c0_90 = arith.constant 0 : index
    %170 = vector.load %arg10[%c1_88, %c0_89, %c0_90] : memref<2x1x32xf32, #tpu.memory_space<vmem>>, vector<1x1x32xf32>
    %171 = vector.shape_cast %170 : vector<1x1x32xf32> to vector<1x32xf32>
    %172 = vector.broadcast %171 : vector<1x32xf32> to vector<16x32xf32>
    %173 = arith.addf %169, %172 : vector<16x32xf32>
    %174 = vector.extract_strided_slice %159 {offsets = [0, 0], sizes = [8, 32], strides = [1, 1]} : vector<16x32xf32> to vector<8x32xf32>
    %175 = vector.extract_strided_slice %159 {offsets = [8, 0], sizes = [8, 32], strides = [1, 1]} : vector<16x32xf32> to vector<8x32xf32>
    %176 = vector.extract_strided_slice %166 {offsets = [0, 0], sizes = [8, 32], strides = [1, 1]} : vector<16x32xf32> to vector<8x32xf32>
    %177 = vector.extract_strided_slice %166 {offsets = [8, 0], sizes = [8, 32], strides = [1, 1]} : vector<16x32xf32> to vector<8x32xf32>
    %178 = vector.extract_strided_slice %173 {offsets = [0, 0], sizes = [8, 32], strides = [1, 1]} : vector<16x32xf32> to vector<8x32xf32>
    %179 = vector.extract_strided_slice %173 {offsets = [8, 0], sizes = [8, 32], strides = [1, 1]} : vector<16x32xf32> to vector<8x32xf32>
    %180 = arith.mulf %174, %176 : vector<8x32xf32>
    %181 = arith.mulf %174, %177 : vector<8x32xf32>
    %182 = arith.mulf %175, %176 : vector<8x32xf32>
    %183 = arith.mulf %175, %177 : vector<8x32xf32>
    %184 = tpu.concatenate %180, %181, %182, %183 in 0 : vector<8x32xf32>, vector<8x32xf32>, vector<8x32xf32>, vector<8x32xf32> -> vector<32x32xf32>
    %cst_91 = arith.constant dense<0.000000e+00> : vector<32x4xf32>
    %185 = tpu.matmul %184, %1, %cst_91 {dimension_numbers = #tpu.dot_dimension_numbers<[1], [0], [0], [1], [0, 0, 1, 1], [], []>} : vector<32x32xf32>, vector<32x4xf32>, vector<32x4xf32> -> vector<32x4xf32>
    %186 = vector.extract_strided_slice %185 {offsets = [0, 0], sizes = [8, 4], strides = [1, 1]} : vector<32x4xf32> to vector<8x4xf32>
    %187 = vector.extract_strided_slice %185 {offsets = [8, 0], sizes = [8, 4], strides = [1, 1]} : vector<32x4xf32> to vector<8x4xf32>
    %188 = vector.extract_strided_slice %185 {offsets = [16, 0], sizes = [8, 4], strides = [1, 1]} : vector<32x4xf32> to vector<8x4xf32>
    %189 = vector.extract_strided_slice %185 {offsets = [24, 0], sizes = [8, 4], strides = [1, 1]} : vector<32x4xf32> to vector<8x4xf32>
    %190 = arith.maximumf %186, %187 : vector<8x4xf32>
    %191 = arith.subf %186, %190 : vector<8x4xf32>
    %192 = math.exp %191 : vector<8x4xf32>
    %193 = arith.subf %187, %190 : vector<8x4xf32>
    %194 = math.exp %193 : vector<8x4xf32>
    %195 = arith.addf %192, %194 : vector<8x4xf32>
    %196 = tpu.reciprocal %195 : vector<8x4xf32> -> vector<8x4xf32>
    %197 = arith.maximumf %188, %189 : vector<8x4xf32>
    %198 = arith.subf %188, %197 : vector<8x4xf32>
    %199 = math.exp %198 : vector<8x4xf32>
    %200 = arith.subf %189, %197 : vector<8x4xf32>
    %201 = math.exp %200 : vector<8x4xf32>
    %202 = arith.addf %199, %201 : vector<8x4xf32>
    %203 = tpu.reciprocal %202 : vector<8x4xf32> -> vector<8x4xf32>
    %204 = arith.mulf %192, %196 : vector<8x4xf32>
    %205 = arith.mulf %194, %196 : vector<8x4xf32>
    %206 = arith.mulf %199, %203 : vector<8x4xf32>
    %207 = arith.mulf %201, %203 : vector<8x4xf32>
    %208 = tpu.concatenate %204, %205, %206, %207 in 0 : vector<8x4xf32>, vector<8x4xf32>, vector<8x4xf32>, vector<8x4xf32> -> vector<32x4xf32>
    %cst_92 = arith.constant dense<0.000000e+00> : vector<32x32xf32>
    %209 = tpu.matmul %208, %2, %cst_92 {dimension_numbers = #tpu.dot_dimension_numbers<[1], [0], [0], [1], [0, 0, 1, 1], [], []>} : vector<32x4xf32>, vector<4x32xf32>, vector<32x32xf32> -> vector<32x32xf32>
    %210 = vector.extract_strided_slice %209 {offsets = [0, 0], sizes = [8, 32], strides = [1, 1]} : vector<32x32xf32> to vector<8x32xf32>
    %211 = vector.extract_strided_slice %209 {offsets = [8, 0], sizes = [8, 32], strides = [1, 1]} : vector<32x32xf32> to vector<8x32xf32>
    %212 = vector.extract_strided_slice %209 {offsets = [16, 0], sizes = [8, 32], strides = [1, 1]} : vector<32x32xf32> to vector<8x32xf32>
    %213 = vector.extract_strided_slice %209 {offsets = [24, 0], sizes = [8, 32], strides = [1, 1]} : vector<32x32xf32> to vector<8x32xf32>
    %214 = arith.mulf %210, %178 : vector<8x32xf32>
    %215 = arith.mulf %211, %179 : vector<8x32xf32>
    %216 = arith.addf %214, %215 : vector<8x32xf32>
    %217 = arith.mulf %212, %178 : vector<8x32xf32>
    %218 = arith.mulf %213, %179 : vector<8x32xf32>
    %219 = arith.addf %217, %218 : vector<8x32xf32>
    %220 = tpu.concatenate %216, %219 in 0 : vector<8x32xf32>, vector<8x32xf32> -> vector<16x32xf32>
    %221 = arith.truncf %220 : vector<16x32xf32> to vector<16x32xbf16>
    %c1_93 = arith.constant 1 : index
    %c0_94 = arith.constant 0 : index
    %c0_95 = arith.constant 0 : index
    %222 = vector.load %arg11[%c1_93, %c0_94, %c0_95] : memref<2x32x32xbf16, #tpu.memory_space<vmem>>, vector<1x32x32xbf16>
    %223 = vector.shape_cast %222 : vector<1x32x32xbf16> to vector<32x32xbf16>
    %cst_96 = arith.constant dense<0.000000e+00> : vector<16x32xf32>
    %224 = tpu.matmul %221, %223, %cst_96 {dimension_numbers = #tpu.dot_dimension_numbers<[1], [0], [0], [1], [0, 0, 1, 1], [], []>} : vector<16x32xbf16>, vector<32x32xbf16>, vector<16x32xf32> -> vector<16x32xf32>
    %c1_97 = arith.constant 1 : index
    %c0_98 = arith.constant 0 : index
    %c0_99 = arith.constant 0 : index
    %225 = vector.load %arg12[%c1_97, %c0_98, %c0_99] : memref<2x1x32xf32, #tpu.memory_space<vmem>>, vector<1x1x32xf32>
    %226 = vector.shape_cast %225 : vector<1x1x32xf32> to vector<1x32xf32>
    %227 = vector.broadcast %226 : vector<1x32xf32> to vector<16x32xf32>
    %228 = arith.addf %224, %227 : vector<16x32xf32>
    %229 = arith.addf %151, %228 : vector<16x32xf32>
    %c1_100 = arith.constant 1 : index
    %c0_101 = arith.constant 0 : index
    %c0_102 = arith.constant 0 : index
    %230 = vector.load %arg13[%c1_100, %c0_101, %c0_102] : memref<2x1x32xf32, #tpu.memory_space<vmem>>, vector<1x1x32xf32>
    %231 = vector.shape_cast %230 : vector<1x1x32xf32> to vector<1x32xf32>
    %c1_103 = arith.constant 1 : index
    %c0_104 = arith.constant 0 : index
    %c0_105 = arith.constant 0 : index
    %232 = vector.load %arg14[%c1_103, %c0_104, %c0_105] : memref<2x1x32xf32, #tpu.memory_space<vmem>>, vector<1x1x32xf32>
    %233 = vector.shape_cast %232 : vector<1x1x32xf32> to vector<1x32xf32>
    %cst_106 = arith.constant dense<0.000000e+00> : vector<16xf32>
    %234 = vector.multi_reduction <add>, %229, %cst_106 [1] : vector<16x32xf32> to vector<16xf32>
    %235 = vector.shape_cast %234 : vector<16xf32> to vector<16x1xf32>
    %cst_107 = arith.constant 3.200000e+01 : f32
    %236 = vector.broadcast %cst_107 : f32 to vector<16x1xf32>
    %237 = arith.divf %235, %236 : vector<16x1xf32>
    %238 = vector.broadcast %237 : vector<16x1xf32> to vector<16x32xf32>
    %239 = arith.subf %229, %238 : vector<16x32xf32>
    %240 = arith.mulf %239, %239 : vector<16x32xf32>
    %cst_108 = arith.constant dense<0.000000e+00> : vector<16xf32>
    %241 = vector.multi_reduction <add>, %240, %cst_108 [1] : vector<16x32xf32> to vector<16xf32>
    %242 = vector.shape_cast %241 : vector<16xf32> to vector<16x1xf32>
    %cst_109 = arith.constant 3.200000e+01 : f32
    %243 = vector.broadcast %cst_109 : f32 to vector<16x1xf32>
    %244 = arith.divf %242, %243 : vector<16x1xf32>
    %245 = vector.broadcast %237 : vector<16x1xf32> to vector<16x32xf32>
    %246 = arith.subf %229, %245 : vector<16x32xf32>
    %cst_110 = arith.constant 9.99999974E-6 : f32
    %247 = vector.broadcast %cst_110 : f32 to vector<16x1xf32>
    %248 = arith.addf %244, %247 : vector<16x1xf32>
    %249 = math.rsqrt %248 : vector<16x1xf32>
    %250 = vector.broadcast %249 : vector<16x1xf32> to vector<16x32xf32>
    %251 = arith.mulf %246, %250 : vector<16x32xf32>
    %252 = vector.broadcast %231 : vector<1x32xf32> to vector<16x32xf32>
    %253 = arith.mulf %251, %252 : vector<16x32xf32>
    %254 = vector.broadcast %233 : vector<1x32xf32> to vector<16x32xf32>
    %255 = arith.addf %253, %254 : vector<16x32xf32>
    %256 = arith.truncf %255 : vector<16x32xf32> to vector<16x32xbf16>
    %c1_111 = arith.constant 1 : index
    %c0_112 = arith.constant 0 : index
    %c0_113 = arith.constant 0 : index
    %257 = vector.load %arg15[%c1_111, %c0_112, %c0_113] : memref<2x32x2048xbf16, #tpu.memory_space<vmem>>, vector<1x32x2048xbf16>
    %258 = vector.shape_cast %257 : vector<1x32x2048xbf16> to vector<32x2048xbf16>
    %cst_114 = arith.constant dense<0.000000e+00> : vector<16x2048xf32>
    %259 = tpu.matmul %256, %258, %cst_114 {dimension_numbers = #tpu.dot_dimension_numbers<[1], [0], [0], [1], [0, 0, 1, 1], [], []>} : vector<16x32xbf16>, vector<32x2048xbf16>, vector<16x2048xf32> -> vector<16x2048xf32>
    %260 = arith.truncf %259 : vector<16x2048xf32> to vector<16x2048xbf16>
    %c1_115 = arith.constant 1 : index
    %c0_116 = arith.constant 0 : index
    %c0_117 = arith.constant 0 : index
    %261 = vector.load %arg16[%c1_115, %c0_116, %c0_117] : memref<2x1x2048xbf16, #tpu.memory_space<vmem>>, vector<1x1x2048xbf16>
    %262 = vector.shape_cast %261 : vector<1x1x2048xbf16> to vector<1x2048xbf16>
    %263 = vector.broadcast %262 : vector<1x2048xbf16> to vector<16x2048xbf16>
    %264 = arith.addf %260, %263 : vector<16x2048xbf16>
    %cst_118 = arith.constant 0.000000e+00 : bf16
    %265 = vector.broadcast %cst_118 : bf16 to vector<16x2048xbf16>
    %266 = arith.maximumf %264, %265 : vector<16x2048xbf16>
    %c1_119 = arith.constant 1 : index
    %c0_120 = arith.constant 0 : index
    %c0_121 = arith.constant 0 : index
    %267 = vector.load %arg17[%c1_119, %c0_120, %c0_121] : memref<2x2048x32xbf16, #tpu.memory_space<vmem>>, vector<1x2048x32xbf16>
    %268 = vector.shape_cast %267 : vector<1x2048x32xbf16> to vector<2048x32xbf16>
    %cst_122 = arith.constant dense<0.000000e+00> : vector<16x32xf32>
    %269 = tpu.matmul %266, %268, %cst_122 {dimension_numbers = #tpu.dot_dimension_numbers<[1], [0], [0], [1], [0, 0, 1, 1], [], []>} : vector<16x2048xbf16>, vector<2048x32xbf16>, vector<16x32xf32> -> vector<16x32xf32>
    %c1_123 = arith.constant 1 : index
    %c0_124 = arith.constant 0 : index
    %c0_125 = arith.constant 0 : index
    %270 = vector.load %arg18[%c1_123, %c0_124, %c0_125] : memref<2x1x32xf32, #tpu.memory_space<vmem>>, vector<1x1x32xf32>
    %271 = vector.shape_cast %270 : vector<1x1x32xf32> to vector<1x32xf32>
    %272 = vector.broadcast %271 : vector<1x32xf32> to vector<16x32xf32>
    %273 = arith.addf %269, %272 : vector<16x32xf32>
    %274 = arith.addf %255, %273 : vector<16x32xf32>
    %c1_126 = arith.constant 1 : index
    %c0_127 = arith.constant 0 : index
    %c0_128 = arith.constant 0 : index
    %275 = vector.load %arg19[%c1_126, %c0_127, %c0_128] : memref<2x1x32xf32, #tpu.memory_space<vmem>>, vector<1x1x32xf32>
    %276 = vector.shape_cast %275 : vector<1x1x32xf32> to vector<1x32xf32>
    %c1_129 = arith.constant 1 : index
    %c0_130 = arith.constant 0 : index
    %c0_131 = arith.constant 0 : index
    %277 = vector.load %arg20[%c1_129, %c0_130, %c0_131] : memref<2x1x32xf32, #tpu.memory_space<vmem>>, vector<1x1x32xf32>
    %278 = vector.shape_cast %277 : vector<1x1x32xf32> to vector<1x32xf32>
    %cst_132 = arith.constant dense<0.000000e+00> : vector<16xf32>
    %279 = vector.multi_reduction <add>, %274, %cst_132 [1] : vector<16x32xf32> to vector<16xf32>
    %280 = vector.shape_cast %279 : vector<16xf32> to vector<16x1xf32>
    %cst_133 = arith.constant 3.200000e+01 : f32
    %281 = vector.broadcast %cst_133 : f32 to vector<16x1xf32>
    %282 = arith.divf %280, %281 : vector<16x1xf32>
    %283 = vector.broadcast %282 : vector<16x1xf32> to vector<16x32xf32>
    %284 = arith.subf %274, %283 : vector<16x32xf32>
    %285 = arith.mulf %284, %284 : vector<16x32xf32>
    %cst_134 = arith.constant dense<0.000000e+00> : vector<16xf32>
    %286 = vector.multi_reduction <add>, %285, %cst_134 [1] : vector<16x32xf32> to vector<16xf32>
    %287 = vector.shape_cast %286 : vector<16xf32> to vector<16x1xf32>
    %cst_135 = arith.constant 3.200000e+01 : f32
    %288 = vector.broadcast %cst_135 : f32 to vector<16x1xf32>
    %289 = arith.divf %287, %288 : vector<16x1xf32>
    %290 = vector.broadcast %282 : vector<16x1xf32> to vector<16x32xf32>
    %291 = arith.subf %274, %290 : vector<16x32xf32>
    %cst_136 = arith.constant 9.99999974E-6 : f32
    %292 = vector.broadcast %cst_136 : f32 to vector<16x1xf32>
    %293 = arith.addf %289, %292 : vector<16x1xf32>
    %294 = math.rsqrt %293 : vector<16x1xf32>
    %295 = vector.broadcast %294 : vector<16x1xf32> to vector<16x32xf32>
    %296 = arith.mulf %291, %295 : vector<16x32xf32>
    %297 = vector.broadcast %276 : vector<1x32xf32> to vector<16x32xf32>
    %298 = arith.mulf %296, %297 : vector<16x32xf32>
    %299 = vector.broadcast %278 : vector<1x32xf32> to vector<16x32xf32>
    %300 = arith.addf %298, %299 : vector<16x32xf32>
    %c0_137 = arith.constant 0 : index
    %c0_138 = arith.constant 0 : index
    %301 = vector.load %arg3[%c0_137, %c0_138] : memref<8x16xbf16, #tpu.memory_space<vmem>>, vector<8x16xbf16>
    %302 = arith.truncf %300 : vector<16x32xf32> to vector<16x32xbf16>
    %cst_139 = arith.constant dense<0.000000e+00> : vector<8x32xf32>
    %303 = tpu.matmul %301, %302, %cst_139 {dimension_numbers = #tpu.dot_dimension_numbers<[1], [0], [0], [1], [0, 0, 1, 1], [], []>} : vector<8x16xbf16>, vector<16x32xbf16>, vector<8x32xf32> -> vector<8x32xf32>
    %c0_140 = arith.constant 0 : index
    %c0_141 = arith.constant 0 : index
    %304 = vector.load %arg4[%c0_140, %c0_141] : memref<8x32xf32, #tpu.memory_space<vmem>>, vector<8x32xf32>
    %305 = arith.addf %303, %304 : vector<8x32xf32>
    %c0_142 = arith.constant 0 : index
    %c0_143 = arith.constant 0 : index
    %306 = vector.load %arg21[%c0_142, %c0_143] : memref<8x32xf32, #tpu.memory_space<vmem>>, vector<8x32xf32>
    tpu.vector_store %arg21[%c0_142, %c0_143], %305 {strides = array<i32>} : memref<8x32xf32, #tpu.memory_space<vmem>>, vector<8x32xf32>,
    return
  }
}

</mosaic_0001>

<bundles_post_ra>
// kernel: _forward.1
= control target key start
LH: loop header
LB: loop body
LE: loop exit
PB: predicated region body
PF: predicated region fallthrough
CT: control target
= control target key end

     0   :  { %s8628_s0 = inlined_call_operand.vmem [shape: f32[16,32], index: 0, kind: input, shape index: {}]   ;;  %s8629_s1 = inlined_call_operand.vmem [shape: f32[32,4], index: 1, kind: input, shape index: {}]   ;;  %s8630_s2 = inlined_call_operand.vmem [shape: f32[4,32], index: 2, kind: input, shape index: {}]   ;;  %s8631_s3 = inlined_call_operand.vmem [shape: bf16[8,16], index: 3, kind: input, shape index: {}]   ;;  %s8632_s4 = inlined_call_operand.vmem [shape: f32[8,32], index: 4, kind: input, shape index: {}]   ;;  %s8633_s5 = inlined_call_operand.vmem [shape: bf16[2,32,32], index: 5, kind: input, shape index: {}]   ;;  %s8634_s6 = inlined_call_operand.vmem [shape: f32[2,1,32], index: 6, kind: input, shape index: {}]   ;;  %s8635_s7 = inlined_call_operand.vmem [shape: bf16[2,32,32], index: 7, kind: input, shape index: {}]   ;;  %s8636_s8 = inlined_call_operand.vmem [shape: f32[2,1,32], index: 8, kind: input, shape index: {}]   ;;  %s8637_s9 = inlined_call_operand.vmem [shape: bf16[2,32,32], index: 9, kind: input, shape index: {}]   ;;  %s8638_s10 = inlined_call_operand.vmem [shape: f32[2,1,32], index: 10, kind: input, shape index: {}]   ;;  %s8639_s11 = inlined_call_operand.vmem [shape: bf16[2,32,32], index: 11, kind: input, shape index: {}]   ;;  %s8640_s12 = inlined_call_operand.vmem [shape: f32[2,1,32], index: 12, kind: input, shape index: {}]   ;;  %s8641_s13 = inlined_call_operand.vmem [shape: f32[2,1,32], index: 13, kind: input, shape index: {}]   ;;  %s8642_s14 = inlined_call_operand.vmem [shape: f32[2,1,32], index: 14, kind: input, shape index: {}]   ;;  %s8643_s15 = inlined_call_operand.vmem [shape: bf16[2,32,2048], index: 15, kind: input, shape index: {}]   ;;  %s8644_s16 = inlined_call_operand.vmem [shape: bf16[2,1,2048], index: 16, kind: input, shape index: {}]   ;;  %s8645_s17 = inlined_call_operand.vmem [shape: bf16[2,2048,32], index: 17, kind: input, shape index: {}]   ;;  %s8646_s18 = inlined_call_operand.vmem [shape: f32[2,1,32], index: 18, kind: input, shape index: {}]   ;;  %s8647_s19 = inlined_call_operand.vmem [shape: f32[2,1,32], index: 19, kind: input, shape index: {}]   ;;  %s8648_s20 = inlined_call_operand.vmem [shape: f32[2,1,32], index: 20, kind: input, shape index: {}]   ;;  %s8649_s21 = inlined_call_operand.hbm [shape: f32[8,32], index: 21, kind: output, shape index: {}]  }
   0x1   :  { %8654 = sst [smem:[#allocation5_spill]] %s8628_s0 }
   0x2   :  { %8655 = sst [smem:[#allocation6_spill]] %s8629_s1 }
   0x3   :  { %8656 = sst [smem:[#allocation7_spill]] %s8630_s2 }
   0x4   :  { %8657 = sst [smem:[#allocation8_spill]] %s8631_s3 }
   0x5   :  { %8658 = sst [smem:[#allocation9_spill]] %s8632_s4 }
   0x6   :  { %8659 = sst [smem:[#allocation10_spill]] %s8633_s5 }
   0x7   :  { %s8660_s26 = sld [smem:[#allocation10_spill]]  ;;  %v6532_v1 = vld [vmem:[%s8635_s7 + $0x8] sm:$0xff]  ;;  %v6531_v3 = vld [vmem:[%s8635_s7] sm:$0xff]  ;;  %vm98_vm0 = vcmask 261120  }
   0x8   :  { %s8661_s22 = sld [smem:[#allocation5_spill]]  ;;  %142 = vmatpush.bf16.msra.mxu1 %v6532_v1 }
   0x9   :  { %s8662_s25 = sld [smem:[#allocation6_spill]] }
   0xc   :  { %143 = vmatpush.bf16.msra.mxu1 %v6531_v3 }
   0xd   :  { %v6530_v0 = vld [vmem:[%s8660_s26 + $0x8] sm:$0xff]  ;;  %v6529_v2 = vld [vmem:[%s8660_s26] sm:$0xff] }
   0xe   :  { %v7086_v4 = vld [vmem:[%s8661_s22] sm:$0xff]  ;;  %108 = vmatpush.bf16.msra.mxu0 %v6530_v0  ;;  %v7091_v5 = vld [vmem:[%s8661_s22 + $0x8] sm:$0xff] }
   0xf   :  { %v75_v6 = vld [vmem:[%s8662_s25 + $0x18] sm:$0xff]  ;;  %v77_v7 = vpack.c.bf16 %v7091_v5, %v7086_v4 }
  0x10   :  { %212 = vmatpush.msra.mxu3 %v75_v6 }
  0x12   :  { %109 = vmatpush.bf16.msra.mxu0 %v6529_v2 }
  0x13   :  { %26 = vsyncpa [#allocation3], 0  ;;  %4828 = vmatmul.msk.bf16.vlgmr.msra.gmra.mxu1 %vm98_vm0, %v77_v7  ;;  %v74_v8 = vld [vmem:[%s8662_s25 + $0x10] sm:$0xff]  ;;  %v73_v9 = vld [vmem:[%s8662_s25 + $0x8] sm:$0xff]  ;;  %s8663_s29 = sld [smem:[#allocation7_spill]]  ;;  %vm290_vm1 = vcmask 1043456  }
  0x14   :  { %213 = vmatpush.msra.mxu3 %v74_v8  ;;  %v72_v10 = vld [vmem:[%s8662_s25] sm:$0xff]  ;;  %v6534_v25 = vld [vmem:[%s8637_s9 + $0x8] sm:$0xff]  ;;  %vm277_vm6 = vcmask 31744   ;;  %s8664_s0 = sld [smem:[#allocation8_spill]] }
  0x15   :  { %4819 = vmatmul.msk.bf16.vlgmr.msra.gmra.mxu0 %vm98_vm0, %v77_v7  ;;  %v6868_v11 = vld [vmem:[%s8634_s6] ss:$0 sm:$0xff]  ;;  %176 = vmatpush.bf16.msra.mxu2 %v6534_v25 }
  0x16   :  { %214 = vmatpush.msra.mxu3 %v73_v9  ;;  %v6869_v12 = vld [vmem:[%s8636_s8] ss:$0 sm:$0xff] }
  0x17   :  { %v6533_v26 = vld [vmem:[%s8637_s9] sm:$0xff] }
  0x18   :  { %215 = vmatpush.msra.mxu3 %v72_v10  ;;  %v6536_v10 = vld [vmem:[%s8639_s11 + $0x8] sm:$0xff] }
  0x19   :  { %177 = vmatpush.bf16.msra.mxu2 %v6533_v26  ;;  %v76_v30 = vld [vmem:[%s8663_s29] sm:$0xf] }
  0x1a   :  { %4842 = vmatpush.msk.msrb.mxu0 %vm290_vm1, %v76_v30  ;;  %6865 = vmatpush.msk.msrb.mxu1 %vm290_vm1, %v76_v30 }
  0x1c   :  { %4837 = vmatmul.msk.bf16.vlgmr.msra.gmra.mxu2 %vm98_vm0, %v77_v7  ;;  %359 = vmatpush.bf16.msra.mxu1 %v6536_v10  ;;  %v6538_v10 = vld [vmem:[%s8643_s15 + $0xc] sm:$0xf] }
  0x90   :  { %v145_v14 = vpop.f32.mrf.mxu1 }
  0x91   :  { %v146_v16 = vadd.f32 %v6869_v12, %v145_v14 }
  0x92   :  { %v111_v13 = vpop.f32.mrf.mxu0 }
  0x93   :  { %v112_v15 = vadd.f32 %v6868_v11, %v111_v13 }
  0x95   :  { %v184_v17 = vmul.f32 %v146_v16, %v112_v15 }
  0x97   :  { %4838 = vmatmul.msk.f32.vlgmr.msra.gmra.mxu3 %vm98_vm0, %v184_v17 }
  0x98   :  { %v147_v18 = vpop.f32.mrf.mxu1 }
  0x99   :  { %v148_v19 = vadd.f32 %v6869_v12, %v147_v18 }
  0x9a   :  { %v113_v21 = vpop.f32.mrf.mxu0 }
  0x9b   :  { %v185_v20 = vmul.f32 %v148_v19, %v112_v15  ;;  %v114_v22 = vadd.f32 %v6868_v11, %v113_v21  ;;  %v6535_v11 = vld [vmem:[%s8639_s11] sm:$0xff] }
  0x9c   :  { %360 = vmatpush.bf16.msra.mxu1 %v6535_v11 }
  0x9d   :  { %v186_v23 = vmul.f32 %v146_v16, %v114_v22  ;;  %v187_v24 = vmul.f32 %v148_v19, %v114_v22  ;;  %v6870_v16 = vld [vmem:[%s8638_s10] ss:$0 sm:$0xff] }
  0x9f   :  { %4839 = vmatmul.msk.f32.gmra.mxu3 %vm98_vm0, %v185_v20  ;;  %v179_v12 = vpop.f32.mrf.mxu2 }
  0xa0   :  { %v180_v18 = vadd.f32 %v6870_v16, %v179_v12  ;;  %v4868_v12 = vld [vmem:[%s8643_s15 + $0x48] sm:$0xf0] }
  0xa7   :  { %4840 = vmatmul.msk.f32.gmra.mxu3 %vm98_vm0, %v186_v23  ;;  %v181_v14 = vpop.f32.mrf.mxu2 }
  0xa8   :  { %v182_v17 = vadd.f32 %v6870_v16, %v181_v14  ;;  %v6547_v14 = vld [vmem:[%s8643_s15 + $0x4c] sm:$0xf0] }
  0xaf   :  { %4841 = vmatmul.msk.f32.gmra.mxu3 %vm98_vm0, %v187_v24 }
 0x11a   :  { %v217_v27 = vpop.f32.mrf.mxu3 }
 0x122   :  { %v220_v28 = vpop.f32.mrf.mxu3 }
 0x123   :  { %v229_v29 = vmax.f32 %v217_v27, %v220_v28 }
 0x125   :  { %v230_v31 = vsub.f32 %v217_v27, %v229_v29  ;;  %v233_v32 = vsub.f32 %v220_v28, %v229_v29  ;;  %v6871_v28 = vld [vmem:[%s8640_s12] ss:$0 sm:$0xff] }
 0x127   :  { %v231_v33 = vmul.f32 1.442695, %v230_v31  ;;  %v234_v34 = vmul.f32 1.442695, %v233_v32 }
 0x129   :  { %6886 = vpow2.f32 %v231_v33 }
 0x12a   :  { %6888 = vpow2.f32 %v234_v34  ;;  %v223_v35 = vpop.f32.mrf.mxu3 }
 0x12f   :  { %v6887_v36 = vpop.eup %6886 }
 0x130   :  { %v6889_v37 = vpop.eup %6888 }
 0x131   :  { %v236_v38 = vadd.f32 %v6889_v37, %v6887_v36 }
 0x132   :  { %v226_v39 = vpop.f32.mrf.mxu3 }
 0x133   :  { %6890 = vrcp.f32 %v236_v38  ;;  %v251_v40 = vmax.f32 %v223_v35, %v226_v39  ;;  %v248_v48 = vand.u32 2147483648, %v236_v38  ;;  %v246_v50 = vand.u32 2147483647, %v236_v38 }
 0x134   :  { %vm242_vm3 = vweird.f32 %v236_v38 }
 0x135   :  { %v252_v41 = vsub.f32 %v223_v35, %v251_v40  ;;  %v255_v42 = vsub.f32 %v226_v39, %v251_v40  ;;  %v249_v55 = vor.u32 1.1754944e-38, %v248_v48  ;;  %vm247_vm5 = vcmp.eq.f32.partialorder %v246_v50, 8.507059e+37 }
 0x137   :  { %v253_v43 = vmul.f32 1.442695, %v252_v41  ;;  %v256_v44 = vmul.f32 1.442695, %v255_v42 }
 0x139   :  { %v6891_v45 = vpop.eup %6890  ;;  %6892 = vpow2.f32 %v253_v43 }
 0x13a   :  { %6894 = vpow2.f32 %v256_v44  ;;  %v238_v46 = vmul.f32 %v6891_v45, %v236_v38  ;;  %vm243_vm2 = vweird.f32 %v6891_v45 }
 0x13b   :  { %vm244_vm4 = vmor %vm242_vm3, %vm243_vm2 }
 0x13c   :  { %v239_v47 = vsub.f32 1.0, %v238_v46 }
 0x13e   :  { %v240_v49 = vmul.f32 %v6891_v45, %v239_v47 }
 0x13f   :  { %v6893_v51 = vpop.eup %6892 }
 0x140   :  { %v6895_v52 = vpop.eup %6894  ;;  %v241_v53 = vadd.f32 %v6891_v45, %v240_v49 }
 0x141   :  { %v258_v54 = vadd.f32 %v6895_v52, %v6893_v51 }
 0x142   :  { %v245_v56 = vsel %vm244_vm4, %v6891_v45, %v241_v53  ;;  %v6561_v53 = vld [vmem:[%s8643_s15 + $0xbc] sm:$0xf0] }
 0x143   :  { %6896 = vrcp.f32 %v258_v54  ;;  %v250_v57 = vsel %vm247_vm5, %v249_v55, %v245_v56  ;;  %v270_v63 = vand.u32 2147483648, %v258_v54  ;;  %v268_v1 = vand.u32 2147483647, %v258_v54  ;;  %v4924_v56 = vld [vmem:[%s8643_s15 + $0xc0] sm:$0xf0] }
 0x144   :  { %v273_v58 = vmul.f32 %v6887_v36, %v250_v57  ;;  %v274_v61 = vmul.f32 %v6889_v37, %v250_v57  ;;  %vm264_vm8 = vweird.f32 %v258_v54  ;;  %v6959_v37 = vmov 32.0   ;;  %v6554_v57 = vld [vmem:[%s8643_s15 + $0x8c] sm:$0xf] }
 0x145   :  { %v271_v3 = vor.u32 1.1754944e-38, %v270_v63  ;;  %vm269_vm10 = vcmp.eq.f32.partialorder %v268_v1, 8.507059e+37  ;;  %6898 = vrcp.f32 %v6959_v37  ;;  %v6563_v63 = vld [vmem:[%s8643_s15 + $0xcc] sm:$0xf0] }
 0x146   :  { %4843 = vmatmul.msk.f32.vlgmr.msrb.gmra.mxu0 %vm277_vm6, %v273_v58  ;;  %v4932_v58 = vld [vmem:[%s8643_s15 + $0xc8] sm:$0xf0] }
 0x149   :  { %v6897_v59 = vpop.eup %6896 }
 0x14a   :  { %v260_v60 = vmul.f32 %v6897_v59, %v258_v54  ;;  %vm265_vm7 = vweird.f32 %v6897_v59  ;;  %v6553_v54 = vld [vmem:[%s8643_s15 + $0x84] sm:$0xf] }
 0x14b   :  { %vm266_vm9 = vmor %vm264_vm8, %vm265_vm7  ;;  %v6899_v38 = vpop.eup %6898 }
 0x14c   :  { %v261_v62 = vsub.f32 1.0, %v260_v60  ;;  %v378_v39 = vmul.f32 32.0, %v6899_v38  ;;  %vm382_vm11 = vweird.f32 %v6899_v38  ;;  %v4927_v60 = vor.u32 %v6553_v54, %v4924_v56 }
 0x14e   :  { %4844 = vmatmul.msk.f32.gmra.mxu0 %vm277_vm6, %v274_v61  ;;  %v262_v0 = vmul.f32 %v6897_v59, %v261_v62  ;;  %v379_v40 = vsub.f32 1.0, %v378_v39  ;;  %v4935_v61 = vor.u32 %v6554_v57, %v4932_v58  ;;  %v4938_v62 = vld [vmem:[%s8643_s15 + $0x90] sm:$0xf]  ;;  %v6540_v39 = vld [vmem:[%s8643_s15 + $0x1c] sm:$0xf] }
 0x14f   :  { %v4939_v1 = vor.u32 %v6563_v63, %v4938_v62  ;;  %v6872_v57 = vld [vmem:[%s8641_s13] ss:$0 sm:$0xff] }
 0x150   :  { %v263_v2 = vadd.f32 %v6897_v59, %v262_v0  ;;  %v380_v41 = vmul.f32 %v6899_v38, %v379_v40  ;;  %676 = vmatpush.bf16.msrb.mxu3 %v4935_v61  ;;  %v4884_v40 = vld [vmem:[%s8643_s15 + $0x58] sm:$0xf0]  ;;  %v6873_v61 = vld [vmem:[%s8642_s14] ss:$0 sm:$0xff] }
 0x151   :  { %690 = vmatpush.bf16.msra.mxu0 %v4939_v1  ;;  %v4946_v1 = vld [vmem:[%s8643_s15 + $0x98] sm:$0xf] }
 0x152   :  { %v267_v6 = vsel %vm266_vm9, %v6897_v59, %v263_v2  ;;  %v381_v42 = vadd.f32 %v6899_v38, %v380_v41  ;;  %v4858_v2 = vld [vmem:[%s8643_s15] sm:$0xf] }
 0x153   :  { %v272_v7 = vsel %vm269_vm10, %v271_v3, %v267_v6  ;;  %v6545_v3 = vld [vmem:[%s8643_s15 + $0x3c] sm:$0xf0]  ;;  %v6537_v6 = vld [vmem:[%s8643_s15 + $0x4] sm:$0xf] }
 0x154   :  { %v275_v8 = vmul.f32 %v6893_v51, %v272_v7  ;;  %v276_v9 = vmul.f32 %v6895_v52, %v272_v7  ;;  %v7152_v43 = vsel %vm382_vm11, %v6899_v38, %v381_v42  ;;  %v4922_v52 = vld [vmem:[%s8643_s15 + $0x80] sm:$0xf]  ;;  %v4876_v38 = vld [vmem:[%s8643_s15 + $0x50] sm:$0xf0]  ;;  %v4887_v42 = vor.u32 %v6540_v39, %v4884_v40 }
 0x155   :  { %v4923_v55 = vor.u32 %v6561_v53, %v4922_v52  ;;  %v6543_v39 = vld [vmem:[%s8643_s15 + $0x34] sm:$0xf] }
 0x156   :  { %4845 = vmatmul.msk.f32.gmra.mxu0 %vm277_vm6, %v275_v8  ;;  %4846 = vmatmul.msk.f32.vlgmr.msrb.gmra.mxu1 %vm277_vm6, %v276_v9  ;;  %v4859_v8 = vor.u32 %v6545_v3, %v4858_v2  ;;  %v4860_v9 = vld [vmem:[%s8643_s15 + $0x40] sm:$0xf0]  ;;  %v4908_v40 = vld [vmem:[%s8643_s15 + $0x70] sm:$0xf0] }
 0x157   :  { %634 = vmatpush.bf16.msrb.mxu2 %v4923_v55  ;;  %648 = vmatpush.bf16.msrb.mxu1 %v4927_v60  ;;  %v4863_v11 = vor.u32 %v6537_v6, %v4860_v9  ;;  %v6557_v2 = vld [vmem:[%s8643_s15 + $0xa4] sm:$0xf]  ;;  %v4970_v9 = vld [vmem:[%s8643_s15 + $0xb0] sm:$0xf] }
 0x158   :  { %v4956_v3 = vld [vmem:[%s8643_s15 + $0xe0] sm:$0xf0] }
 0x15b   :  { %635 = vmatpush.bf16.msrb.mxu2 %v4859_v8  ;;  %649 = vmatpush.bf16.msrb.mxu1 %v4863_v11  ;;  %v4964_v8 = vld [vmem:[%s8643_s15 + $0xe8] sm:$0xf0] }
 0x1c3   :  { %v311_v13 = vpop.f32.mrf.mxu0 }
 0x1c4   :  { %v323_v22 = vmul.f32 %v311_v13, %v180_v18  ;;  %v4874_v13 = vld [vmem:[%s8643_s15 + $0x10] sm:$0xf] }
 0x1c5   :  { %v4875_v16 = vor.u32 %v6547_v14, %v4874_v13  ;;  %v4959_v13 = vor.u32 %v6557_v2, %v4956_v3  ;;  %v4882_v14 = vld [vmem:[%s8643_s15 + $0x18] sm:$0xf]  ;;  %v6591_v3 = vld [vmem:[%s8645_s17 + $0xb0] sm:$0xff] }
 0x1c6   :  { %v6580_v2 = vld [vmem:[%s8645_s17 + $0x58] sm:$0xff] }
 0x1c7   :  { %691 = vmatpush.bf16.msra.mxu0 %v4875_v16 }
 0x1cb   :  { %v314_v15 = vpop.f32.mrf.mxu0 }
 0x1cc   :  { %v324_v19 = vmul.f32 %v314_v15, %v182_v17  ;;  %v4871_v15 = vor.u32 %v6538_v10, %v4868_v12  ;;  %v6567_v10 = vld [vmem:[%s8643_s15 + $0xec] sm:$0xf0] }
 0x1ce   :  { %v325_v25 = vadd.f32 %v324_v19, %v323_v22  ;;  %677 = vmatpush.bf16.msrb.mxu3 %v4871_v15  ;;  %v6562_v19 = vld [vmem:[%s8643_s15 + $0xc4] sm:$0xf0]  ;;  %v6548_v15 = vld [vmem:[%s8643_s15 + $0x54] sm:$0xf0] }
 0x1d3   :  { %v317_v20 = vpop.f32.mrf.mxu0  ;;  %v320_v21 = vpop.f32.mrf.mxu1 }
 0x1d4   :  { %v326_v23 = vmul.f32 %v317_v20, %v180_v18  ;;  %v327_v24 = vmul.f32 %v320_v21, %v182_v17  ;;  %v4930_v18 = vld [vmem:[%s8643_s15 + $0x88] sm:$0xf]  ;;  %v6555_v20 = vld [vmem:[%s8643_s15 + $0x94] sm:$0xf] }
 0x1d5   :  { %v4931_v22 = vor.u32 %v6562_v19, %v4930_v18  ;;  %v6541_v18 = vld [vmem:[%s8643_s15 + $0x24] sm:$0xf] }
 0x1d6   :  { %v328_v26 = vadd.f32 %v327_v24, %v326_v23  ;;  %v4940_v23 = vld [vmem:[%s8643_s15 + $0xd0] sm:$0xf0]  ;;  %v6556_v24 = vld [vmem:[%s8643_s15 + $0x9c] sm:$0xf]  ;;  %v4892_v19 = vld [vmem:[%s8643_s15 + $0x60] sm:$0xf0] }
 0x1d7   :  { %662 = vmatpush.bf16.msra.mxu2 %v4931_v22  ;;  %v4906_v22 = vld [vmem:[%s8643_s15 + $0x30] sm:$0xf] }
 0x1d8   :  { %v329_v27 = vpack.c.bf16 %v328_v26, %v325_v25  ;;  %v4948_v25 = vld [vmem:[%s8643_s15 + $0xd8] sm:$0xf0]  ;;  %v4943_v26 = vor.u32 %v6555_v20, %v4940_v23  ;;  %v6542_v20 = vld [vmem:[%s8643_s15 + $0x2c] sm:$0xf]  ;;  %v6551_v23 = vld [vmem:[%s8643_s15 + $0x6c] sm:$0xf0] }
 0x1da   :  { %4855 = vmatmul.msk.bf16.vlgmr.msra.gmra.mxu1 %vm98_vm0, %v329_v27  ;;  %v4951_v27 = vor.u32 %v6556_v24, %v4948_v25  ;;  %v4883_v24 = vor.u32 %v6548_v15, %v4882_v14  ;;  %v4895_v25 = vor.u32 %v6541_v18, %v4892_v19  ;;  %v6589_v14 = vld [vmem:[%s8645_s17 + $0xa0] sm:$0xff]  ;;  %v6616_v18 = vld [vmem:[%s8645_s17 + $0x178] sm:$0xff] }
 0x1db   :  { %704 = vmatpush.bf16.msra.mxu1 %v4943_v26  ;;  %v6569_v15 = vld [vmem:[%s8645_s17] sm:$0xff]  ;;  %v6588_v19 = vld [vmem:[%s8645_s17 + $0x98] sm:$0xff] }
 0x1dc   :  { %732 = vmatpush.bf16.msra.mxu3 %v4951_v27  ;;  %v4907_v27 = vor.u32 %v6551_v23, %v4906_v22  ;;  %v6615_v22 = vld [vmem:[%s8645_s17 + $0x170] sm:$0xff] }
 0x1dd   :  { %v6595_v23 = vld [vmem:[%s8645_s17 + $0xd0] sm:$0xff] }
 0x1e0   :  { %733 = vmatpush.bf16.msra.mxu3 %v4887_v42  ;;  %v4916_v42 = vld [vmem:[%s8643_s15 + $0x78] sm:$0xf0] }
 0x257   :  { %v362_v29 = vpop.f32.mrf.mxu1 }
 0x258   :  { %v363_v30 = vadd.f32 %v6871_v28, %v362_v29  ;;  %v6565_v29 = vld [vmem:[%s8643_s15 + $0xdc] sm:$0xf0] }
 0x25a   :  { %v367_v31 = vadd.f32 %v363_v30, %v7086_v4  ;;  %v4866_v30 = vld [vmem:[%s8643_s15 + $0x8] sm:$0xf] }
 0x25c   :  { %v371_v32 = vsel %vm98_vm0, %v367_v31, 0.0 }
 0x25d   :  { %372 = vadd.xlane.f32.xlu0 %v371_v32 }
 0x25f   :  { %v364_v33 = vpop.f32.mrf.mxu1 }
 0x260   :  { %v365_v34 = vadd.f32 %v6871_v28, %v364_v33  ;;  %v4954_v28 = vld [vmem:[%s8643_s15 + $0xa0] sm:$0xf] }
 0x261   :  { %v4955_v33 = vor.u32 %v6565_v29, %v4954_v28  ;;  %v4962_v28 = vld [vmem:[%s8643_s15 + $0xa8] sm:$0xf] }
 0x262   :  { %v368_v35 = vadd.f32 %v365_v34, %v7091_v5  ;;  %v6546_v34 = vld [vmem:[%s8643_s15 + $0x44] sm:$0xf0] }
 0x263   :  { %v4867_v37 = vor.u32 %v6546_v34, %v4866_v30  ;;  %746 = vmatpush.bf16.msrb.mxu0 %v4955_v33  ;;  %v6566_v29 = vld [vmem:[%s8643_s15 + $0xe4] sm:$0xf0]  ;;  %v6559_v30 = vld [vmem:[%s8643_s15 + $0xb4] sm:$0xf]  ;;  %v4980_v33 = vld [vmem:[%s8643_s15 + $0xf8] sm:$0xf0] }
 0x264   :  { %v374_v36 = vsel %vm98_vm0, %v368_v35, 0.0  ;;  %v4963_v34 = vor.u32 %v6566_v29, %v4962_v28  ;;  %v6605_v28 = vld [vmem:[%s8645_s17 + $0x120] sm:$0xff] }
 0x265   :  { %375 = vadd.xlane.f32.xlu0 %v374_v36  ;;  %663 = vmatpush.bf16.msra.mxu2 %v4867_v37  ;;  %v6613_v29 = vld [vmem:[%s8645_s17 + $0x160] sm:$0xff] }
 0x2d0   :  { %v373_v4 = vpop.xlane.xlu0 %372 }
 0x2d1   :  { %v384_v44 = vmul.f32 %v7152_v43, %v373_v4  ;;  %v4890_v4 = vld [vmem:[%s8643_s15 + $0x20] sm:$0xf] }
 0x2d3   :  { %v7155_v45 = vsub.f32 %v367_v31, %v384_v44  ;;  %v6549_v44 = vld [vmem:[%s8643_s15 + $0x5c] sm:$0xf0] }
 0x2d5   :  { %v388_v5 = vmul.f32 %v7155_v45, %v7155_v45 }
 0x2d7   :  { %v390_v46 = vsel %vm98_vm0, %v388_v5, 0.0 }
 0x2d8   :  { %391 = vadd.xlane.f32.xlu1 %v390_v46  ;;  %v376_v47 = vpop.xlane.xlu0 %375  ;;  %v4891_v46 = vor.u32 %v6549_v44, %v4890_v4  ;;  %v4911_v44 = vor.u32 %v6543_v39, %v4908_v40  ;;  %v6631_v39 = vld [vmem:[%s8645_s17 + $0x1f0] sm:$0xff]  ;;  %v6602_v40 = vld [vmem:[%s8645_s17 + $0x108] sm:$0xff] }
 0x2d9   :  { %v385_v48 = vmul.f32 %v7152_v43, %v376_v47 }
 0x2da   :  { %747 = vmatpush.bf16.msrb.mxu0 %v4891_v46  ;;  %v4978_v46 = vld [vmem:[%s8643_s15 + $0xb8] sm:$0xf] }
 0x2db   :  { %v7161_v49 = vsub.f32 %v368_v35, %v385_v48  ;;  %v6539_v35 = vld [vmem:[%s8643_s15 + $0x14] sm:$0xf] }
 0x2dc   :  { %v4879_v41 = vor.u32 %v6539_v35, %v4876_v38  ;;  %v6550_v38 = vld [vmem:[%s8643_s15 + $0x64] sm:$0xf0] }
 0x2dd   :  { %v389_v50 = vmul.f32 %v7161_v49, %v7161_v49 }
 0x2de   :  { %705 = vmatpush.bf16.msra.mxu1 %v4879_v41  ;;  %v6544_v41 = vld [vmem:[%s8643_s15 + $0x3c] sm:$0xf] }
 0x2df   :  { %v393_v51 = vsel %vm98_vm0, %v389_v50, 0.0 }
 0x2e0   :  { %394 = vadd.xlane.f32.xlu1 %v393_v51 }
 0x34b   :  { %v392_v59 = vpop.xlane.xlu1 %391 }
 0x34c   :  { %v396_v0 = vmul.f32 %v392_v59, %v7152_v43 }
 0x34e   :  { %v7200_v7 = vadd.f32 1e-05, %v396_v0 }
 0x350   :  { %6900 = vrsqrt.f32 %v7200_v7  ;;  %vm406_vm13 = vweird.f32 %v7200_v7 }
 0x353   :  { %v395_v17 = vpop.xlane.xlu1 %394 }
 0x354   :  { %v397_v21 = vmul.f32 %v395_v17, %v7152_v43  ;;  %v4971_v17 = vor.u32 %v6567_v10, %v4970_v9  ;;  %v6579_v9 = vld [vmem:[%s8645_s17 + $0x50] sm:$0xff]  ;;  %v6590_v10 = vld [vmem:[%s8645_s17 + $0xa8] sm:$0xff] }
 0x356   :  { %v6901_v31 = vpop.eup %6900  ;;  %v399_v32 = vadd.f32 1e-05, %v397_v21  ;;  %v4900_v21 = vld [vmem:[%s8643_s15 + $0x68] sm:$0xf0] }
 0x357   :  { %v401_v36 = vmul.f32 %v6901_v31, %v7200_v7  ;;  %vm407_vm12 = vweird.f32 %v6901_v31  ;;  %v4903_v26 = vor.u32 %v6542_v20, %v4900_v21  ;;  %v868_v20 = vld [vmem:[%s8644_s16] sm:$0xff]  ;;  %v6607_v21 = vld [vmem:[%s8645_s17 + $0x130] sm:$0xff] }
 0x358   :  { %6902 = vrsqrt.f32 %v399_v32  ;;  %vm408_vm14 = vmor %vm406_vm13, %vm407_vm12  ;;  %vm416_vm2 = vweird.f32 %v399_v32  ;;  %871 = vst [vmem:[#allocation1] ss:$9 sm:$0xff] %v868_v20 }
 0x359   :  { %v402_v5 = vmul.f32 %v6901_v31, %v401_v36  ;;  %v4898_v36 = vld [vmem:[%s8643_s15 + $0x28] sm:$0xf] }
 0x35a   :  { %v4899_v4 = vor.u32 %v6550_v38, %v4898_v36  ;;  %v6603_v36 = vld [vmem:[%s8645_s17 + $0x110] sm:$0xff] }
 0x35b   :  { %v403_v47 = vmul.f32 0.5, %v402_v5  ;;  %v4919_v5 = vor.u32 %v6544_v41, %v4916_v42  ;;  %v6623_v38 = vld [vmem:[%s8645_s17 + $0x1b0] sm:$0xff]  ;;  %v6610_v41 = vld [vmem:[%s8645_s17 + $0x148] sm:$0xff] }
 0x35c   :  { %v6622_v42 = vld [vmem:[%s8645_s17 + $0x1a8] sm:$0xff] }
 0x35d   :  { %v404_v48 = vsub.f32 1.5, %v403_v47  ;;  %v6568_v47 = vld [vmem:[%s8643_s15 + $0xf4] sm:$0xf0] }
 0x35e   :  { %v6903_v50 = vpop.eup %6902 }
 0x35f   :  { %v405_v51 = vmul.f32 %v6901_v31, %v404_v48  ;;  %v411_v52 = vmul.f32 %v6903_v50, %v399_v32  ;;  %vm417_vm15 = vweird.f32 %v6903_v50  ;;  %v6560_v32 = vld [vmem:[%s8643_s15 + $0xbc] sm:$0xf]  ;;  %v4979_v48 = vor.u32 %v6568_v47, %v4978_v46  ;;  %v7572_v46 = vld [vmem:[#allocation1 + $0x24] sm:$0xff]  ;;  %v7574_v47 = vld [vmem:[#allocation1 + $0x2d] sm:$0xff] }
 0x360   :  { %vm418_vm3 = vmor %vm416_vm2, %vm417_vm15  ;;  %v4983_v37 = vor.u32 %v6560_v32, %v4980_v33  ;;  %v6604_v32 = vld [vmem:[%s8645_s17 + $0x118] sm:$0xff] }
 0x361   :  { %v412_v53 = vmul.f32 %v6903_v50, %v411_v52  ;;  %v409_v54 = vsel %vm408_vm14, %v6901_v31, %v405_v51  ;;  %v4972_v31 = vld [vmem:[%s8643_s15 + $0xf0] sm:$0xf0]  ;;  %v6552_v51 = vld [vmem:[%s8643_s15 + $0x74] sm:$0xf0] }
 0x362   :  { %v420_v58 = vmul.f32 %v409_v54, %v7155_v45  ;;  %v6564_v45 = vld [vmem:[%s8643_s15 + $0xd4] sm:$0xf0]  ;;  %v4975_v35 = vor.u32 %v6559_v30, %v4972_v31  ;;  %v6585_v30 = vld [vmem:[%s8645_s17 + $0x80] sm:$0xff] }
 0x363   :  { %v413_v55 = vmul.f32 0.5, %v412_v53  ;;  %v4947_v12 = vor.u32 %v6564_v45, %v4946_v1  ;;  %v6576_v52 = vld [vmem:[%s8645_s17 + $0x38] sm:$0xff]  ;;  %v6597_v45 = vld [vmem:[%s8645_s17 + $0xe0] sm:$0xff] }
 0x364   :  { %v425_v62 = vmul.f32 %v6872_v57, %v420_v58  ;;  %v6584_v53 = vld [vmem:[%s8645_s17 + $0x78] sm:$0xff]  ;;  %v6599_v58 = vld [vmem:[%s8645_s17 + $0xf0] sm:$0xff]  ;;  %v6593_v31 = vld [vmem:[%s8645_s17 + $0xc0] sm:$0xff] }
 0x365   :  { %v414_v56 = vsub.f32 1.5, %v413_v55  ;;  %v6575_v55 = vld [vmem:[%s8645_s17 + $0x30] sm:$0xff]  ;;  %v6572_v1 = vld [vmem:[%s8645_s17 + $0x18] sm:$0xff] }
 0x366   :  { %v7292_v6 = vadd.f32 %v6873_v61, %v425_v62  ;;  %v6573_v62 = vld [vmem:[%s8645_s17 + $0x20] sm:$0xff]  ;;  %v6612_v33 = vld [vmem:[%s8645_s17 + $0x158] sm:$0xff] }
 0x367   :  { %v415_v59 = vmul.f32 %v6903_v50, %v414_v56  ;;  %v6583_v56 = vld [vmem:[%s8645_s17 + $0x70] sm:$0xff] }
 0x369   :  { %v419_v60 = vsel %vm418_vm3, %v6903_v50, %v415_v59  ;;  %v4914_v50 = vld [vmem:[%s8643_s15 + $0x38] sm:$0xf]  ;;  %v6574_v59 = vld [vmem:[%s8645_s17 + $0x28] sm:$0xff] }
 0x36a   :  { %v421_v63 = vmul.f32 %v419_v60, %v7161_v49  ;;  %v6558_v49 = vld [vmem:[%s8643_s15 + $0xac] sm:$0xf]  ;;  %v4915_v54 = vor.u32 %v6552_v51, %v4914_v50  ;;  %v6609_v50 = vld [vmem:[%s8645_s17 + $0x140] sm:$0xff] }
 0x36b   :  { %v4967_v16 = vor.u32 %v6558_v49, %v4964_v8  ;;  %v6582_v60 = vld [vmem:[%s8645_s17 + $0x68] sm:$0xff]  ;;  %v6571_v49 = vld [vmem:[%s8645_s17 + $0x10] sm:$0xff]  ;;  %v6596_v8 = vld [vmem:[%s8645_s17 + $0xd8] sm:$0xff] }
 0x36c   :  { %v426_v0 = vmul.f32 %v6872_v57, %v421_v63  ;;  %v6600_v57 = vld [vmem:[%s8645_s17 + $0xf8] sm:$0xff]  ;;  %v6581_v63 = vld [vmem:[%s8645_s17 + $0x60] sm:$0xff] }
 0x36d   :  { %v6621_v51 = vld [vmem:[%s8645_s17 + $0x1a0] sm:$0xff] }
 0x36e   :  { %v7294_v7 = vadd.f32 %v6873_v61, %v426_v0  ;;  %v6598_v61 = vld [vmem:[%s8645_s17 + $0xe8] sm:$0xff]  ;;  %v6592_v0 = vld [vmem:[%s8645_s17 + $0xb8] sm:$0xff] }
 0x370   :  { %v7307_v11 = vpack.c.bf16 %v7294_v7, %v7292_v6 }
 0x372   :  { %4984 = vmatmul.msk.bf16.vlgmr.msrb.gmra.mxu2 %vm98_vm0, %v7307_v11  ;;  %4985 = vmatmul.msk.bf16.vlgmr.msrb.gmra.mxu1 %vm98_vm0, %v7307_v11 }
 0x373   :  { %4987 = vmatmul.msk.bf16.vlgmr.msrb.gmra.mxu3 %vm98_vm0, %v7307_v11  ;;  %4988 = vmatmul.msk.bf16.vlgmr.msra.gmra.mxu0 %vm98_vm0, %v7307_v11 }
 0x374   :  { %718 = vmatpush.bf16.msrb.mxu2 %v4947_v12  ;;  %760 = vmatpush.bf16.msrb.mxu1 %v4959_v13  ;;  %v6570_v12 = vld [vmem:[%s8645_s17 + $0x8] sm:$0xff] }
 0x375   :  { %788 = vmatpush.bf16.msrb.mxu3 %v4967_v16  ;;  %802 = vmatpush.bf16.msra.mxu0 %v4971_v17  ;;  %v6578_v13 = vld [vmem:[%s8645_s17 + $0x48] sm:$0xff]  ;;  %v6577_v16 = vld [vmem:[%s8645_s17 + $0x40] sm:$0xff]  ;;  %v6608_v17 = vld [vmem:[%s8645_s17 + $0x138] sm:$0xff] }
 0x378   :  { %719 = vmatpush.bf16.msrb.mxu2 %v4883_v24  ;;  %761 = vmatpush.bf16.msrb.mxu1 %v4895_v25  ;;  %v6606_v24 = vld [vmem:[%s8645_s17 + $0x128] sm:$0xff] }
 0x379   :  { %789 = vmatpush.bf16.msrb.mxu3 %v4903_v26  ;;  %803 = vmatpush.bf16.msra.mxu0 %v4907_v27  ;;  %v6614_v25 = vld [vmem:[%s8645_s17 + $0x168] sm:$0xff] }
 0x37a   :  { %v6586_v26 = vld [vmem:[%s8645_s17 + $0x88] sm:$0xff] }
 0x37b   :  { %v6594_v27 = vld [vmem:[%s8645_s17 + $0xc8] sm:$0xff] }
 0x382   :  { %4986 = vmatmul.msk.bf16.vlgmr.msra.gmra.mxu2 %vm98_vm0, %v7307_v11  ;;  %4989 = vmatmul.msk.bf16.vlgmr.msra.gmra.mxu1 %vm98_vm0, %v7307_v11 }
 0x383   :  { %4991 = vmatmul.msk.bf16.vlgmr.msra.gmra.mxu3 %vm98_vm0, %v7307_v11  ;;  %4992 = vmatmul.msk.bf16.vlgmr.msrb.gmra.mxu0 %vm98_vm0, %v7307_v11 }
 0x384   :  { %774 = vmatpush.bf16.msra.mxu2 %v4963_v34  ;;  %816 = vmatpush.bf16.msra.mxu1 %v4975_v35  ;;  %v6624_v34 = vld [vmem:[%s8645_s17 + $0x1b8] sm:$0xff] }
 0x385   :  { %844 = vmatpush.bf16.msra.mxu3 %v4983_v37  ;;  %2142 = vmatpush.bf16.msrb.mxu0 %v6576_v52  ;;  %v6632_v35 = vld [vmem:[%s8645_s17 + $0x1f8] sm:$0xff]  ;;  %v6611_v37 = vld [vmem:[%s8645_s17 + $0x150] sm:$0xff] }
 0x386   :  { %v7585_v52 = vld [vmem:[#allocation1 + $0x12] sm:$0xff] }
 0x388   :  { %775 = vmatpush.bf16.msra.mxu2 %v4899_v4  ;;  %817 = vmatpush.bf16.msra.mxu1 %v4911_v44  ;;  %v6630_v4 = vld [vmem:[%s8645_s17 + $0x1e8] sm:$0xff]  ;;  %v872_v44 = vld [vmem:[#allocation1] sm:$0xff] }
 0x389   :  { %845 = vmatpush.bf16.msra.mxu3 %v4919_v5  ;;  %2143 = vmatpush.bf16.msrb.mxu0 %v6575_v55  ;;  %v873_v5 = vld [vmem:[#allocation1 + $0x9] sm:$0xff] }
 0x38a   :  { %v869_v55 = vld [vmem:[%s8644_s16 + $0x8] sm:$0xff] }
 0x38d   :  { %2144 = vmatpush.bf16.msrb.mxu0 %v6574_v59  ;;  %v6628_v59 = vld [vmem:[%s8645_s17 + $0x1d8] sm:$0xff] }
 0x391   :  { %2145 = vmatpush.bf16.msrb.mxu0 %v6573_v62  ;;  %v6627_v62 = vld [vmem:[%s8645_s17 + $0x1d0] sm:$0xff] }
 0x392   :  { %4990 = vmatmul.msk.bf16.vlgmr.msrb.gmra.mxu2 %vm98_vm0, %v7307_v11  ;;  %4993 = vmatmul.msk.bf16.vlgmr.msrb.gmra.mxu1 %vm98_vm0, %v7307_v11 }
 0x393   :  { %4995 = vmatmul.msk.bf16.vlgmr.msrb.gmra.mxu3 %vm98_vm0, %v7307_v11  ;;  %4996 = vmatmul.msk.bf16.vlgmr.msra.gmra.mxu0 %vm98_vm0, %v7307_v11 }
 0x394   :  { %830 = vmatpush.bf16.msrb.mxu2 %v4979_v48  ;;  %2156 = vmatpush.bf16.msrb.mxu1 %v6584_v53  ;;  %v6601_v48 = vld [vmem:[%s8645_s17 + $0x100] sm:$0xff] }
 0x395   :  { %2184 = vmatpush.bf16.msrb.mxu3 %v6600_v57  ;;  %2146 = vmatpush.bf16.msrb.mxu0 %v6572_v1  ;;  %v7587_v53 = vld [vmem:[#allocation1 + $0x1b] sm:$0xff]  ;;  %v890_v1 = vpack.i.b16 %v872_v44, %v872_v44 }
 0x396   :  { %v7597_v57 = vld [vmem:[#allocation1 + $0x3f] sm:$0xff] }
 0x398   :  { %831 = vmatpush.bf16.msrb.mxu2 %v4915_v54  ;;  %2157 = vmatpush.bf16.msrb.mxu1 %v6583_v56  ;;  %v6629_v54 = vld [vmem:[%s8645_s17 + $0x1e0] sm:$0xff]  ;;  %v7595_v56 = vld [vmem:[#allocation1 + $0x36] sm:$0xff] }
 0x399   :  { %2185 = vmatpush.bf16.msrb.mxu3 %v6599_v58  ;;  %2147 = vmatpush.bf16.msrb.mxu0 %v6571_v49  ;;  %881 = vst [vmem:[#allocation1] ss:$9 sm:$0xff] %v869_v55  ;;  %v6620_v58 = vld [vmem:[%s8645_s17 + $0x198] sm:$0xff]  ;;  %v6617_v49 = vld [vmem:[%s8645_s17 + $0x180] sm:$0xff] }
 0x39c   :  { %2158 = vmatpush.bf16.msrb.mxu1 %v6582_v60 }
 0x39d   :  { %2186 = vmatpush.bf16.msrb.mxu3 %v6598_v61  ;;  %2148 = vmatpush.bf16.msrb.mxu0 %v6570_v12  ;;  %v6619_v61 = vld [vmem:[%s8645_s17 + $0x190] sm:$0xff] }
 0x3a0   :  { %2159 = vmatpush.bf16.msrb.mxu1 %v6581_v63  ;;  %v6618_v63 = vld [vmem:[%s8645_s17 + $0x188] sm:$0xff] }
 0x3a1   :  { %2187 = vmatpush.bf16.msrb.mxu3 %v6597_v45  ;;  %2149 = vmatpush.bf16.msrb.mxu0 %v6569_v15 }
 0x3a2   :  { %4994 = vmatmul.msk.bf16.vlgmr.msra.gmra.mxu2 %vm98_vm0, %v7307_v11  ;;  %4997 = vmatmul.msk.bf16.vlgmr.msra.gmra.mxu1 %vm98_vm0, %v7307_v11 }
 0x3a3   :  { %4999 = vmatmul.msk.bf16.vlgmr.msra.gmra.mxu3 %vm98_vm0, %v7307_v11  ;;  %2170 = vmatpush.bf16.msra.mxu2 %v6592_v0  ;;  %v6626_v0 = vld [vmem:[%s8645_s17 + $0x1c8] sm:$0xff] }
 0x3a4   :  { %2160 = vmatpush.bf16.msrb.mxu1 %v6580_v2  ;;  %v893_v2 = vpack.i.b16 %v873_v5, %v873_v5 }
 0x3a5   :  { %2188 = vmatpush.bf16.msrb.mxu3 %v6596_v8  ;;  %2198 = vmatpush.bf16.msra.mxu0 %v6608_v17  ;;  %v6625_v8 = vld [vmem:[%s8645_s17 + $0x1c0] sm:$0xff] }
 0x3a7   :  { %2171 = vmatpush.bf16.msra.mxu2 %v6591_v3 }
 0x3a8   :  { %2161 = vmatpush.bf16.msrb.mxu1 %v6579_v9 }
 0x3a9   :  { %2199 = vmatpush.bf16.msra.mxu0 %v6607_v21  ;;  %2189 = vmatpush.bf16.msrb.mxu3 %v6595_v23 }
 0x3ab   :  { %2172 = vmatpush.bf16.msra.mxu2 %v6590_v10  ;;  %v892_v10 = vperm.slane %v890_v1, 0 }
 0x3ac   :  { %2162 = vmatpush.bf16.msrb.mxu1 %v6578_v13  ;;  %v895_v13 = vperm.slane %v893_v2, 0  ;;  %v6638_v2 = vld [vmem:[%s8645_s17 + $0x228] sm:$0xff] }
 0x3ad   :  { %2200 = vmatpush.bf16.msra.mxu0 %v6606_v24  ;;  %2190 = vmatpush.bf16.msrb.mxu3 %v6594_v27 }
 0x3af   :  { %2173 = vmatpush.bf16.msra.mxu2 %v6589_v14 }
 0x3b0   :  { %2163 = vmatpush.bf16.msrb.mxu1 %v6577_v16  ;;  %v970_v16 = vunpack.c.l.bf16 %v892_v10 }
 0x3b1   :  { %2201 = vmatpush.bf16.msra.mxu0 %v6605_v28  ;;  %2191 = vmatpush.bf16.msrb.mxu3 %v6593_v31  ;;  %v902_v28 = vpack.i.b16 %v7572_v46, %v7572_v46 }
 0x3b2   :  { %4998 = vmatmul.msk.bf16.vlgmr.msrb.gmra.mxu2 %vm98_vm0, %v7307_v11  ;;  %v6587_v11 = vld [vmem:[%s8645_s17 + $0x90] sm:$0xff] }
 0x3b3   :  { %2174 = vmatpush.bf16.msra.mxu2 %v6588_v19 }
 0x3b4   :  { %2212 = vmatpush.bf16.msra.mxu1 %v6616_v18  ;;  %v971_v18 = vunpack.c.l.bf16 %v895_v13 }
 0x3b5   :  { %2202 = vmatpush.bf16.msra.mxu0 %v6604_v32  ;;  %2240 = vmatpush.bf16.msra.mxu3 %v6632_v35  ;;  %v896_v32 = vpack.i.b16 %v7585_v52, %v7585_v52  ;;  %v905_v35 = vpack.i.b16 %v7574_v47, %v7574_v47 }
 0x3b7   :  { %2175 = vmatpush.bf16.msra.mxu2 %v6587_v11  ;;  %v898_v46 = vperm.slane %v896_v32, 0 }
 0x3b8   :  { %2213 = vmatpush.bf16.msra.mxu1 %v6615_v22 }
 0x3b9   :  { %2203 = vmatpush.bf16.msra.mxu0 %v6603_v36  ;;  %2241 = vmatpush.bf16.msra.mxu3 %v6631_v39 }
 0x3bb   :  { %2176 = vmatpush.bf16.msra.mxu2 %v6586_v26 }
 0x3bc   :  { %2214 = vmatpush.bf16.msra.mxu1 %v6614_v25 }
 0x3bd   :  { %2204 = vmatpush.bf16.msra.mxu0 %v6602_v40  ;;  %2242 = vmatpush.bf16.msra.mxu3 %v6630_v4  ;;  %v6648_v40 = vld [vmem:[%s8645_s17 + $0x278] sm:$0xff] }
 0x3bf   :  { %2177 = vmatpush.bf16.msra.mxu2 %v6585_v30 }
 0x3c0   :  { %2215 = vmatpush.bf16.msra.mxu1 %v6613_v29 }
 0x3c1   :  { %2205 = vmatpush.bf16.msra.mxu0 %v6601_v48  ;;  %2243 = vmatpush.bf16.msra.mxu3 %v6629_v54  ;;  %v907_v48 = vperm.slane %v905_v35, 0  ;;  %v911_v35 = vpack.i.b16 %v7597_v57, %v7597_v57  ;;  %v6656_v57 = vld [vmem:[%s8645_s17 + $0x2b8] sm:$0xff] }
 0x3c3   :  { %2226 = vmatpush.bf16.msrb.mxu2 %v6624_v34 }
 0x3c4   :  { %2216 = vmatpush.bf16.msra.mxu1 %v6612_v33 }
 0x3c5   :  { %2244 = vmatpush.bf16.msra.mxu3 %v6628_v59 }
 0x3c7   :  { %2227 = vmatpush.bf16.msrb.mxu2 %v6623_v38  ;;  %v6640_v38 = vld [vmem:[%s8645_s17 + $0x238] sm:$0xff] }
 0x3c8   :  { %2217 = vmatpush.bf16.msra.mxu1 %v6611_v37  ;;  %v899_v37 = vpack.i.b16 %v7587_v53, %v7587_v53  ;;  %v6647_v53 = vld [vmem:[%s8645_s17 + $0x270] sm:$0xff] }
 0x3c9   :  { %2245 = vmatpush.bf16.msra.mxu3 %v6627_v62  ;;  %v975_v62 = vunpack.c.l.bf16 %v907_v48 }
 0x3cb   :  { %2228 = vmatpush.bf16.msrb.mxu2 %v6622_v42 }
 0x3cc   :  { %2218 = vmatpush.bf16.msra.mxu1 %v6610_v41  ;;  %v904_v41 = vperm.slane %v902_v28, 0 }
 0x3cd   :  { %2246 = vmatpush.bf16.msra.mxu3 %v6626_v0 }
 0x3cf   :  { %2229 = vmatpush.bf16.msrb.mxu2 %v6621_v51  ;;  %v6639_v51 = vld [vmem:[%s8645_s17 + $0x230] sm:$0xff] }
 0x3d0   :  { %2219 = vmatpush.bf16.msra.mxu1 %v6609_v50  ;;  %v901_v50 = vperm.slane %v899_v37, 0 }
 0x3d1   :  { %2247 = vmatpush.bf16.msra.mxu3 %v6625_v8  ;;  %v6646_v8 = vld [vmem:[%s8645_s17 + $0x268] sm:$0xff] }
 0x3d2   :  { %v973_v1 = vunpack.c.l.bf16 %v901_v50 }
 0x3d3   :  { %2230 = vmatpush.bf16.msrb.mxu2 %v6620_v58  ;;  %v974_v58 = vunpack.c.l.bf16 %v904_v41 }
 0x3d7   :  { %2231 = vmatpush.bf16.msrb.mxu2 %v6619_v61 }
 0x3db   :  { %2232 = vmatpush.bf16.msrb.mxu2 %v6618_v63 }
 0x3df   :  { %2233 = vmatpush.bf16.msrb.mxu2 %v6617_v49 }
 0x3ef   :  { %v651_v60 = vpop.f32.mrf.mxu1 }
 0x3f0   :  { %v693_v12 = vpop.f32.mrf.mxu0 }
 0x3f5   :  { %v637_v45 = vpop.f32.mrf.mxu2 }
 0x3f6   :  { %v852_v9 = vpack.c.bf16 %v651_v60, %v637_v45  ;;  %v679_v14 = vpop.f32.mrf.mxu3  ;;  %v972_v60 = vunpack.c.l.bf16 %v898_v46  ;;  %v6664_v46 = vld [vmem:[%s8645_s17 + $0x2f8] sm:$0xff] }
 0x3f7   :  { %v653_v3 = vpop.f32.mrf.mxu1 }
 0x3f8   :  { %v938_v15 = vunpack.c.l.bf16 %v852_v9  ;;  %v939_v17 = vunpack.c.h.bf16 %v852_v9  ;;  %v695_v27 = vpop.f32.mrf.mxu0 }
 0x3fa   :  { %v986_v22 = vadd.f32 %v970_v16, %v938_v15  ;;  %v987_v24 = vadd.f32 %v971_v18, %v939_v17 }
 0x3fc   :  { %v1066_v29 = vmax.f32 %v986_v22, 0.0  ;;  %v1067_v33 = vmax.f32 %v987_v24, 0.0 }
 0x3fd   :  { %v639_v19 = vpop.f32.mrf.mxu2 }
 0x3fe   :  { %v860_v20 = vpack.c.bf16 %v653_v3, %v639_v19  ;;  %v681_v34 = vpop.f32.mrf.mxu3  ;;  %v6637_v19 = vld [vmem:[%s8645_s17 + $0x220] sm:$0xff] }
 0x3ff   :  { %v707_v21 = vpop.f32.mrf.mxu1 }
 0x400   :  { %v954_v11 = vunpack.c.l.bf16 %v860_v20  ;;  %v955_v23 = vunpack.c.h.bf16 %v860_v20  ;;  %v854_v44 = vpack.c.bf16 %v707_v21, %v693_v12  ;;  %v749_v63 = vpop.f32.mrf.mxu0 }
 0x402   :  { %v1002_v25 = vadd.f32 %v970_v16, %v954_v11  ;;  %v1003_v26 = vadd.f32 %v971_v18, %v955_v23  ;;  %v942_v55 = vunpack.c.l.bf16 %v854_v44  ;;  %v943_v61 = vunpack.c.h.bf16 %v854_v44  ;;  %v882_v11 = vld [vmem:[#allocation1] sm:$0xff] }
 0x403   :  { %v6645_v23 = vld [vmem:[%s8645_s17 + $0x260] sm:$0xff] }
 0x404   :  { %v1082_v30 = vmax.f32 %v1002_v25, 0.0  ;;  %v1083_v31 = vmax.f32 %v1003_v26, 0.0  ;;  %v990_v13 = vadd.f32 %v974_v58, %v942_v55  ;;  %v991_v17 = vadd.f32 %v975_v62, %v943_v61  ;;  %v883_v25 = vld [vmem:[#allocation1 + $0x9] sm:$0xff] }
 0x405   :  { %v665_v36 = vpop.f32.mrf.mxu2  ;;  %v908_v26 = vpack.i.b16 %v7595_v56, %v7595_v56  ;;  %v6636_v56 = vld [vmem:[%s8645_s17 + $0x218] sm:$0xff]  ;;  %v6643_v55 = vld [vmem:[%s8645_s17 + $0x250] sm:$0xff] }
 0x406   :  { %v1098_v39 = vpack.c.bf16 %v1082_v30, %v1066_v29  ;;  %v1099_v4 = vpack.c.bf16 %v1083_v31, %v1067_v33  ;;  %v853_v5 = vpack.c.bf16 %v679_v14, %v665_v36  ;;  %v735_v9 = vpop.f32.mrf.mxu3  ;;  %v1071_v31 = vmax.f32 %v991_v17, 0.0  ;;  %v6663_v61 = vld [vmem:[%s8645_s17 + $0x2f0] sm:$0xff] }
 0x407   :  { %v709_v42 = vpop.f32.mrf.mxu1  ;;  %v914_v33 = vpack.i.b16 %v882_v11, %v882_v11  ;;  %v917_v36 = vpack.i.b16 %v883_v25, %v883_v25 }
 0x408   :  { %v862_v47 = vpack.c.bf16 %v709_v42, %v695_v27  ;;  %2150 = vmatmul.bf16.vlgmr.msrb.gmra.mxu0 %v1098_v39  ;;  %2164 = vmatmul.bf16.vlgmr.msrb.gmra.mxu1 %v1099_v4  ;;  %v940_v59 = vunpack.c.l.bf16 %v853_v5  ;;  %v941_v0 = vunpack.c.h.bf16 %v853_v5  ;;  %v1070_v27 = vmax.f32 %v990_v13, 0.0  ;;  %v6644_v39 = vld [vmem:[%s8645_s17 + $0x258] sm:$0xff] }
 0x409   :  { %2254 = vmatpush.bf16.msrb.mxu0 %v6640_v38  ;;  %2268 = vmatpush.bf16.msrb.mxu1 %v6648_v40  ;;  %v751_v40 = vpop.f32.mrf.mxu0  ;;  %v910_v42 = vperm.slane %v908_v26, 0  ;;  %v6633_v26 = vld [vmem:[%s8645_s17 + $0x200] sm:$0xff] }
 0x40a   :  { %v958_v52 = vunpack.c.l.bf16 %v862_v47  ;;  %v959_v54 = vunpack.c.h.bf16 %v862_v47  ;;  %v988_v14 = vadd.f32 %v972_v60, %v940_v59  ;;  %v989_v18 = vadd.f32 %v973_v1, %v941_v0 }
 0x40b   :  { %v976_v59 = vunpack.c.l.bf16 %v910_v42 }
 0x40c   :  { %v1006_v3 = vadd.f32 %v974_v58, %v958_v52  ;;  %v1007_v10 = vadd.f32 %v975_v62, %v959_v54  ;;  %v1068_v28 = vmax.f32 %v988_v14, 0.0  ;;  %v1069_v32 = vmax.f32 %v989_v18, 0.0  ;;  %v6635_v54 = vld [vmem:[%s8645_s17 + $0x210] sm:$0xff]  ;;  %v6654_v14 = vld [vmem:[%s8645_s17 + $0x2a8] sm:$0xff] }
 0x40d   :  { %2255 = vmatpush.bf16.msrb.mxu0 %v6639_v51  ;;  %v667_v45 = vpop.f32.mrf.mxu2  ;;  %2269 = vmatpush.bf16.msrb.mxu1 %v6647_v53  ;;  %v916_v51 = vperm.slane %v914_v33, 0  ;;  %v913_v52 = vperm.slane %v911_v35, 0  ;;  %v919_v53 = vperm.slane %v917_v36, 0 }
 0x40e   :  { %v861_v49 = vpack.c.bf16 %v681_v34, %v667_v45  ;;  %v1086_v20 = vmax.f32 %v1006_v3, 0.0  ;;  %v1087_v24 = vmax.f32 %v1007_v10, 0.0  ;;  %v737_v48 = vpop.f32.mrf.mxu3  ;;  %v6634_v10 = vld [vmem:[%s8645_s17 + $0x208] sm:$0xff] }
 0x40f   :  { %v763_v12 = vpop.f32.mrf.mxu1 }
 0x410   :  { %v956_v15 = vunpack.c.l.bf16 %v861_v49  ;;  %v957_v16 = vunpack.c.h.bf16 %v861_v49  ;;  %v1102_v38 = vpack.c.bf16 %v1086_v20, %v1070_v27  ;;  %v1103_v5 = vpack.c.bf16 %v1087_v24, %v1071_v31  ;;  %v884_v20 = vld [vmem:[#allocation1 + $0x12] sm:$0xff]  ;;  %v6641_v27 = vld [vmem:[%s8645_s17 + $0x240] sm:$0xff] }
 0x411   :  { %2256 = vmatpush.bf16.msrb.mxu0 %v6638_v2  ;;  %2270 = vmatpush.bf16.msrb.mxu1 %v6646_v8  ;;  %v856_v50 = vpack.c.bf16 %v763_v12, %v749_v63  ;;  %v977_v2 = vunpack.c.l.bf16 %v913_v52  ;;  %v979_v8 = vunpack.c.l.bf16 %v919_v53  ;;  %v6642_v12 = vld [vmem:[%s8645_s17 + $0x248] sm:$0xff]  ;;  %v6661_v31 = vld [vmem:[%s8645_s17 + $0x2e0] sm:$0xff]  ;;  %v6671_v53 = vld [vmem:[%s8645_s17 + $0x330] sm:$0xff] }
 0x412   :  { %v1004_v21 = vadd.f32 %v972_v60, %v956_v15  ;;  %v1005_v22 = vadd.f32 %v973_v1, %v957_v16  ;;  %v6655_v60 = vld [vmem:[%s8645_s17 + $0x2b0] sm:$0xff]  ;;  %v978_v1 = vunpack.c.l.bf16 %v916_v51  ;;  %v6662_v15 = vld [vmem:[%s8645_s17 + $0x2e8] sm:$0xff] }
 0x413   :  { %v946_v0 = vunpack.c.l.bf16 %v856_v50  ;;  %v947_v49 = vunpack.c.h.bf16 %v856_v50 }
 0x414   :  { %v1084_v29 = vmax.f32 %v1004_v21, 0.0  ;;  %v1085_v30 = vmax.f32 %v1005_v22, 0.0  ;;  %v885_v21 = vld [vmem:[#allocation1 + $0x1b] sm:$0xff] }
 0x415   :  { %2257 = vmatpush.bf16.msrb.mxu0 %v6637_v19  ;;  %v721_v34 = vpop.f32.mrf.mxu2  ;;  %2271 = vmatpush.bf16.msrb.mxu1 %v6645_v23  ;;  %v994_v22 = vadd.f32 %v978_v1, %v946_v0  ;;  %v995_v23 = vadd.f32 %v979_v8, %v947_v49  ;;  %v923_v33 = vpack.i.b16 %v885_v21, %v885_v21  ;;  %v6670_v0 = vld [vmem:[%s8645_s17 + $0x328] sm:$0xff] }
 0x416   :  { %v1100_v37 = vpack.c.bf16 %v1084_v29, %v1068_v28  ;;  %v855_v41 = vpack.c.bf16 %v735_v9, %v721_v34  ;;  %v1101_v44 = vpack.c.bf16 %v1085_v30, %v1069_v32  ;;  %v791_v29 = vpop.f32.mrf.mxu3  ;;  %v6653_v30 = vld [vmem:[%s8645_s17 + $0x2a0] sm:$0xff]  ;;  %v920_v32 = vpack.i.b16 %v884_v20, %v884_v20 }
 0x417   :  { %v765_v4 = vpop.f32.mrf.mxu1  ;;  %v1075_v42 = vmax.f32 %v995_v23, 0.0  ;;  %v925_v50 = vperm.slane %v923_v33, 0  ;;  %v886_v49 = vld [vmem:[#allocation1 + $0x24] sm:$0xff]  ;;  %v6696_v33 = vld [vmem:[%s8645_s17 + $0x3f8] sm:$0xff] }
 0x418   :  { %v864_v47 = vpack.c.bf16 %v765_v4, %v751_v40  ;;  %2178 = vmatmul.bf16.vlgmr.msra.gmra.mxu2 %v1100_v37  ;;  %2206 = vmatmul.bf16.vlgmr.msra.gmra.mxu0 %v1102_v38  ;;  %v944_v58 = vunpack.c.l.bf16 %v855_v41  ;;  %v945_v45 = vunpack.c.h.bf16 %v855_v41  ;;  %v6672_v38 = vld [vmem:[%s8645_s17 + $0x338] sm:$0xff]  ;;  %v1074_v41 = vmax.f32 %v994_v22, 0.0  ;;  %v6657_v23 = vld [vmem:[%s8645_s17 + $0x2c0] sm:$0xff] }
 0x419   :  { %2192 = vmatmul.bf16.vlgmr.msrb.gmra.mxu3 %v1101_v44  ;;  %2220 = vmatmul.bf16.vlgmr.msra.gmra.mxu1 %v1103_v5  ;;  %v922_v44 = vperm.slane %v920_v32, 0  ;;  %v926_v21 = vpack.i.b16 %v886_v49, %v886_v49  ;;  %v6688_v32 = vld [vmem:[%s8645_s17 + $0x3b8] sm:$0xff] }
 0x41a   :  { %2258 = vmatpush.bf16.msrb.mxu0 %v6636_v56  ;;  %2272 = vmatpush.bf16.msrb.mxu1 %v6644_v39  ;;  %v962_v62 = vunpack.c.l.bf16 %v864_v47  ;;  %v963_v63 = vunpack.c.h.bf16 %v864_v47  ;;  %v992_v13 = vadd.f32 %v976_v59, %v944_v58  ;;  %v993_v11 = vadd.f32 %v977_v2, %v945_v45  ;;  %v6680_v56 = vld [vmem:[%s8645_s17 + $0x378] sm:$0xff]  ;;  %v6651_v58 = vld [vmem:[%s8645_s17 + $0x290] sm:$0xff] }
 0x41b   :  { %2282 = vmatpush.bf16.msra.mxu2 %v6656_v57  ;;  %2296 = vmatpush.bf16.msrb.mxu3 %v6664_v46  ;;  %v6652_v57 = vld [vmem:[%s8645_s17 + $0x298] sm:$0xff] }
 0x41c   :  { %v1010_v16 = vadd.f32 %v978_v1, %v962_v62  ;;  %v1011_v17 = vadd.f32 %v979_v8, %v963_v63  ;;  %v1072_v28 = vmax.f32 %v992_v13, 0.0  ;;  %v1073_v39 = vmax.f32 %v993_v11, 0.0  ;;  %v6660_v46 = vld [vmem:[%s8645_s17 + $0x2d8] sm:$0xff]  ;;  %v6678_v1 = vld [vmem:[%s8645_s17 + $0x368] sm:$0xff]  ;;  %v6649_v11 = vld [vmem:[%s8645_s17 + $0x280] sm:$0xff] }
 0x41d   :  { %v723_v3 = vpop.f32.mrf.mxu2  ;;  %v980_v62 = vunpack.c.l.bf16 %v922_v44  ;;  %v981_v63 = vunpack.c.l.bf16 %v925_v50  ;;  %v6650_v8 = vld [vmem:[%s8645_s17 + $0x288] sm:$0xff]  ;;  %v6695_v44 = vld [vmem:[%s8645_s17 + $0x3f0] sm:$0xff] }
 0x41e   :  { %2259 = vmatpush.bf16.msrb.mxu0 %v6635_v54  ;;  %2273 = vmatpush.bf16.msrb.mxu1 %v6643_v55  ;;  %v863_v9 = vpack.c.bf16 %v737_v48, %v723_v3  ;;  %v1090_v34 = vmax.f32 %v1010_v16, 0.0  ;;  %v1091_v35 = vmax.f32 %v1011_v17, 0.0  ;;  %v6679_v54 = vld [vmem:[%s8645_s17 + $0x370] sm:$0xff]  ;;  %v805_v55 = vpop.f32.mrf.mxu0  ;;  %v793_v45 = vpop.f32.mrf.mxu3  ;;  %v6669_v16 = vld [vmem:[%s8645_s17 + $0x320] sm:$0xff]  ;;  %v6666_v50 = vld [vmem:[%s8645_s17 + $0x308] sm:$0xff] }
 0x41f   :  { %2283 = vmatpush.bf16.msra.mxu2 %v6655_v60  ;;  %2297 = vmatpush.bf16.msrb.mxu3 %v6663_v61  ;;  %v7719_v47 = vpop.f32.mrf.mxu1  ;;  %v6677_v17 = vld [vmem:[%s8645_s17 + $0x360] sm:$0xff] }
 0x420   :  { %v960_v18 = vunpack.c.l.bf16 %v863_v9  ;;  %v961_v19 = vunpack.c.h.bf16 %v863_v9  ;;  %v1106_v51 = vpack.c.bf16 %v1090_v34, %v1074_v41  ;;  %v1107_v52 = vpack.c.bf16 %v1091_v35, %v1075_v42  ;;  %v6658_v9 = vld [vmem:[%s8645_s17 + $0x2c8] sm:$0xff] }
 0x422   :  { %v1008_v24 = vadd.f32 %v976_v59, %v960_v18  ;;  %v1009_v25 = vadd.f32 %v977_v2, %v961_v19  ;;  %2260 = vmatpush.bf16.msrb.mxu0 %v6634_v10  ;;  %2274 = vmatpush.bf16.msrb.mxu1 %v6642_v12  ;;  %v6659_v59 = vld [vmem:[%s8645_s17 + $0x2d0] sm:$0xff] }
 0x423   :  { %2284 = vmatpush.bf16.msra.mxu2 %v6654_v14  ;;  %2298 = vmatpush.bf16.msrb.mxu3 %v6662_v15  ;;  %v887_v10 = vld [vmem:[#allocation1 + $0x2d] sm:$0xff] }
 0x424   :  { %v1088_v36 = vmax.f32 %v1008_v24, 0.0  ;;  %v1089_v37 = vmax.f32 %v1009_v25, 0.0  ;;  %v929_v22 = vpack.i.b16 %v887_v10, %v887_v10 }
 0x425   :  { %v777_v40 = vpop.f32.mrf.mxu2 }
 0x426   :  { %2261 = vmatpush.bf16.msrb.mxu0 %v6633_v26  ;;  %2275 = vmatpush.bf16.msrb.mxu1 %v6641_v27  ;;  %v1104_v4 = vpack.c.bf16 %v1088_v36, %v1072_v28  ;;  %v1105_v5 = vpack.c.bf16 %v1089_v37, %v1073_v39  ;;  %v857_v48 = vpack.c.bf16 %v791_v29, %v777_v40  ;;  %v807_v24 = vpop.f32.mrf.mxu0  ;;  %v6668_v29 = vld [vmem:[%s8645_s17 + $0x318] sm:$0xff]  ;;  %v928_v37 = vperm.slane %v926_v21, 0  ;;  %v6675_v39 = vld [vmem:[%s8645_s17 + $0x350] sm:$0xff] }
 0x427   :  { %2285 = vmatpush.bf16.msra.mxu2 %v6653_v30  ;;  %2299 = vmatpush.bf16.msrb.mxu3 %v6661_v31  ;;  %v821_v18 = vpop.f32.mrf.mxu1  ;;  %v6676_v30 = vld [vmem:[%s8645_s17 + $0x358] sm:$0xff]  ;;  %v858_v36 = vpack.c.bf16 %v7719_v47, %v805_v55  ;;  %v6694_v55 = vld [vmem:[%s8645_s17 + $0x3e8] sm:$0xff]  ;;  %v6683_v21 = vld [vmem:[%s8645_s17 + $0x390] sm:$0xff] }
 0x428   :  { %2234 = vmatmul.bf16.vlgmr.msrb.gmra.mxu2 %v1104_v4  ;;  %v948_v60 = vunpack.c.l.bf16 %v857_v48  ;;  %v949_v61 = vunpack.c.h.bf16 %v857_v48  ;;  %v866_v31 = vpack.c.bf16 %v821_v18, %v807_v24  ;;  %v6687_v4 = vld [vmem:[%s8645_s17 + $0x3b0] sm:$0xff]  ;;  %v847_v48 = vpop.f32.mrf.mxu3 }
 0x429   :  { %2248 = vmatmul.bf16.vlgmr.msra.gmra.mxu3 %v1105_v5  ;;  %2262 = vmatmul.bf16.vlgmr.msrb.gmra.mxu0 %v1106_v51  ;;  %v950_v5 = vunpack.c.l.bf16 %v858_v36  ;;  %v6674_v51 = vld [vmem:[%s8645_s17 + $0x348] sm:$0xff] }
 0x42a   :  { %2310 = vmatpush.bf16.msra.mxu0 %v6672_v38  ;;  %2324 = vmatpush.bf16.msra.mxu1 %v6680_v56  ;;  %v996_v12 = vadd.f32 %v980_v62, %v948_v60  ;;  %v997_v13 = vadd.f32 %v981_v63, %v949_v61  ;;  %v931_v38 = vperm.slane %v929_v22, 0  ;;  %v6667_v56 = vld [vmem:[%s8645_s17 + $0x310] sm:$0xff]  ;;  %v966_v40 = vunpack.c.l.bf16 %v866_v31  ;;  %v6665_v61 = vld [vmem:[%s8645_s17 + $0x300] sm:$0xff] }
 0x42b   :  { %2276 = vmatmul.bf16.vlgmr.msrb.gmra.mxu1 %v1107_v52  ;;  %2286 = vmatpush.bf16.msra.mxu2 %v6652_v57  ;;  %v967_v41 = vunpack.c.h.bf16 %v866_v31  ;;  %v951_v57 = vunpack.c.h.bf16 %v858_v36  ;;  %v888_v60 = vld [vmem:[#allocation1 + $0x36] sm:$0xff] }
 0x42c   :  { %2300 = vmatpush.bf16.msrb.mxu3 %v6660_v46  ;;  %v1076_v25 = vmax.f32 %v996_v12, 0.0  ;;  %v1077_v26 = vmax.f32 %v997_v13, 0.0  ;;  %v982_v46 = vunpack.c.l.bf16 %v928_v37  ;;  %v983_v47 = vunpack.c.l.bf16 %v931_v38  ;;  %v6691_v22 = vld [vmem:[%s8645_s17 + $0x3d0] sm:$0xff] }
 0x42d   :  { %v779_v2 = vpop.f32.mrf.mxu2 }
 0x42e   :  { %2311 = vmatpush.bf16.msra.mxu0 %v6671_v53  ;;  %2325 = vmatpush.bf16.msra.mxu1 %v6679_v54  ;;  %v865_v3 = vpack.c.bf16 %v793_v45, %v779_v2  ;;  %v1014_v52 = vadd.f32 %v982_v46, %v966_v40  ;;  %v1015_v53 = vadd.f32 %v983_v47, %v967_v41  ;;  %v6686_v54 = vld [vmem:[%s8645_s17 + $0x3a8] sm:$0xff]  ;;  %v6685_v45 = vld [vmem:[%s8645_s17 + $0x3a0] sm:$0xff]  ;;  %v6928_v41 = vld [vmem:[%s8662_s25 + $0x18] sm:$0xff] }
 0x42f   :  { %2287 = vmatpush.bf16.msra.mxu2 %v6651_v58  ;;  %v998_v58 = vadd.f32 %v982_v46, %v950_v5  ;;  %v6693_v2 = vld [vmem:[%s8645_s17 + $0x3e0] sm:$0xff] }
 0x430   :  { %2301 = vmatpush.bf16.msrb.mxu3 %v6659_v59  ;;  %v964_v14 = vunpack.c.l.bf16 %v865_v3  ;;  %v965_v15 = vunpack.c.h.bf16 %v865_v3  ;;  %v999_v59 = vadd.f32 %v983_v47, %v951_v57  ;;  %v849_v12 = vpop.f32.mrf.mxu3 }
 0x431   :  { %v1078_v3 = vmax.f32 %v998_v58, 0.0 }
 0x432   :  { %2312 = vmatpush.bf16.msra.mxu0 %v6670_v0  ;;  %2326 = vmatpush.bf16.msra.mxu1 %v6678_v1  ;;  %v1012_v19 = vadd.f32 %v980_v62, %v964_v14  ;;  %v1013_v20 = vadd.f32 %v981_v63, %v965_v15  ;;  %v6673_v62 = vld [vmem:[%s8645_s17 + $0x340] sm:$0xff]  ;;  %v1094_v63 = vmax.f32 %v1014_v52, 0.0  ;;  %v1095_v0 = vmax.f32 %v1015_v53, 0.0  ;;  %v6684_v15 = vld [vmem:[%s8645_s17 + $0x398] sm:$0xff] }
 0x433   :  { %2288 = vmatpush.bf16.msra.mxu2 %v6650_v8  ;;  %v889_v1 = vld [vmem:[#allocation1 + $0x3f] sm:$0xff]  ;;  %v1079_v49 = vmax.f32 %v999_v59, 0.0 }
 0x434   :  { %2302 = vmatpush.bf16.msrb.mxu3 %v6658_v9  ;;  %v1092_v27 = vmax.f32 %v1012_v19, 0.0  ;;  %v1093_v28 = vmax.f32 %v1013_v20, 0.0  ;;  %v932_v9 = vpack.i.b16 %v888_v60, %v888_v60  ;;  %v935_v10 = vpack.i.b16 %v889_v1, %v889_v1 }
 0x435   :  { %v833_v42 = vpop.f32.mrf.mxu2  ;;  %v1110_v13 = vpack.c.bf16 %v1094_v63, %v1078_v3  ;;  %v1111_v14 = vpack.c.bf16 %v1095_v0, %v1079_v49 }
 0x436   :  { %2313 = vmatpush.bf16.msra.mxu0 %v6669_v16  ;;  %2327 = vmatpush.bf16.msra.mxu1 %v6677_v17  ;;  %v1108_v34 = vpack.c.bf16 %v1092_v27, %v1076_v25  ;;  %v1109_v35 = vpack.c.bf16 %v1093_v28, %v1077_v26  ;;  %v6692_v16 = vld [vmem:[%s8645_s17 + $0x3d8] sm:$0xff]  ;;  %v859_v18 = vpack.c.bf16 %v847_v48, %v833_v42  ;;  %v934_v19 = vperm.slane %v932_v9, 0  ;;  %v6682_v28 = vld [vmem:[%s8645_s17 + $0x388] sm:$0xff]  ;;  %v6929_v42 = vld [vmem:[%s8662_s25 + $0x10] sm:$0xff] }
 0x437   :  { %2289 = vmatpush.bf16.msra.mxu2 %v6649_v11  ;;  %v937_v20 = vperm.slane %v935_v10, 0 }
 0x438   :  { %2303 = vmatpush.bf16.msrb.mxu3 %v6657_v23  ;;  %v952_v24 = vunpack.c.l.bf16 %v859_v18  ;;  %v953_v25 = vunpack.c.h.bf16 %v859_v18  ;;  %v984_v26 = vunpack.c.l.bf16 %v934_v19 }
 0x439   :  { %v985_v27 = vunpack.c.l.bf16 %v937_v20 }
 0x43a   :  { %2314 = vmatpush.bf16.msra.mxu0 %v6668_v29  ;;  %2328 = vmatpush.bf16.msra.mxu1 %v6676_v30  ;;  %v6690_v29 = vld [vmem:[%s8645_s17 + $0x3c8] sm:$0xff] }
 0x43b   :  { %2338 = vmatpush.bf16.msrb.mxu2 %v6688_v32  ;;  %2304 = vmatmul.bf16.vlgmr.msrb.gmra.mxu3 %v1109_v35  ;;  %v1000_v32 = vadd.f32 %v984_v26, %v952_v24  ;;  %v6689_v35 = vld [vmem:[%s8645_s17 + $0x3c0] sm:$0xff] }
 0x43c   :  { %2352 = vmatpush.bf16.msra.mxu3 %v6696_v33  ;;  %2290 = vmatmul.bf16.vlgmr.msra.gmra.mxu2 %v1108_v34  ;;  %v1001_v33 = vadd.f32 %v985_v27, %v953_v25  ;;  %v6681_v34 = vld [vmem:[%s8645_s17 + $0x380] sm:$0xff] }
 0x43d   :  { %v835_v8 = vpop.f32.mrf.mxu2  ;;  %v1080_v38 = vmax.f32 %v1000_v32, 0.0 }
 0x43e   :  { %2315 = vmatpush.bf16.msra.mxu0 %v6667_v56  ;;  %2329 = vmatpush.bf16.msra.mxu1 %v6675_v39  ;;  %v867_v17 = vpack.c.bf16 %v849_v12, %v835_v8  ;;  %v1081_v56 = vmax.f32 %v1001_v33, 0.0 }
 0x43f   :  { %2339 = vmatpush.bf16.msrb.mxu2 %v6687_v4  ;;  %v6930_v4 = vld [vmem:[%s8662_s25 + $0x8] sm:$0xff] }
 0x440   :  { %2353 = vmatpush.bf16.msra.mxu3 %v6695_v44  ;;  %v968_v11 = vunpack.c.l.bf16 %v867_v17  ;;  %v969_v23 = vunpack.c.h.bf16 %v867_v17  ;;  %v6931_v44 = vld [vmem:[%s8662_s25] sm:$0xff]  ;;  %s6960_s25 = smov [#allocation2]  }
 0x442   :  { %2316 = vmatpush.bf16.msra.mxu0 %v6666_v50  ;;  %2330 = vmatpush.bf16.msra.mxu1 %v6674_v51  ;;  %v1016_v30 = vadd.f32 %v984_v26, %v968_v11  ;;  %v1017_v31 = vadd.f32 %v985_v27, %v969_v23  ;;  %v6874_v51 = vld [vmem:[%s8646_s18] ss:$0 sm:$0xff] }
 0x443   :  { %2340 = vmatpush.bf16.msrb.mxu2 %v6686_v54 }
 0x444   :  { %2354 = vmatpush.bf16.msra.mxu3 %v6694_v55  ;;  %v1096_v36 = vmax.f32 %v1016_v30, 0.0  ;;  %v1097_v37 = vmax.f32 %v1017_v31, 0.0 }
 0x446   :  { %2317 = vmatpush.bf16.msra.mxu0 %v6665_v61  ;;  %2331 = vmatpush.bf16.msra.mxu1 %v6673_v62  ;;  %v1112_v39 = vpack.c.bf16 %v1096_v36, %v1080_v38  ;;  %v1113_v40 = vpack.c.bf16 %v1097_v37, %v1081_v56 }
 0x447   :  { %2341 = vmatpush.bf16.msrb.mxu2 %v6685_v45 }
 0x448   :  { %2355 = vmatpush.bf16.msra.mxu3 %v6693_v2 }
 0x449   :  { %2318 = vmatmul.bf16.vlgmr.msra.gmra.mxu0 %v1110_v13  ;;  %2332 = vmatmul.bf16.vlgmr.msra.gmra.mxu1 %v1111_v14 }
 0x44b   :  { %2342 = vmatpush.bf16.msrb.mxu2 %v6684_v15 }
 0x44c   :  { %2356 = vmatpush.bf16.msra.mxu3 %v6692_v16 }
 0x44f   :  { %2343 = vmatpush.bf16.msrb.mxu2 %v6683_v21 }
 0x450   :  { %2357 = vmatpush.bf16.msra.mxu3 %v6691_v22 }
 0x453   :  { %2344 = vmatpush.bf16.msrb.mxu2 %v6682_v28 }
 0x454   :  { %2358 = vmatpush.bf16.msra.mxu3 %v6690_v29 }
 0x457   :  { %2345 = vmatpush.bf16.msrb.mxu2 %v6681_v34 }
 0x458   :  { %2359 = vmatpush.bf16.msra.mxu3 %v6689_v35 }
 0x45a   :  { %2346 = vmatmul.bf16.vlgmr.msrb.gmra.mxu2 %v1112_v39 }
 0x45b   :  { %2360 = vmatmul.bf16.vlgmr.msra.gmra.mxu3 %v1113_v40 }
 0x45c   :  { %2564 = vmatpush.msrb.mxu3 %v6928_v41 }
 0x45e   :  { %2565 = vmatpush.msrb.mxu3 %v6929_v42 }
 0x460   :  { %2566 = vmatpush.msrb.mxu3 %v6930_v4 }
 0x462   :  { %2567 = vmatpush.msrb.mxu3 %v6931_v44 }
 0x485   :  { %v2151_v5 = vpop.f32.mrf.mxu0  ;;  %v2165_v57 = vpop.f32.mrf.mxu1 }
 0x486   :  { %v2152_v55 = vadd.f32 %v6874_v51, %v2151_v5 }
 0x488   :  { %v2166_v59 = vadd.f32 %v2165_v57, %v2152_v55 }
 0x48d   :  { %v2153_v46 = vpop.f32.mrf.mxu0  ;;  %v2167_v50 = vpop.f32.mrf.mxu1 }
 0x48e   :  { %v2154_v0 = vadd.f32 %v6874_v51, %v2153_v46 }
 0x490   :  { %v2168_v45 = vadd.f32 %v2167_v50, %v2154_v0  ;;  %v6700_v0 = vld [vmem:[%s8635_s7 + $0x18] sm:$0xff] }
 0x491   :  { %2492 = vmatpush.bf16.msrb.mxu1 %v6700_v0 }
 0x495   :  { %v2207_v52 = vpop.f32.mrf.mxu0 }
 0x496   :  { %v2221_v58 = vpop.f32.mrf.mxu1 }
 0x49b   :  { %v2179_v47 = vpop.f32.mrf.mxu2 }
 0x49c   :  { %v2193_v48 = vpop.f32.mrf.mxu3  ;;  %v2180_v60 = vadd.f32 %v2179_v47, %v2166_v59 }
 0x49d   :  { %v2209_v61 = vpop.f32.mrf.mxu0 }
 0x49e   :  { %v2194_v1 = vadd.f32 %v2193_v48, %v2180_v60  ;;  %v2223_v2 = vpop.f32.mrf.mxu1 }
 0x4a0   :  { %v2208_v3 = vadd.f32 %v2207_v52, %v2194_v1  ;;  %v6702_v1 = vld [vmem:[%s8637_s9 + $0x18] sm:$0xff] }
 0x4a1   :  { %2528 = vmatpush.bf16.msra.mxu2 %v6702_v1 }
 0x4a2   :  { %v2222_v13 = vadd.f32 %v2221_v58, %v2208_v3  ;;  %v6697_v3 = vld [vmem:[%s8660_s26 + $0x10] sm:$0xff] }
 0x4a3   :  { %v2181_v53 = vpop.f32.mrf.mxu2 }
 0x4a4   :  { %v2195_v54 = vpop.f32.mrf.mxu3  ;;  %v2182_v49 = vadd.f32 %v2181_v53, %v2168_v45 }
 0x4a6   :  { %v2263_v8 = vpop.f32.mrf.mxu0  ;;  %v2196_v12 = vadd.f32 %v2195_v54, %v2182_v49  ;;  %v6699_v49 = vld [vmem:[%s8635_s7 + $0x10] sm:$0xff]  ;;  %s4800_s7 = sshll.u32 %s6960_s25, 4  ;;  %s4801_s7 = int_to_ptr.vmem [resolvable:$true] %s4800_s7 }
 0x4a7   :  { %2493 = vmatpush.bf16.msrb.mxu1 %v6699_v49 }
 0x4a8   :  { %v2210_v15 = vadd.f32 %v2209_v61, %v2196_v12  ;;  %v2277_v16 = vpop.f32.mrf.mxu1 }
 0x4aa   :  { %v2224_v19 = vadd.f32 %v2223_v2, %v2210_v15 }
 0x4ab   :  { %v2235_v62 = vpop.f32.mrf.mxu2 }
 0x4ac   :  { %v2249_v63 = vpop.f32.mrf.mxu3  ;;  %v2236_v14 = vadd.f32 %v2235_v62, %v2222_v13 }
 0x4ae   :  { %v2250_v17 = vadd.f32 %v2249_v63, %v2236_v14  ;;  %v2265_v18 = vpop.f32.mrf.mxu0 }
 0x4b0   :  { %v2264_v22 = vadd.f32 %v2263_v8, %v2250_v17  ;;  %v2279_v25 = vpop.f32.mrf.mxu1  ;;  %v6701_v8 = vld [vmem:[%s8637_s9 + $0x10] sm:$0xff] }
 0x4b1   :  { %2529 = vmatpush.bf16.msra.mxu2 %v6701_v8 }
 0x4b2   :  { %v2278_v24 = vadd.f32 %v2277_v16, %v2264_v22 }
 0x4b3   :  { %v2237_v9 = vpop.f32.mrf.mxu2 }
 0x4b4   :  { %v2251_v10 = vpop.f32.mrf.mxu3  ;;  %v2238_v11 = vadd.f32 %v2237_v9, %v2224_v19 }
 0x4b6   :  { %v2252_v23 = vadd.f32 %v2251_v10, %v2238_v11  ;;  %v6932_v10 = vld [vmem:[%s8663_s29] sm:$0xf] }
 0x4b8   :  { %v2266_v28 = vadd.f32 %v2265_v18, %v2252_v23 }
 0x4ba   :  { %v2280_v33 = vadd.f32 %v2279_v25, %v2266_v28 }
 0x4be   :  { %v2305_v21 = vpop.f32.mrf.mxu3 }
 0x4bf   :  { %v2291_v20 = vpop.f32.mrf.mxu2 }
 0x4c0   :  { %v2292_v26 = vadd.f32 %v2291_v20, %v2278_v24 }
 0x4c2   :  { %v2306_v31 = vadd.f32 %v2305_v21, %v2292_v26  ;;  %v6875_v26 = vld [vmem:[%s8647_s19] ss:$0 sm:$0xff] }
 0x4c6   :  { %v2319_v27 = vpop.f32.mrf.mxu0  ;;  %v2307_v30 = vpop.f32.mrf.mxu3 }
 0x4c7   :  { %v2293_v29 = vpop.f32.mrf.mxu2  ;;  %v2320_v32 = vadd.f32 %v2319_v27, %v2306_v31  ;;  %v2333_v34 = vpop.f32.mrf.mxu1 }
 0x4c8   :  { %v2294_v35 = vadd.f32 %v2293_v29, %v2280_v33 }
 0x4c9   :  { %v2334_v36 = vadd.f32 %v2333_v34, %v2320_v32 }
 0x4ca   :  { %v2308_v39 = vadd.f32 %v2307_v30, %v2294_v35  ;;  %v6876_v30 = vld [vmem:[%s8648_s20] ss:$0 sm:$0xff] }
 0x4ce   :  { %v2321_v37 = vpop.f32.mrf.mxu0 }
 0x4cf   :  { %v2322_v41 = vadd.f32 %v2321_v37, %v2308_v39  ;;  %v2335_v44 = vpop.f32.mrf.mxu1  ;;  %v6877_v37 = vld [vmem:[%s8634_s6 + $0x1] ss:$0 sm:$0xff] }
 0x4d1   :  { %v2336_v5 = vadd.f32 %v2335_v44, %v2322_v41 }
 0x4dd   :  { %v2347_v38 = vpop.f32.mrf.mxu2 }
 0x4de   :  { %v2361_v56 = vpop.f32.mrf.mxu3  ;;  %v2348_v40 = vadd.f32 %v2347_v38, %v2334_v36  ;;  %v6878_v38 = vld [vmem:[%s8636_s8 + $0x1] ss:$0 sm:$0xff] }
 0x4e0   :  { %v2362_v42 = vadd.f32 %v2361_v56, %v2348_v40 }
 0x4e2   :  { %v2366_v4 = vadd.f32 %v2362_v42, %v7292_v6 }
 0x4e4   :  { %v2370_v57 = vsel %vm98_vm0, %v2366_v4, 0.0 }
 0x4e5   :  { %v2349_v46 = vpop.f32.mrf.mxu2  ;;  %2371 = vadd.xlane.f32.xlu2 %v2370_v57 }
 0x4e6   :  { %v2350_v47 = vadd.f32 %v2349_v46, %v2336_v5  ;;  %v2363_v48 = vpop.f32.mrf.mxu3 }
 0x4e8   :  { %v2364_v50 = vadd.f32 %v2363_v48, %v2350_v47 }
 0x4ea   :  { %v2367_v51 = vadd.f32 %v2364_v50, %v7294_v7  ;;  %v6698_v7 = vld [vmem:[%s8660_s26 + $0x18] sm:$0xff] }
 0x4eb   :  { %2456 = vmatpush.bf16.msrb.mxu0 %v6698_v7 }
 0x4ec   :  { %v2373_v52 = vsel %vm98_vm0, %v2367_v51, 0.0 }
 0x4ed   :  { %2374 = vadd.xlane.f32.xlu2 %v2373_v52 }
 0x4ef   :  { %2457 = vmatpush.bf16.msrb.mxu0 %v6697_v3 }
 0x4f3   :  { %5558 = vmatpush.msk.msra.mxu0 %vm290_vm1, %v6932_v10 }
 0x558   :  { %v2372_v53 = vpop.xlane.xlu2 %2371 }
 0x559   :  { %v2376_v54 = vmul.f32 %v2372_v53, %v7152_v43 }
 0x55b   :  { %v2378_v55 = vsub.f32 %v2366_v4, %v2376_v54 }
 0x55d   :  { %v2380_v58 = vmul.f32 %v2378_v55, %v2378_v55 }
 0x55f   :  { %v2382_v6 = vsel %vm98_vm0, %v2380_v58, 0.0 }
 0x560   :  { %2383 = vadd.xlane.f32.xlu0 %v2382_v6  ;;  %v2375_v59 = vpop.xlane.xlu2 %2374 }
 0x561   :  { %v2377_v60 = vmul.f32 %v2375_v59, %v7152_v43 }
 0x563   :  { %v2379_v61 = vsub.f32 %v2367_v51, %v2377_v60 }
 0x565   :  { %v2381_v62 = vmul.f32 %v2379_v61, %v2379_v61 }
 0x567   :  { %v2385_v63 = vsel %vm98_vm0, %v2381_v62, 0.0 }
 0x568   :  { %2386 = vadd.xlane.f32.xlu1 %v2385_v63 }
 0x5d3   :  { %v2384_v45 = vpop.xlane.xlu0 %2383 }
 0x5d4   :  { %v2388_v2 = vmul.f32 %v2384_v45, %v7152_v43 }
 0x5d6   :  { %v2390_v9 = vadd.f32 1e-05, %v2388_v2 }
 0x5d8   :  { %6904 = vrsqrt.f32 %v2390_v9  ;;  %vm2398_vm5 = vweird.f32 %v2390_v9 }
 0x5db   :  { %v2387_v12 = vpop.xlane.xlu1 %2386 }
 0x5dc   :  { %v2389_v13 = vmul.f32 %v2387_v12, %v7152_v43 }
 0x5de   :  { %v6905_v14 = vpop.eup %6904  ;;  %v2391_v15 = vadd.f32 1e-05, %v2389_v13 }
 0x5df   :  { %v2393_v16 = vmul.f32 %v6905_v14, %v2390_v9  ;;  %vm2399_vm4 = vweird.f32 %v6905_v14 }
 0x5e0   :  { %6906 = vrsqrt.f32 %v2391_v15  ;;  %vm2400_vm7 = vmor %vm2398_vm5, %vm2399_vm4  ;;  %vm2408_vm8 = vweird.f32 %v2391_v15 }
 0x5e1   :  { %v2394_v17 = vmul.f32 %v6905_v14, %v2393_v16 }
 0x5e3   :  { %v2395_v18 = vmul.f32 0.5, %v2394_v17 }
 0x5e5   :  { %v2396_v19 = vsub.f32 1.5, %v2395_v18 }
 0x5e6   :  { %v6907_v20 = vpop.eup %6906 }
 0x5e7   :  { %v2397_v21 = vmul.f32 %v6905_v14, %v2396_v19  ;;  %v2403_v22 = vmul.f32 %v6907_v20, %v2391_v15  ;;  %vm2409_vm1 = vweird.f32 %v6907_v20 }
 0x5e8   :  { %vm2410_vm9 = vmor %vm2408_vm8, %vm2409_vm1 }
 0x5e9   :  { %v2404_v11 = vmul.f32 %v6907_v20, %v2403_v22  ;;  %v2401_v23 = vsel %vm2400_vm7, %v6905_v14, %v2397_v21 }
 0x5ea   :  { %v2412_v27 = vmul.f32 %v2401_v23, %v2378_v55 }
 0x5eb   :  { %v2405_v24 = vmul.f32 0.5, %v2404_v11 }
 0x5ec   :  { %v2417_v31 = vmul.f32 %v6875_v26, %v2412_v27 }
 0x5ed   :  { %v2406_v25 = vsub.f32 1.5, %v2405_v24 }
 0x5ee   :  { %v7883_v34 = vadd.f32 %v6876_v30, %v2417_v31 }
 0x5ef   :  { %v2407_v28 = vmul.f32 %v6907_v20, %v2406_v25 }
 0x5f1   :  { %v2411_v29 = vsel %vm2410_vm9, %v6907_v20, %v2407_v28 }
 0x5f2   :  { %v2413_v32 = vmul.f32 %v2411_v29, %v2379_v61 }
 0x5f4   :  { %v2418_v33 = vmul.f32 %v6875_v26, %v2413_v32  ;;  %v6704_v32 = vld [vmem:[%s8639_s11 + $0x18] sm:$0xff] }
 0x5f5   :  { %2708 = vmatpush.bf16.msra.mxu1 %v6704_v32 }
 0x5f6   :  { %v7885_v35 = vadd.f32 %v6876_v30, %v2418_v33  ;;  %v6703_v33 = vld [vmem:[%s8639_s11 + $0x10] sm:$0xff] }
 0x5f8   :  { %v2424_v36 = vpack.c.bf16 %v7885_v35, %v7883_v34 }
 0x5f9   :  { %2709 = vmatpush.bf16.msra.mxu1 %v6703_v33 }
 0x5fa   :  { %5525 = vmatmul.msk.bf16.vlgmr.msrb.gmra.mxu0 %vm98_vm0, %v2424_v36  ;;  %5539 = vmatmul.msk.bf16.vlgmr.msrb.gmra.mxu1 %vm98_vm0, %v2424_v36 }
 0x5fb   :  { %5553 = vmatmul.msk.bf16.vlgmr.msra.gmra.mxu2 %vm98_vm0, %v2424_v36 }
 0x677   :  { %v2459_v56 = vpop.f32.mrf.mxu0  ;;  %v2495_v39 = vpop.f32.mrf.mxu1 }
 0x678   :  { %v2460_v40 = vadd.f32 %v6877_v37, %v2459_v56  ;;  %v2496_v41 = vadd.f32 %v6878_v38, %v2495_v39 }
 0x67a   :  { %v2536_v42 = vmul.f32 %v2496_v41, %v2460_v40 }
 0x67c   :  { %5554 = vmatmul.msk.f32.vlgmr.msrb.gmra.mxu3 %vm98_vm0, %v2536_v42 }
 0x67f   :  { %v2497_v4 = vpop.f32.mrf.mxu1  ;;  %v2461_v57 = vpop.f32.mrf.mxu0 }
 0x680   :  { %v2498_v44 = vadd.f32 %v6878_v38, %v2497_v4  ;;  %v2462_v46 = vadd.f32 %v6877_v37, %v2461_v57  ;;  %v2531_v38 = vpop.f32.mrf.mxu2 }
 0x682   :  { %v2537_v5 = vmul.f32 %v2498_v44, %v2460_v40  ;;  %v2538_v47 = vmul.f32 %v2496_v41, %v2462_v46  ;;  %v2539_v48 = vmul.f32 %v2498_v44, %v2462_v46  ;;  %v6879_v40 = vld [vmem:[%s8638_s10 + $0x1] ss:$0 sm:$0xff] }
 0x683   :  { %v2532_v42 = vadd.f32 %v6879_v40, %v2531_v38  ;;  %v6723_v38 = vld [vmem:[%s8643_s15 + $0x194] sm:$0xf] }
 0x684   :  { %5555 = vmatmul.msk.f32.gmra.mxu3 %vm98_vm0, %v2537_v5 }
 0x688   :  { %v2533_v39 = vpop.f32.mrf.mxu2 }
 0x689   :  { %v2534_v41 = vadd.f32 %v6879_v40, %v2533_v39  ;;  %v5695_v40 = vld [vmem:[%s8643_s15 + $0x1d0] sm:$0xf0] }
 0x68c   :  { %5556 = vmatmul.msk.f32.gmra.mxu3 %vm98_vm0, %v2538_v47 }
 0x694   :  { %5557 = vmatmul.msk.f32.gmra.mxu3 %vm98_vm0, %v2539_v48 }
 0x6ff   :  { %v2569_v50 = vpop.f32.mrf.mxu3 }
 0x707   :  { %v2572_v51 = vpop.f32.mrf.mxu3 }
 0x708   :  { %v2581_v52 = vmax.f32 %v2569_v50, %v2572_v51 }
 0x70a   :  { %v2582_v53 = vsub.f32 %v2569_v50, %v2581_v52  ;;  %v2585_v54 = vsub.f32 %v2572_v51, %v2581_v52  ;;  %v6880_v51 = vld [vmem:[%s8640_s12 + $0x1] ss:$0 sm:$0xff] }
 0x70c   :  { %v2583_v55 = vmul.f32 1.442695, %v2582_v53  ;;  %v2586_v58 = vmul.f32 1.442695, %v2585_v54 }
 0x70e   :  { %6908 = vpow2.f32 %v2583_v55 }
 0x70f   :  { %6910 = vpow2.f32 %v2586_v58  ;;  %v2575_v6 = vpop.f32.mrf.mxu3 }
 0x714   :  { %v6909_v59 = vpop.eup %6908 }
 0x715   :  { %v6911_v60 = vpop.eup %6910 }
 0x716   :  { %v2588_v61 = vadd.f32 %v6911_v60, %v6909_v59 }
 0x717   :  { %v2578_v62 = vpop.f32.mrf.mxu3 }
 0x718   :  { %6912 = vrcp.f32 %v2588_v61  ;;  %v2603_v63 = vmax.f32 %v2575_v6, %v2578_v62  ;;  %v2600_v8 = vand.u32 2147483648, %v2588_v61  ;;  %v2598_v10 = vand.u32 2147483647, %v2588_v61 }
 0x719   :  { %vm2594_vm11 = vweird.f32 %v2588_v61 }
 0x71a   :  { %v2604_v7 = vsub.f32 %v2575_v6, %v2603_v63  ;;  %v2607_v0 = vsub.f32 %v2578_v62, %v2603_v63  ;;  %v2601_v15 = vor.u32 1.1754944e-38, %v2600_v8  ;;  %vm2599_vm13 = vcmp.eq.f32.partialorder %v2598_v10, 8.507059e+37  ;;  %v6721_v8 = vld [vmem:[%s8643_s15 + $0x184] sm:$0xf] }
 0x71b   :  { %v5679_v10 = vld [vmem:[%s8643_s15 + $0x1c0] sm:$0xf0] }
 0x71c   :  { %v2605_v1 = vmul.f32 1.442695, %v2604_v7  ;;  %v2608_v45 = vmul.f32 1.442695, %v2607_v0 }
 0x71e   :  { %v6913_v2 = vpop.eup %6912  ;;  %6914 = vpow2.f32 %v2605_v1 }
 0x71f   :  { %v2590_v3 = vmul.f32 %v6913_v2, %v2588_v61  ;;  %6916 = vpow2.f32 %v2608_v45  ;;  %vm2595_vm10 = vweird.f32 %v6913_v2 }
 0x720   :  { %vm2596_vm12 = vmor %vm2594_vm11, %vm2595_vm10 }
 0x721   :  { %v2591_v49 = vsub.f32 1.0, %v2590_v3  ;;  %v5677_v3 = vld [vmem:[%s8643_s15 + $0x180] sm:$0xf] }
 0x723   :  { %v2592_v9 = vmul.f32 %v6913_v2, %v2591_v49  ;;  %v6729_v49 = vld [vmem:[%s8643_s15 + $0x1bc] sm:$0xf0] }
 0x724   :  { %v6915_v12 = vpop.eup %6914 }
 0x725   :  { %v2593_v13 = vadd.f32 %v6913_v2, %v2592_v9  ;;  %v6917_v14 = vpop.eup %6916  ;;  %v5678_v9 = vor.u32 %v6729_v49, %v5677_v3 }
 0x726   :  { %v2610_v17 = vadd.f32 %v6917_v14, %v6915_v12 }
 0x727   :  { %v2597_v16 = vsel %vm2596_vm12, %v6913_v2, %v2593_v13  ;;  %v5687_v13 = vld [vmem:[%s8643_s15 + $0x1c8] sm:$0xf0]  ;;  %2979 = vmatpush.bf16.msrb.mxu2 %v5678_v9 }
 0x728   :  { %v2602_v18 = vsel %vm2599_vm13, %v2601_v15, %v2597_v16  ;;  %6918 = vrcp.f32 %v2610_v17  ;;  %v2622_v23 = vand.u32 2147483648, %v2610_v17  ;;  %v2620_v25 = vand.u32 2147483647, %v2610_v17 }
 0x729   :  { %v2625_v19 = vmul.f32 %v6909_v59, %v2602_v18  ;;  %v2626_v22 = vmul.f32 %v6911_v60, %v2602_v18  ;;  %vm2616_vm15 = vweird.f32 %v2610_v17  ;;  %v5682_v15 = vor.u32 %v6721_v8, %v5679_v10  ;;  %v6731_v18 = vld [vmem:[%s8643_s15 + $0x1cc] sm:$0xf0] }
 0x72a   :  { %v2623_v27 = vor.u32 1.1754944e-38, %v2622_v23  ;;  %vm2621_vm3 = vcmp.eq.f32.partialorder %v2620_v25, 8.507059e+37  ;;  %v5615_v25 = vld [vmem:[%s8643_s15 + $0x140] sm:$0xf0] }
 0x72b   :  { %5559 = vmatmul.msk.f32.vlgmr.msra.gmra.mxu0 %vm277_vm6, %v2625_v19  ;;  %2993 = vmatpush.bf16.msrb.mxu1 %v5682_v15 }
 0x72e   :  { %v6919_v20 = vpop.eup %6918 }
 0x72f   :  { %v2612_v21 = vmul.f32 %v6919_v20, %v2610_v17  ;;  %vm2617_vm14 = vweird.f32 %v6919_v20  ;;  %v5693_v17 = vld [vmem:[%s8643_s15 + $0x190] sm:$0xf] }
 0x730   :  { %vm2618_vm2 = vmor %vm2616_vm15, %vm2617_vm14  ;;  %vm4777_vm15 = vcmask 130048  }
 0x731   :  { %v2613_v11 = vsub.f32 1.0, %v2612_v21  ;;  %v5613_v21 = vld [vmem:[%s8643_s15 + $0x100] sm:$0xf] }
 0x733   :  { %5560 = vmatmul.msk.f32.gmra.mxu0 %vm277_vm6, %v2626_v22  ;;  %v2614_v24 = vmul.f32 %v6919_v20, %v2613_v11  ;;  %v6713_v22 = vld [vmem:[%s8643_s15 + $0x13c] sm:$0xf0]  ;;  %v6705_v11 = vld [vmem:[%s8643_s15 + $0x104] sm:$0xf] }
 0x735   :  { %v2615_v26 = vadd.f32 %v6919_v20, %v2614_v24  ;;  %v5614_v24 = vor.u32 %v6713_v22, %v5613_v21  ;;  %v6725_v21 = vld [vmem:[%s8643_s15 + $0x1a4] sm:$0xf] }
 0x736   :  { %v5711_v22 = vld [vmem:[%s8643_s15 + $0x1e0] sm:$0xf0] }
 0x737   :  { %v2619_v28 = vsel %vm2618_vm2, %v6919_v20, %v2615_v26  ;;  %v5694_v20 = vor.u32 %v6731_v18, %v5693_v17  ;;  %v6706_v26 = vld [vmem:[%s8643_s15 + $0x10c] sm:$0xf]  ;;  %2980 = vmatpush.bf16.msrb.mxu2 %v5614_v24 }
 0x738   :  { %v2624_v29 = vsel %vm2621_vm3, %v2623_v27, %v2619_v28  ;;  %v5618_v27 = vor.u32 %v6705_v11, %v5615_v25  ;;  %v5623_v28 = vld [vmem:[%s8643_s15 + $0x148] sm:$0xf0]  ;;  %v5725_v25 = vld [vmem:[%s8643_s15 + $0x1b0] sm:$0xf] }
 0x739   :  { %v2627_v30 = vmul.f32 %v6915_v12, %v2624_v29  ;;  %v2628_v31 = vmul.f32 %v6917_v14, %v2624_v29  ;;  %v6722_v12 = vld [vmem:[%s8643_s15 + $0x18c] sm:$0xf]  ;;  %3035 = vmatpush.bf16.msrb.mxu0 %v5694_v20  ;;  %v5629_v29 = vld [vmem:[%s8643_s15 + $0x110] sm:$0xf]  ;;  %v5701_v20 = vld [vmem:[%s8643_s15 + $0x198] sm:$0xf] }
 0x73a   :  { %v5690_v16 = vor.u32 %v6722_v12, %v5687_v13  ;;  %2994 = vmatpush.bf16.msrb.mxu1 %v5618_v27  ;;  %v6881_v12 = vld [vmem:[%s8641_s13 + $0x1] ss:$0 sm:$0xff]  ;;  %v5719_v24 = vld [vmem:[%s8643_s15 + $0x1e8] sm:$0xf0]  ;;  %s8665_s13 = sld [smem:[#allocation9_spill]] }
 0x73b   :  { %5561 = vmatmul.msk.f32.gmra.mxu0 %vm277_vm6, %v2627_v30  ;;  %v6715_v30 = vld [vmem:[%s8643_s15 + $0x14c] sm:$0xf0] }
 0x73c   :  { %3021 = vmatpush.bf16.msra.mxu3 %v5690_v16  ;;  %v5630_v32 = vor.u32 %v6715_v30, %v5629_v29  ;;  %v6882_v16 = vld [vmem:[%s8642_s14 + $0x1] ss:$0 sm:$0xff]  ;;  %v5714_v29 = vor.u32 %v6725_v21, %v5711_v22  ;;  %v5637_v30 = vld [vmem:[%s8643_s15 + $0x118] sm:$0xf]  ;;  %v6759_v22 = vld [vmem:[%s8645_s17 + $0x4b0] sm:$0xff] }
 0x73d   :  { %v6748_v21 = vld [vmem:[%s8645_s17 + $0x458] sm:$0xff] }
 0x73e   :  { %3036 = vmatpush.bf16.msrb.mxu0 %v5630_v32 }
 0x743   :  { %5562 = vmatmul.msk.f32.gmra.mxu0 %vm277_vm6, %v2628_v31  ;;  %v5626_v31 = vor.u32 %v6706_v26, %v5623_v28  ;;  %v6735_v26 = vld [vmem:[%s8643_s15 + $0x1ec] sm:$0xf0] }
 0x745   :  { %3022 = vmatpush.bf16.msra.mxu3 %v5626_v31  ;;  %v6716_v31 = vld [vmem:[%s8643_s15 + $0x154] sm:$0xf0] }
 0x7a8   :  { %v2658_v36 = vpop.f32.mrf.mxu0 }
 0x7a9   :  { %v2670_v5 = vmul.f32 %v2658_v36, %v2532_v42  ;;  %v5685_v36 = vld [vmem:[%s8643_s15 + $0x188] sm:$0xf] }
 0x7b0   :  { %v2661_v37 = vpop.f32.mrf.mxu0 }
 0x7b1   :  { %v2671_v4 = vmul.f32 %v2661_v37, %v2534_v41  ;;  %v6730_v37 = vld [vmem:[%s8643_s15 + $0x1c4] sm:$0xf0] }
 0x7b2   :  { %v5686_v39 = vor.u32 %v6730_v37, %v5685_v36  ;;  %v6709_v36 = vld [vmem:[%s8643_s15 + $0x124] sm:$0xf] }
 0x7b3   :  { %v2672_v47 = vadd.f32 %v2671_v4, %v2670_v5  ;;  %v5698_v4 = vor.u32 %v6723_v38, %v5695_v40  ;;  %v5709_v5 = vld [vmem:[%s8643_s15 + $0x1a0] sm:$0xf]  ;;  %v5647_v37 = vld [vmem:[%s8643_s15 + $0x160] sm:$0xf0]  ;;  %v6710_v38 = vld [vmem:[%s8643_s15 + $0x12c] sm:$0xf] }
 0x7b4   :  { %3007 = vmatpush.bf16.msra.mxu2 %v5686_v39  ;;  %v5661_v39 = vld [vmem:[%s8643_s15 + $0x130] sm:$0xf] }
 0x7b5   :  { %v6719_v40 = vld [vmem:[%s8643_s15 + $0x16c] sm:$0xf0] }
 0x7b8   :  { %v2664_v56 = vpop.f32.mrf.mxu0 }
 0x7b9   :  { %v2673_v57 = vmul.f32 %v2664_v56, %v2532_v42  ;;  %v5703_v42 = vld [vmem:[%s8643_s15 + $0x1d8] sm:$0xf0] }
 0x7c0   :  { %v2667_v44 = vpop.f32.mrf.mxu0 }
 0x7c1   :  { %v2674_v46 = vmul.f32 %v2667_v44, %v2534_v41  ;;  %v6724_v41 = vld [vmem:[%s8643_s15 + $0x19c] sm:$0xf] }
 0x7c2   :  { %v5706_v44 = vor.u32 %v6724_v41, %v5703_v42  ;;  %v5638_v41 = vor.u32 %v6716_v31, %v5637_v30  ;;  %v5650_v42 = vor.u32 %v6709_v36, %v5647_v37  ;;  %v6757_v30 = vld [vmem:[%s8645_s17 + $0x4a0] sm:$0xff]  ;;  %v6784_v36 = vld [vmem:[%s8645_s17 + $0x578] sm:$0xff] }
 0x7c3   :  { %v2675_v48 = vadd.f32 %v2674_v46, %v2673_v57  ;;  %v6733_v57 = vld [vmem:[%s8643_s15 + $0x1dc] sm:$0xf0]  ;;  %v5621_v46 = vld [vmem:[%s8643_s15 + $0x108] sm:$0xf]  ;;  %v6756_v37 = vld [vmem:[%s8645_s17 + $0x498] sm:$0xff] }
 0x7c4   :  { %3077 = vmatpush.bf16.msrb.mxu3 %v5706_v44  ;;  %v5662_v44 = vor.u32 %v6719_v40, %v5661_v39  ;;  %v6737_v31 = vld [vmem:[%s8645_s17 + $0x400] sm:$0xff]  ;;  %v6783_v39 = vld [vmem:[%s8645_s17 + $0x570] sm:$0xff] }
 0x7c5   :  { %v2676_v50 = vpack.c.bf16 %v2675_v48, %v2672_v47  ;;  %v6763_v40 = vld [vmem:[%s8645_s17 + $0x4d0] sm:$0xff] }
 0x7c7   :  { %5576 = vmatmul.msk.bf16.vlgmr.msra.gmra.mxu1 %vm98_vm0, %v2676_v50  ;;  %v5710_v50 = vor.u32 %v6733_v57, %v5709_v5  ;;  %v5717_v5 = vld [vmem:[%s8643_s15 + $0x1a8] sm:$0xf] }
 0x7c8   :  { %3049 = vmatpush.bf16.msra.mxu1 %v5698_v4  ;;  %v6734_v57 = vld [vmem:[%s8643_s15 + $0x1e4] sm:$0xf0] }
 0x7c9   :  { %3091 = vmatpush.bf16.msra.mxu0 %v5710_v50  ;;  %v5735_v50 = vld [vmem:[%s8643_s15 + $0x1f8] sm:$0xf0] }
 0x844   :  { %v2711_v52 = vpop.f32.mrf.mxu1 }
 0x845   :  { %v2712_v53 = vadd.f32 %v6880_v51, %v2711_v52  ;;  %v6707_v52 = vld [vmem:[%s8643_s15 + $0x114] sm:$0xf] }
 0x847   :  { %v2716_v54 = vadd.f32 %v2712_v53, %v7883_v34 }
 0x849   :  { %v2722_v55 = vsel %vm98_vm0, %v2716_v54, 0.0 }
 0x84a   :  { %2723 = vadd.xlane.f32.xlu2 %v2722_v55  ;;  %v5631_v55 = vld [vmem:[%s8643_s15 + $0x150] sm:$0xf0] }
 0x84c   :  { %v2713_v58 = vpop.f32.mrf.mxu1 }
 0x84d   :  { %v2714_v6 = vadd.f32 %v6880_v51, %v2713_v58  ;;  %v6714_v51 = vld [vmem:[%s8643_s15 + $0x144] sm:$0xf0]  ;;  %v6708_v58 = vld [vmem:[%s8643_s15 + $0x11c] sm:$0xf] }
 0x84f   :  { %v2717_v59 = vadd.f32 %v2714_v6, %v7885_v35  ;;  %v5639_v6 = vld [vmem:[%s8643_s15 + $0x158] sm:$0xf0] }
 0x851   :  { %v2725_v60 = vsel %vm98_vm0, %v2717_v59, 0.0 }
 0x852   :  { %2726 = vadd.xlane.f32.xlu0 %v2725_v60  ;;  %v5642_v60 = vor.u32 %v6708_v58, %v5639_v6  ;;  %v6711_v58 = vld [vmem:[%s8643_s15 + $0x134] sm:$0xf] }
 0x853   :  { %v5663_v6 = vld [vmem:[%s8643_s15 + $0x170] sm:$0xf0] }
 0x854   :  { %3078 = vmatpush.bf16.msrb.mxu3 %v5642_v60  ;;  %v5671_v60 = vld [vmem:[%s8643_s15 + $0x178] sm:$0xf0] }
 0x8bd   :  { %v2724_v61 = vpop.xlane.xlu2 %2723 }
 0x8be   :  { %v2728_v62 = vmul.f32 %v2724_v61, %v7152_v43  ;;  %v5645_v61 = vld [vmem:[%s8643_s15 + $0x120] sm:$0xf] }
 0x8c0   :  { %v7924_v63 = vsub.f32 %v2716_v54, %v2728_v62  ;;  %v5622_v54 = vor.u32 %v6714_v51, %v5621_v46  ;;  %v6717_v62 = vld [vmem:[%s8643_s15 + $0x15c] sm:$0xf0]  ;;  %v6727_v46 = vld [vmem:[%s8643_s15 + $0x1b4] sm:$0xf]  ;;  %v5718_v51 = vor.u32 %v6734_v57, %v5717_v5 }
 0x8c1   :  { %v6773_v5 = vld [vmem:[%s8645_s17 + $0x520] sm:$0xff] }
 0x8c2   :  { %v2732_v7 = vmul.f32 %v7924_v63, %v7924_v63  ;;  %3008 = vmatpush.bf16.msra.mxu2 %v5622_v54  ;;  %v6781_v57 = vld [vmem:[%s8645_s17 + $0x560] sm:$0xff] }
 0x8c4   :  { %v2734_v34 = vsel %vm98_vm0, %v2732_v7, 0.0 }
 0x8c5   :  { %v2727_v0 = vpop.xlane.xlu0 %2726  ;;  %2735 = vadd.xlane.f32.xlu1 %v2734_v34  ;;  %v5646_v34 = vor.u32 %v6717_v62, %v5645_v61  ;;  %v5666_v62 = vor.u32 %v6711_v58, %v5663_v6  ;;  %v6799_v58 = vld [vmem:[%s8645_s17 + $0x5f0] sm:$0xff]  ;;  %v6770_v6 = vld [vmem:[%s8645_s17 + $0x508] sm:$0xff] }
 0x8c6   :  { %v2729_v1 = vmul.f32 %v2727_v0, %v7152_v43 }
 0x8c7   :  { %3092 = vmatpush.bf16.msra.mxu0 %v5646_v34  ;;  %v5733_v34 = vld [vmem:[%s8643_s15 + $0x1b8] sm:$0xf] }
 0x8c8   :  { %v7930_v45 = vsub.f32 %v2717_v59, %v2729_v1  ;;  %v5634_v59 = vor.u32 %v6707_v52, %v5631_v55  ;;  %v6718_v55 = vld [vmem:[%s8643_s15 + $0x164] sm:$0xf0] }
 0x8ca   :  { %v2733_v35 = vmul.f32 %v7930_v45, %v7930_v45  ;;  %3050 = vmatpush.bf16.msra.mxu1 %v5634_v59  ;;  %v6712_v59 = vld [vmem:[%s8643_s15 + $0x13c] sm:$0xf] }
 0x8cc   :  { %v2737_v2 = vsel %vm98_vm0, %v2733_v35, 0.0 }
 0x8cd   :  { %2738 = vadd.xlane.f32.xlu2 %v2737_v2 }
 0x938   :  { %v2736_v14 = vpop.xlane.xlu1 %2735 }
 0x939   :  { %v2740_v19 = vmul.f32 %v2736_v14, %v7152_v43 }
 0x93b   :  { %v7969_v23 = vadd.f32 1e-05, %v2740_v19 }
 0x93d   :  { %6920 = vrsqrt.f32 %v7969_v23  ;;  %vm2750_vm4 = vweird.f32 %v7969_v23 }
 0x940   :  { %v2739_v33 = vpop.xlane.xlu2 %2738 }
 0x941   :  { %v2741_v56 = vmul.f32 %v2739_v33, %v7152_v43  ;;  %v5726_v33 = vor.u32 %v6735_v26, %v5725_v25  ;;  %v6747_v25 = vld [vmem:[%s8645_s17 + $0x450] sm:$0xff]  ;;  %v6758_v26 = vld [vmem:[%s8645_s17 + $0x4a8] sm:$0xff] }
 0x943   :  { %v6921_v47 = vpop.eup %6920  ;;  %v2743_v48 = vadd.f32 1e-05, %v2741_v56  ;;  %v5655_v56 = vld [vmem:[%s8643_s15 + $0x168] sm:$0xf0] }
 0x944   :  { %v2745_v53 = vmul.f32 %v6921_v47, %v7969_v23  ;;  %vm2751_vm6 = vweird.f32 %v6921_v47  ;;  %v5658_v4 = vor.u32 %v6710_v38, %v5655_v56  ;;  %v5755_v38 = vld [vmem:[%s8644_s16 + $0x10] sm:$0xff] }
 0x945   :  { %6922 = vrsqrt.f32 %v2743_v48  ;;  %vm2752_vm5 = vmor %vm2750_vm4, %vm2751_vm6  ;;  %vm2760_vm1 = vweird.f32 %v2743_v48  ;;  %3217 = vst [vmem:[#allocation1] ss:$9 sm:$0xff] %v5755_v38  ;;  %v6775_v56 = vld [vmem:[%s8645_s17 + $0x530] sm:$0xff] }
 0x946   :  { %v2746_v7 = vmul.f32 %v6921_v47, %v2745_v53  ;;  %v5653_v53 = vld [vmem:[%s8643_s15 + $0x128] sm:$0xf] }
 0x947   :  { %v5654_v61 = vor.u32 %v6718_v55, %v5653_v53  ;;  %v6771_v53 = vld [vmem:[%s8645_s17 + $0x510] sm:$0xff] }
 0x948   :  { %v2747_v0 = vmul.f32 0.5, %v2746_v7  ;;  %v5674_v7 = vor.u32 %v6712_v59, %v5671_v60  ;;  %v6791_v55 = vld [vmem:[%s8645_s17 + $0x5b0] sm:$0xff]  ;;  %v6778_v59 = vld [vmem:[%s8645_s17 + $0x548] sm:$0xff] }
 0x949   :  { %v6790_v60 = vld [vmem:[%s8645_s17 + $0x5a8] sm:$0xff] }
 0x94a   :  { %v2748_v1 = vsub.f32 1.5, %v2747_v0  ;;  %v6736_v0 = vld [vmem:[%s8643_s15 + $0x1f4] sm:$0xf0] }
 0x94b   :  { %v6923_v35 = vpop.eup %6922 }
 0x94c   :  { %v2749_v2 = vmul.f32 %v6921_v47, %v2748_v1  ;;  %v2755_v3 = vmul.f32 %v6923_v35, %v2743_v48  ;;  %vm2761_vm7 = vweird.f32 %v6923_v35  ;;  %v6728_v48 = vld [vmem:[%s8643_s15 + $0x1bc] sm:$0xf]  ;;  %v5734_v1 = vor.u32 %v6736_v0, %v5733_v34  ;;  %v8341_v34 = vld [vmem:[#allocation1 + $0x24] sm:$0xff]  ;;  %v8343_v0 = vld [vmem:[#allocation1 + $0x2d] sm:$0xff] }
 0x94d   :  { %vm2762_vm8 = vmor %vm2760_vm1, %vm2761_vm7  ;;  %v5738_v54 = vor.u32 %v6728_v48, %v5735_v50  ;;  %v6772_v48 = vld [vmem:[%s8645_s17 + $0x518] sm:$0xff] }
 0x94e   :  { %v2756_v49 = vmul.f32 %v6923_v35, %v2755_v3  ;;  %v2753_v8 = vsel %vm2752_vm5, %v6921_v47, %v2749_v2  ;;  %v5727_v47 = vld [vmem:[%s8643_s15 + $0x1f0] sm:$0xf0]  ;;  %v6720_v2 = vld [vmem:[%s8643_s15 + $0x174] sm:$0xf0] }
 0x94f   :  { %v2764_v13 = vmul.f32 %v2753_v8, %v7924_v63  ;;  %v6732_v63 = vld [vmem:[%s8643_s15 + $0x1d4] sm:$0xf0]  ;;  %v5730_v52 = vor.u32 %v6727_v46, %v5727_v47  ;;  %v6753_v46 = vld [vmem:[%s8645_s17 + $0x480] sm:$0xff] }
 0x950   :  { %v2757_v9 = vmul.f32 0.5, %v2756_v49  ;;  %v5702_v28 = vor.u32 %v6732_v63, %v5701_v20  ;;  %v6744_v3 = vld [vmem:[%s8645_s17 + $0x438] sm:$0xff]  ;;  %v6765_v63 = vld [vmem:[%s8645_s17 + $0x4e0] sm:$0xff] }
 0x951   :  { %v2769_v17 = vmul.f32 %v6881_v12, %v2764_v13  ;;  %v6752_v49 = vld [vmem:[%s8645_s17 + $0x478] sm:$0xff]  ;;  %v6767_v13 = vld [vmem:[%s8645_s17 + $0x4f0] sm:$0xff]  ;;  %v6761_v47 = vld [vmem:[%s8645_s17 + $0x4c0] sm:$0xff] }
 0x952   :  { %v2758_v10 = vsub.f32 1.5, %v2757_v9  ;;  %v6743_v9 = vld [vmem:[%s8645_s17 + $0x430] sm:$0xff]  ;;  %v6740_v20 = vld [vmem:[%s8645_s17 + $0x418] sm:$0xff] }
 0x953   :  { %v8061_v11 = vadd.f32 %v6882_v16, %v2769_v17  ;;  %v6741_v17 = vld [vmem:[%s8645_s17 + $0x420] sm:$0xff]  ;;  %v6780_v50 = vld [vmem:[%s8645_s17 + $0x558] sm:$0xff] }
 0x954   :  { %v2759_v14 = vmul.f32 %v6923_v35, %v2758_v10  ;;  %v6751_v10 = vld [vmem:[%s8645_s17 + $0x470] sm:$0xff] }
 0x956   :  { %v2763_v15 = vsel %vm2762_vm8, %v6923_v35, %v2759_v14  ;;  %v5669_v35 = vld [vmem:[%s8643_s15 + $0x138] sm:$0xf]  ;;  %v6742_v14 = vld [vmem:[%s8645_s17 + $0x428] sm:$0xff] }
 0x957   :  { %v2765_v18 = vmul.f32 %v2763_v15, %v7930_v45  ;;  %v6726_v45 = vld [vmem:[%s8643_s15 + $0x1ac] sm:$0xf]  ;;  %v5670_v8 = vor.u32 %v6720_v2, %v5669_v35  ;;  %v6777_v35 = vld [vmem:[%s8645_s17 + $0x540] sm:$0xff] }
 0x958   :  { %v5722_v32 = vor.u32 %v6726_v45, %v5719_v24  ;;  %v6750_v15 = vld [vmem:[%s8645_s17 + $0x468] sm:$0xff]  ;;  %v6739_v45 = vld [vmem:[%s8645_s17 + $0x410] sm:$0xff]  ;;  %v6764_v24 = vld [vmem:[%s8645_s17 + $0x4d8] sm:$0xff] }
 0x959   :  { %v2770_v19 = vmul.f32 %v6881_v12, %v2765_v18  ;;  %v6768_v12 = vld [vmem:[%s8645_s17 + $0x4f8] sm:$0xff]  ;;  %v6749_v18 = vld [vmem:[%s8645_s17 + $0x460] sm:$0xff] }
 0x95a   :  { %v6789_v2 = vld [vmem:[%s8645_s17 + $0x5a0] sm:$0xff] }
 0x95b   :  { %v8063_v23 = vadd.f32 %v6882_v16, %v2770_v19  ;;  %v6766_v16 = vld [vmem:[%s8645_s17 + $0x4e8] sm:$0xff]  ;;  %v6760_v19 = vld [vmem:[%s8645_s17 + $0x4b8] sm:$0xff] }
 0x95d   :  { %v8076_v27 = vpack.c.bf16 %v8063_v23, %v8061_v11 }
 0x95f   :  { %5739 = vmatmul.msk.bf16.vlgmr.msrb.gmra.mxu2 %vm98_vm0, %v8076_v27  ;;  %5740 = vmatmul.msk.bf16.vlgmr.msrb.gmra.mxu1 %vm98_vm0, %v8076_v27 }
 0x960   :  { %5742 = vmatmul.msk.bf16.vlgmr.msra.gmra.mxu3 %vm98_vm0, %v8076_v27  ;;  %5743 = vmatmul.msk.bf16.vlgmr.msrb.gmra.mxu0 %vm98_vm0, %v8076_v27 }
 0x961   :  { %3063 = vmatpush.bf16.msrb.mxu2 %v5702_v28  ;;  %3105 = vmatpush.bf16.msrb.mxu1 %v5714_v29  ;;  %v6738_v28 = vld [vmem:[%s8645_s17 + $0x408] sm:$0xff] }
 0x962   :  { %3133 = vmatpush.bf16.msra.mxu3 %v5722_v32  ;;  %3147 = vmatpush.bf16.msrb.mxu0 %v5726_v33  ;;  %v6746_v29 = vld [vmem:[%s8645_s17 + $0x448] sm:$0xff]  ;;  %v6745_v32 = vld [vmem:[%s8645_s17 + $0x440] sm:$0xff]  ;;  %v6776_v33 = vld [vmem:[%s8645_s17 + $0x538] sm:$0xff] }
 0x965   :  { %3064 = vmatpush.bf16.msrb.mxu2 %v5638_v41  ;;  %3106 = vmatpush.bf16.msrb.mxu1 %v5650_v42  ;;  %v6774_v41 = vld [vmem:[%s8645_s17 + $0x528] sm:$0xff] }
 0x966   :  { %3134 = vmatpush.bf16.msra.mxu3 %v5658_v4  ;;  %3148 = vmatpush.bf16.msrb.mxu0 %v5662_v44  ;;  %v6782_v42 = vld [vmem:[%s8645_s17 + $0x568] sm:$0xff] }
 0x967   :  { %v6754_v4 = vld [vmem:[%s8645_s17 + $0x488] sm:$0xff] }
 0x968   :  { %v6762_v44 = vld [vmem:[%s8645_s17 + $0x4c8] sm:$0xff] }
 0x96f   :  { %5741 = vmatmul.msk.bf16.vlgmr.msra.gmra.mxu2 %vm98_vm0, %v8076_v27  ;;  %5744 = vmatmul.msk.bf16.vlgmr.msra.gmra.mxu1 %vm98_vm0, %v8076_v27 }
 0x970   :  { %5746 = vmatmul.msk.bf16.vlgmr.msrb.gmra.mxu3 %vm98_vm0, %v8076_v27  ;;  %5747 = vmatmul.msk.bf16.vlgmr.msra.gmra.mxu0 %vm98_vm0, %v8076_v27 }
 0x971   :  { %3119 = vmatpush.bf16.msra.mxu2 %v5718_v51  ;;  %3161 = vmatpush.bf16.msra.mxu1 %v5730_v52  ;;  %v6792_v51 = vld [vmem:[%s8645_s17 + $0x5b8] sm:$0xff] }
 0x972   :  { %3189 = vmatpush.bf16.msrb.mxu3 %v5738_v54  ;;  %4490 = vmatpush.bf16.msra.mxu0 %v6744_v3  ;;  %v6800_v52 = vld [vmem:[%s8645_s17 + $0x5f8] sm:$0xff]  ;;  %v6779_v54 = vld [vmem:[%s8645_s17 + $0x550] sm:$0xff] }
 0x973   :  { %v8354_v3 = vld [vmem:[#allocation1 + $0x12] sm:$0xff] }
 0x975   :  { %3120 = vmatpush.bf16.msra.mxu2 %v5654_v61  ;;  %3162 = vmatpush.bf16.msra.mxu1 %v5666_v62  ;;  %v6798_v61 = vld [vmem:[%s8645_s17 + $0x5e8] sm:$0xff]  ;;  %v3218_v62 = vld [vmem:[#allocation1] sm:$0xff] }
 0x976   :  { %3190 = vmatpush.bf16.msrb.mxu3 %v5674_v7  ;;  %4491 = vmatpush.bf16.msra.mxu0 %v6743_v9  ;;  %v3219_v7 = vld [vmem:[#allocation1 + $0x9] sm:$0xff]  ;;  %v5756_v9 = vld [vmem:[%s8644_s16 + $0x18] sm:$0xff] }
 0x97a   :  { %4492 = vmatpush.bf16.msra.mxu0 %v6742_v14  ;;  %v6796_v14 = vld [vmem:[%s8645_s17 + $0x5d8] sm:$0xff] }
 0x97e   :  { %4493 = vmatpush.bf16.msra.mxu0 %v6741_v17 }
 0x97f   :  { %5745 = vmatmul.msk.bf16.vlgmr.msrb.gmra.mxu2 %vm98_vm0, %v8076_v27  ;;  %5748 = vmatmul.msk.bf16.vlgmr.msrb.gmra.mxu1 %vm98_vm0, %v8076_v27 }
 0x980   :  { %5750 = vmatmul.msk.bf16.vlgmr.msra.gmra.mxu3 %vm98_vm0, %v8076_v27  ;;  %5751 = vmatmul.msk.bf16.vlgmr.msrb.gmra.mxu0 %vm98_vm0, %v8076_v27 }
 0x981   :  { %3175 = vmatpush.bf16.msrb.mxu2 %v5734_v1  ;;  %4504 = vmatpush.bf16.msrb.mxu1 %v6752_v49  ;;  %v6769_v1 = vld [vmem:[%s8645_s17 + $0x500] sm:$0xff] }
 0x982   :  { %4532 = vmatpush.bf16.msra.mxu3 %v6768_v12  ;;  %4494 = vmatpush.bf16.msra.mxu0 %v6740_v20  ;;  %v8356_v49 = vld [vmem:[#allocation1 + $0x1b] sm:$0xff]  ;;  %v3236_v20 = vpack.i.b16 %v3218_v62, %v3218_v62 }
 0x983   :  { %v8366_v12 = vld [vmem:[#allocation1 + $0x3f] sm:$0xff] }
 0x985   :  { %3176 = vmatpush.bf16.msrb.mxu2 %v5670_v8  ;;  %4505 = vmatpush.bf16.msrb.mxu1 %v6751_v10  ;;  %v6797_v8 = vld [vmem:[%s8645_s17 + $0x5e0] sm:$0xff]  ;;  %v8364_v10 = vld [vmem:[#allocation1 + $0x36] sm:$0xff] }
 0x986   :  { %4533 = vmatpush.bf16.msra.mxu3 %v6767_v13  ;;  %4495 = vmatpush.bf16.msra.mxu0 %v6739_v45  ;;  %3227 = vst [vmem:[#allocation1] ss:$9 sm:$0xff] %v5756_v9  ;;  %v6788_v13 = vld [vmem:[%s8645_s17 + $0x598] sm:$0xff]  ;;  %v6793_v45 = vld [vmem:[%s8645_s17 + $0x5c0] sm:$0xff] }
 0x989   :  { %4506 = vmatpush.bf16.msrb.mxu1 %v6750_v15  ;;  %v6787_v15 = vld [vmem:[%s8645_s17 + $0x590] sm:$0xff] }
 0x98a   :  { %4534 = vmatpush.bf16.msra.mxu3 %v6766_v16  ;;  %4496 = vmatpush.bf16.msra.mxu0 %v6738_v28  ;;  %v6795_v16 = vld [vmem:[%s8645_s17 + $0x5d0] sm:$0xff] }
 0x98d   :  { %4507 = vmatpush.bf16.msrb.mxu1 %v6749_v18  ;;  %v6786_v18 = vld [vmem:[%s8645_s17 + $0x588] sm:$0xff] }
 0x98e   :  { %4535 = vmatpush.bf16.msra.mxu3 %v6765_v63  ;;  %4497 = vmatpush.bf16.msra.mxu0 %v6737_v31  ;;  %v3239_v63 = vpack.i.b16 %v3219_v7, %v3219_v7 }
 0x98f   :  { %5749 = vmatmul.msk.bf16.vlgmr.msra.gmra.mxu2 %vm98_vm0, %v8076_v27  ;;  %5752 = vmatmul.msk.bf16.vlgmr.msra.gmra.mxu1 %vm98_vm0, %v8076_v27 }
 0x990   :  { %5754 = vmatmul.msk.bf16.vlgmr.msrb.gmra.mxu3 %vm98_vm0, %v8076_v27  ;;  %4518 = vmatpush.bf16.msra.mxu2 %v6760_v19  ;;  %v6794_v19 = vld [vmem:[%s8645_s17 + $0x5c8] sm:$0xff]  ;;  %v3241_v28 = vperm.slane %v3239_v63, 0 }
 0x991   :  { %4508 = vmatpush.bf16.msrb.mxu1 %v6748_v21 }
 0x992   :  { %4536 = vmatpush.bf16.msra.mxu3 %v6764_v24  ;;  %4546 = vmatpush.bf16.msrb.mxu0 %v6776_v33 }
 0x994   :  { %4519 = vmatpush.bf16.msra.mxu2 %v6759_v22  ;;  %v6785_v22 = vld [vmem:[%s8645_s17 + $0x580] sm:$0xff] }
 0x995   :  { %4509 = vmatpush.bf16.msrb.mxu1 %v6747_v25 }
 0x996   :  { %4547 = vmatpush.bf16.msrb.mxu0 %v6775_v56  ;;  %4537 = vmatpush.bf16.msra.mxu3 %v6763_v40 }
 0x998   :  { %4520 = vmatpush.bf16.msra.mxu2 %v6758_v26  ;;  %v3238_v26 = vperm.slane %v3236_v20, 0 }
 0x999   :  { %4510 = vmatpush.bf16.msrb.mxu1 %v6746_v29 }
 0x99a   :  { %4548 = vmatpush.bf16.msrb.mxu0 %v6774_v41  ;;  %4538 = vmatpush.bf16.msra.mxu3 %v6762_v44  ;;  %v3316_v33 = vunpack.c.l.bf16 %v3238_v26 }
 0x99c   :  { %4521 = vmatpush.bf16.msra.mxu2 %v6757_v30 }
 0x99d   :  { %4511 = vmatpush.bf16.msrb.mxu1 %v6745_v32 }
 0x99e   :  { %4549 = vmatpush.bf16.msrb.mxu0 %v6773_v5  ;;  %4539 = vmatpush.bf16.msra.mxu3 %v6761_v47  ;;  %v3242_v5 = vpack.i.b16 %v8354_v3, %v8354_v3  ;;  %v6815_v3 = vld [vmem:[%s8645_s17 + $0x670] sm:$0xff] }
 0x99f   :  { %5753 = vmatmul.msk.bf16.vlgmr.msrb.gmra.mxu2 %vm98_vm0, %v8076_v27  ;;  %v6755_v27 = vld [vmem:[%s8645_s17 + $0x490] sm:$0xff] }
 0x9a0   :  { %4522 = vmatpush.bf16.msra.mxu2 %v6756_v37  ;;  %v3244_v62 = vperm.slane %v3242_v5, 0 }
 0x9a1   :  { %4560 = vmatpush.bf16.msra.mxu1 %v6784_v36  ;;  %v3317_v36 = vunpack.c.l.bf16 %v3241_v28 }
 0x9a2   :  { %4550 = vmatpush.bf16.msrb.mxu0 %v6772_v48  ;;  %4588 = vmatpush.bf16.msrb.mxu3 %v6800_v52  ;;  %v3248_v52 = vpack.i.b16 %v8341_v34, %v8341_v34 }
 0x9a4   :  { %4523 = vmatpush.bf16.msra.mxu2 %v6755_v27 }
 0x9a5   :  { %4561 = vmatpush.bf16.msra.mxu1 %v6783_v39 }
 0x9a6   :  { %4551 = vmatpush.bf16.msrb.mxu0 %v6771_v53  ;;  %4589 = vmatpush.bf16.msrb.mxu3 %v6799_v58  ;;  %v3251_v53 = vpack.i.b16 %v8343_v0, %v8343_v0  ;;  %v6816_v58 = vld [vmem:[%s8645_s17 + $0x678] sm:$0xff]  ;;  %v3250_v0 = vperm.slane %v3248_v52, 0 }
 0x9a8   :  { %4524 = vmatpush.bf16.msra.mxu2 %v6754_v4 }
 0x9a9   :  { %4562 = vmatpush.bf16.msra.mxu1 %v6782_v42 }
 0x9aa   :  { %4552 = vmatpush.bf16.msrb.mxu0 %v6770_v6  ;;  %4590 = vmatpush.bf16.msrb.mxu3 %v6798_v61 }
 0x9ac   :  { %4525 = vmatpush.bf16.msra.mxu2 %v6753_v46 }
 0x9ad   :  { %4563 = vmatpush.bf16.msra.mxu1 %v6781_v57  ;;  %v3245_v57 = vpack.i.b16 %v8356_v49, %v8356_v49 }
 0x9ae   :  { %4553 = vmatpush.bf16.msrb.mxu0 %v6769_v1  ;;  %4591 = vmatpush.bf16.msrb.mxu3 %v6797_v8 }
 0x9af   :  { %v3247_v7 = vperm.slane %v3245_v57, 0 }
 0x9b0   :  { %4574 = vmatpush.bf16.msrb.mxu2 %v6792_v51 }
 0x9b1   :  { %4564 = vmatpush.bf16.msra.mxu1 %v6780_v50 }
 0x9b2   :  { %4592 = vmatpush.bf16.msrb.mxu3 %v6796_v14  ;;  %v3318_v14 = vunpack.c.l.bf16 %v3244_v62 }
 0x9b4   :  { %4575 = vmatpush.bf16.msrb.mxu2 %v6791_v55  ;;  %v6808_v55 = vld [vmem:[%s8645_s17 + $0x638] sm:$0xff] }
 0x9b5   :  { %4565 = vmatpush.bf16.msra.mxu1 %v6779_v54 }
 0x9b6   :  { %4593 = vmatpush.bf16.msrb.mxu3 %v6795_v16 }
 0x9b8   :  { %4576 = vmatpush.bf16.msrb.mxu2 %v6790_v60 }
 0x9b9   :  { %4566 = vmatpush.bf16.msra.mxu1 %v6778_v59 }
 0x9ba   :  { %4594 = vmatpush.bf16.msrb.mxu3 %v6794_v19 }
 0x9bc   :  { %4577 = vmatpush.bf16.msrb.mxu2 %v6789_v2  ;;  %v6807_v2 = vld [vmem:[%s8645_s17 + $0x630] sm:$0xff] }
 0x9bd   :  { %4567 = vmatpush.bf16.msra.mxu1 %v6777_v35  ;;  %v3253_v35 = vperm.slane %v3251_v53, 0 }
 0x9be   :  { %4595 = vmatpush.bf16.msrb.mxu3 %v6793_v45 }
 0x9bf   :  { %v3321_v19 = vunpack.c.l.bf16 %v3253_v35 }
 0x9c0   :  { %4578 = vmatpush.bf16.msrb.mxu2 %v6788_v13 }
 0x9c4   :  { %4579 = vmatpush.bf16.msrb.mxu2 %v6787_v15  ;;  %v3319_v15 = vunpack.c.l.bf16 %v3247_v7 }
 0x9c8   :  { %4580 = vmatpush.bf16.msrb.mxu2 %v6786_v18  ;;  %v3320_v18 = vunpack.c.l.bf16 %v3250_v0 }
 0x9cc   :  { %4581 = vmatpush.bf16.msrb.mxu2 %v6785_v22  ;;  %v6814_v22 = vld [vmem:[%s8645_s17 + $0x668] sm:$0xff] }
 0x9dc   :  { %v2996_v17 = vpop.f32.mrf.mxu1 }
 0x9dd   :  { %v3038_v29 = vpop.f32.mrf.mxu0 }
 0x9e2   :  { %v2982_v21 = vpop.f32.mrf.mxu2 }
 0x9e3   :  { %v3197_v25 = vpack.c.bf16 %v2996_v17, %v2982_v21  ;;  %v3024_v30 = vpop.f32.mrf.mxu3  ;;  %v6806_v21 = vld [vmem:[%s8645_s17 + $0x628] sm:$0xff] }
 0x9e4   :  { %v2998_v24 = vpop.f32.mrf.mxu1 }
 0x9e5   :  { %v3284_v31 = vunpack.c.l.bf16 %v3197_v25  ;;  %v3285_v32 = vunpack.c.h.bf16 %v3197_v25  ;;  %v3040_v44 = vpop.f32.mrf.mxu0 }
 0x9e7   :  { %v3332_v39 = vadd.f32 %v3316_v33, %v3284_v31  ;;  %v3333_v27 = vadd.f32 %v3317_v36, %v3285_v32 }
 0x9e9   :  { %v3412_v46 = vmax.f32 %v3332_v39, 0.0  ;;  %v3413_v47 = vmax.f32 %v3333_v27, 0.0  ;;  %v3228_v27 = vld [vmem:[#allocation1] sm:$0xff] }
 0x9ea   :  { %v2984_v37 = vpop.f32.mrf.mxu2 }
 0x9eb   :  { %v3205_v38 = vpack.c.bf16 %v2998_v24, %v2984_v37  ;;  %v3026_v51 = vpop.f32.mrf.mxu3  ;;  %v6805_v37 = vld [vmem:[%s8645_s17 + $0x620] sm:$0xff] }
 0x9ec   :  { %v3052_v56 = vpop.f32.mrf.mxu1 }
 0x9ed   :  { %v3300_v40 = vunpack.c.l.bf16 %v3205_v38  ;;  %v3301_v41 = vunpack.c.h.bf16 %v3205_v38  ;;  %v3199_v34 = vpack.c.bf16 %v3052_v56, %v3038_v29  ;;  %v3094_v20 = vpop.f32.mrf.mxu0  ;;  %v6813_v38 = vld [vmem:[%s8645_s17 + $0x660] sm:$0xff] }
 0x9ef   :  { %v3348_v42 = vadd.f32 %v3316_v33, %v3300_v40  ;;  %v3349_v4 = vadd.f32 %v3317_v36, %v3301_v41  ;;  %v3288_v16 = vunpack.c.l.bf16 %v3199_v34  ;;  %v3289_v17 = vunpack.c.h.bf16 %v3199_v34  ;;  %v6832_v34 = vld [vmem:[%s8645_s17 + $0x6f8] sm:$0xff] }
 0x9f0   :  { %v3254_v40 = vpack.i.b16 %v8364_v10, %v8364_v10 }
 0x9f1   :  { %v3428_v48 = vmax.f32 %v3348_v42, 0.0  ;;  %v3429_v50 = vmax.f32 %v3349_v4, 0.0  ;;  %v3336_v33 = vadd.f32 %v3320_v18, %v3288_v16  ;;  %v3337_v36 = vadd.f32 %v3321_v19, %v3289_v17  ;;  %v3229_v4 = vld [vmem:[#allocation1 + $0x9] sm:$0xff] }
 0x9f2   :  { %v3010_v54 = vpop.f32.mrf.mxu2  ;;  %v3256_v10 = vperm.slane %v3254_v40, 0  ;;  %v6823_v17 = vld [vmem:[%s8645_s17 + $0x6b0] sm:$0xff] }
 0x9f3   :  { %v3444_v6 = vpack.c.bf16 %v3428_v48, %v3412_v46  ;;  %v3445_v59 = vpack.c.bf16 %v3429_v50, %v3413_v47  ;;  %v3198_v61 = vpack.c.bf16 %v3024_v30, %v3010_v54  ;;  %v3080_v24 = vpop.f32.mrf.mxu3  ;;  %v3416_v48 = vmax.f32 %v3336_v33, 0.0 }
 0x9f4   :  { %v3054_v60 = vpop.f32.mrf.mxu1  ;;  %v3417_v50 = vmax.f32 %v3337_v36, 0.0 }
 0x9f5   :  { %v3207_v1 = vpack.c.bf16 %v3054_v60, %v3040_v44  ;;  %4498 = vmatmul.bf16.vlgmr.msra.gmra.mxu0 %v3444_v6  ;;  %4512 = vmatmul.bf16.vlgmr.msrb.gmra.mxu1 %v3445_v59  ;;  %v3286_v9 = vunpack.c.l.bf16 %v3198_v61  ;;  %v3287_v13 = vunpack.c.h.bf16 %v3198_v61  ;;  %v3257_v44 = vpack.i.b16 %v8366_v12, %v8366_v12  ;;  %v6812_v12 = vld [vmem:[%s8645_s17 + $0x658] sm:$0xff]  ;;  %v3096_v60 = vpop.f32.mrf.mxu0 }
 0x9f6   :  { %4602 = vmatpush.bf16.msra.mxu0 %v6808_v55  ;;  %4616 = vmatpush.bf16.msrb.mxu1 %v6816_v58  ;;  %v3263_v55 = vpack.i.b16 %v3229_v4, %v3229_v4  ;;  %v6804_v58 = vld [vmem:[%s8645_s17 + $0x618] sm:$0xff]  ;;  %v6801_v4 = vld [vmem:[%s8645_s17 + $0x600] sm:$0xff] }
 0x9f7   :  { %v3304_v49 = vunpack.c.l.bf16 %v3207_v1  ;;  %v3305_v8 = vunpack.c.h.bf16 %v3207_v1  ;;  %v3334_v29 = vadd.f32 %v3318_v14, %v3286_v9  ;;  %v3335_v30 = vadd.f32 %v3319_v15, %v3287_v13  ;;  %v6824_v1 = vld [vmem:[%s8645_s17 + $0x6b8] sm:$0xff]  ;;  %v6811_v9 = vld [vmem:[%s8645_s17 + $0x650] sm:$0xff] }
 0x9f8   :  { %v3259_v62 = vperm.slane %v3257_v44, 0  ;;  %v6809_v44 = vld [vmem:[%s8645_s17 + $0x640] sm:$0xff] }
 0x9f9   :  { %v3352_v25 = vadd.f32 %v3320_v18, %v3304_v49  ;;  %v3353_v26 = vadd.f32 %v3321_v19, %v3305_v8  ;;  %v3414_v5 = vmax.f32 %v3334_v29, 0.0  ;;  %v3415_v57 = vmax.f32 %v3335_v30, 0.0  ;;  %v6803_v8 = vld [vmem:[%s8645_s17 + $0x610] sm:$0xff] }
 0x9fa   :  { %4603 = vmatpush.bf16.msra.mxu0 %v6807_v2  ;;  %4617 = vmatpush.bf16.msrb.mxu1 %v6815_v3  ;;  %v3012_v63 = vpop.f32.mrf.mxu2  ;;  %v3265_v49 = vperm.slane %v3263_v55, 0  ;;  %v3323_v16 = vunpack.c.l.bf16 %v3259_v62  ;;  %v6831_v18 = vld [vmem:[%s8645_s17 + $0x6f0] sm:$0xff] }
 0x9fb   :  { %v3206_v45 = vpack.c.bf16 %v3026_v51, %v3012_v63  ;;  %v3432_v41 = vmax.f32 %v3352_v25, 0.0  ;;  %v3433_v42 = vmax.f32 %v3353_v26, 0.0  ;;  %v3260_v51 = vpack.i.b16 %v3228_v27, %v3228_v27  ;;  %v3082_v35 = vpop.f32.mrf.mxu3  ;;  %v6802_v26 = vld [vmem:[%s8645_s17 + $0x608] sm:$0xff] }
 0x9fc   :  { %v3108_v28 = vpop.f32.mrf.mxu1 }
 0x9fd   :  { %v3302_v31 = vunpack.c.l.bf16 %v3206_v45  ;;  %v3303_v32 = vunpack.c.h.bf16 %v3206_v45  ;;  %v3448_v6 = vpack.c.bf16 %v3432_v41, %v3416_v48  ;;  %v3449_v59 = vpack.c.bf16 %v3433_v42, %v3417_v50  ;;  %v6829_v48 = vld [vmem:[%s8645_s17 + $0x6e0] sm:$0xff] }
 0x9fe   :  { %4604 = vmatpush.bf16.msra.mxu0 %v6806_v21  ;;  %4618 = vmatpush.bf16.msrb.mxu1 %v6814_v22  ;;  %v3201_v2 = vpack.c.bf16 %v3108_v28, %v3094_v20  ;;  %v3262_v3 = vperm.slane %v3260_v51, 0  ;;  %v6810_v28 = vld [vmem:[%s8645_s17 + $0x648] sm:$0xff] }
 0x9ff   :  { %v3350_v56 = vadd.f32 %v3318_v14, %v3302_v31  ;;  %v3351_v39 = vadd.f32 %v3319_v15, %v3303_v32  ;;  %v3322_v15 = vunpack.c.l.bf16 %v3256_v10  ;;  %v6822_v31 = vld [vmem:[%s8645_s17 + $0x6a8] sm:$0xff]  ;;  %v6840_v10 = vld [vmem:[%s8645_s17 + $0x738] sm:$0xff] }
 0xa00   :  { %v3292_v63 = vunpack.c.l.bf16 %v3201_v2  ;;  %v3324_v21 = vunpack.c.l.bf16 %v3262_v3  ;;  %v3293_v45 = vunpack.c.h.bf16 %v3201_v2  ;;  %v6830_v32 = vld [vmem:[%s8645_s17 + $0x6e8] sm:$0xff] }
 0xa01   :  { %v3430_v46 = vmax.f32 %v3350_v56, 0.0  ;;  %v3431_v47 = vmax.f32 %v3351_v39, 0.0  ;;  %v3230_v56 = vld [vmem:[#allocation1 + $0x12] sm:$0xff]  ;;  %v3231_v39 = vld [vmem:[#allocation1 + $0x1b] sm:$0xff] }
 0xa02   :  { %4605 = vmatpush.bf16.msra.mxu0 %v6805_v37  ;;  %4619 = vmatpush.bf16.msrb.mxu1 %v6813_v38  ;;  %v3066_v52 = vpop.f32.mrf.mxu2  ;;  %v3340_v27 = vadd.f32 %v3324_v21, %v3292_v63  ;;  %v3266_v50 = vpack.i.b16 %v3230_v56, %v3230_v56  ;;  %v3269_v51 = vpack.i.b16 %v3231_v39, %v3231_v39 }
 0xa03   :  { %v3446_v53 = vpack.c.bf16 %v3430_v46, %v3414_v5  ;;  %v3447_v54 = vpack.c.bf16 %v3431_v47, %v3415_v57  ;;  %v3200_v61 = vpack.c.bf16 %v3080_v24, %v3066_v52  ;;  %v3325_v24 = vunpack.c.l.bf16 %v3265_v49  ;;  %v3136_v46 = vpop.f32.mrf.mxu3  ;;  %v6821_v47 = vld [vmem:[%s8645_s17 + $0x6a0] sm:$0xff]  ;;  %v6839_v49 = vld [vmem:[%s8645_s17 + $0x730] sm:$0xff] }
 0xa04   :  { %v3110_v7 = vpop.f32.mrf.mxu1  ;;  %v3268_v62 = vperm.slane %v3266_v50, 0  ;;  %v3271_v3 = vperm.slane %v3269_v51, 0  ;;  %v6864_v50 = vld [vmem:[%s8645_s17 + $0x7f8] sm:$0xff] }
 0xa05   :  { %v3209_v0 = vpack.c.bf16 %v3110_v7, %v3096_v60  ;;  %4526 = vmatmul.bf16.vlgmr.msra.gmra.mxu2 %v3446_v53  ;;  %4540 = vmatmul.bf16.vlgmr.msra.gmra.mxu3 %v3447_v54  ;;  %v3290_v13 = vunpack.c.l.bf16 %v3200_v61  ;;  %v3291_v14 = vunpack.c.h.bf16 %v3200_v61  ;;  %v3341_v40 = vadd.f32 %v3325_v24, %v3293_v45  ;;  %v6820_v7 = vld [vmem:[%s8645_s17 + $0x698] sm:$0xff]  ;;  %v3232_v45 = vld [vmem:[#allocation1 + $0x24] sm:$0xff] }
 0xa06   :  { %4554 = vmatmul.bf16.vlgmr.msrb.gmra.mxu0 %v3448_v6  ;;  %4568 = vmatmul.bf16.vlgmr.msra.gmra.mxu1 %v3449_v59  ;;  %v3420_v6 = vmax.f32 %v3340_v27, 0.0  ;;  %v3272_v56 = vpack.i.b16 %v3232_v45, %v3232_v45  ;;  %v6817_v27 = vld [vmem:[%s8645_s17 + $0x680] sm:$0xff] }
 0xa07   :  { %4606 = vmatpush.bf16.msra.mxu0 %v6804_v58  ;;  %4620 = vmatpush.bf16.msrb.mxu1 %v6812_v12  ;;  %v3308_v19 = vunpack.c.l.bf16 %v3209_v0  ;;  %v3309_v20 = vunpack.c.h.bf16 %v3209_v0  ;;  %v3338_v29 = vadd.f32 %v3322_v15, %v3290_v13  ;;  %v3339_v30 = vadd.f32 %v3323_v16, %v3291_v14  ;;  %v6848_v58 = vld [vmem:[%s8645_s17 + $0x778] sm:$0xff]  ;;  %v6819_v13 = vld [vmem:[%s8645_s17 + $0x690] sm:$0xff] }
 0xa08   :  { %4630 = vmatpush.bf16.msra.mxu2 %v6824_v1  ;;  %4644 = vmatpush.bf16.msra.mxu3 %v6832_v34  ;;  %v3421_v59 = vmax.f32 %v3341_v40, 0.0  ;;  %v6828_v1 = vld [vmem:[%s8645_s17 + $0x6d8] sm:$0xff]  ;;  %v6827_v14 = vld [vmem:[%s8645_s17 + $0x6d0] sm:$0xff]  ;;  %v6825_v40 = vld [vmem:[%s8645_s17 + $0x6c0] sm:$0xff] }
 0xa09   :  { %v3356_v33 = vadd.f32 %v3324_v21, %v3308_v19  ;;  %v3357_v36 = vadd.f32 %v3325_v24, %v3309_v20  ;;  %v3418_v5 = vmax.f32 %v3338_v29, 0.0  ;;  %v3419_v57 = vmax.f32 %v3339_v30, 0.0  ;;  %v6838_v19 = vld [vmem:[%s8645_s17 + $0x728] sm:$0xff] }
 0xa0a   :  { %v3068_v22 = vpop.f32.mrf.mxu2  ;;  %v6846_v20 = vld [vmem:[%s8645_s17 + $0x768] sm:$0xff] }
 0xa0b   :  { %4607 = vmatpush.bf16.msra.mxu0 %v6803_v8  ;;  %4621 = vmatpush.bf16.msrb.mxu1 %v6811_v9  ;;  %v3208_v25 = vpack.c.bf16 %v3082_v35, %v3068_v22  ;;  %v3436_v52 = vmax.f32 %v3356_v33, 0.0  ;;  %v3437_v53 = vmax.f32 %v3357_v36, 0.0  ;;  %v6847_v8 = vld [vmem:[%s8645_s17 + $0x770] sm:$0xff]  ;;  %v3150_v9 = vpop.f32.mrf.mxu0  ;;  %v3138_v63 = vpop.f32.mrf.mxu3  ;;  %v6818_v24 = vld [vmem:[%s8645_s17 + $0x688] sm:$0xff]  ;;  %v6845_v33 = vld [vmem:[%s8645_s17 + $0x760] sm:$0xff] }
 0xa0c   :  { %4631 = vmatpush.bf16.msra.mxu2 %v6823_v17  ;;  %4645 = vmatpush.bf16.msra.mxu3 %v6831_v18  ;;  %v8488_v35 = vpop.f32.mrf.mxu1  ;;  %v3326_v17 = vunpack.c.l.bf16 %v3268_v62  ;;  %v3327_v18 = vunpack.c.l.bf16 %v3271_v3 }
 0xa0d   :  { %v3306_v37 = vunpack.c.l.bf16 %v3208_v25  ;;  %v3307_v38 = vunpack.c.h.bf16 %v3208_v25  ;;  %v3452_v34 = vpack.c.bf16 %v3436_v52, %v3420_v6  ;;  %v3453_v0 = vpack.c.bf16 %v3437_v53, %v3421_v59  ;;  %v6826_v25 = vld [vmem:[%s8645_s17 + $0x6c8] sm:$0xff] }
 0xa0e   :  { %v3203_v53 = vpack.c.bf16 %v8488_v35, %v3150_v9  ;;  %v6834_v35 = vld [vmem:[%s8645_s17 + $0x708] sm:$0xff] }
 0xa0f   :  { %v3354_v41 = vadd.f32 %v3322_v15, %v3306_v37  ;;  %v3355_v42 = vadd.f32 %v3323_v16, %v3307_v38  ;;  %4608 = vmatpush.bf16.msra.mxu0 %v6802_v26  ;;  %4622 = vmatpush.bf16.msrb.mxu1 %v6810_v28  ;;  %v3233_v26 = vld [vmem:[#allocation1 + $0x2d] sm:$0xff] }
 0xa10   :  { %4632 = vmatpush.bf16.msra.mxu2 %v6822_v31  ;;  %4646 = vmatpush.bf16.msra.mxu3 %v6830_v32  ;;  %v6837_v32 = vld [vmem:[%s8645_s17 + $0x720] sm:$0xff]  ;;  %v3275_v39 = vpack.i.b16 %v3233_v26, %v3233_v26  ;;  %v3296_v62 = vunpack.c.l.bf16 %v3203_v53  ;;  %v6862_v9 = vld [vmem:[%s8645_s17 + $0x7e8] sm:$0xff] }
 0xa11   :  { %v3434_v54 = vmax.f32 %v3354_v41, 0.0  ;;  %v3435_v55 = vmax.f32 %v3355_v42, 0.0 }
 0xa12   :  { %v3122_v12 = vpop.f32.mrf.mxu2 }
 0xa13   :  { %v3450_v60 = vpack.c.bf16 %v3434_v54, %v3418_v5  ;;  %v3451_v61 = vpack.c.bf16 %v3435_v55, %v3419_v57  ;;  %4609 = vmatpush.bf16.msra.mxu0 %v6801_v4  ;;  %4623 = vmatpush.bf16.msrb.mxu1 %v6809_v44  ;;  %v3202_v2 = vpack.c.bf16 %v3136_v46, %v3122_v12  ;;  %v3152_v41 = vpop.f32.mrf.mxu0  ;;  %v6836_v57 = vld [vmem:[%s8645_s17 + $0x718] sm:$0xff]  ;;  %v3274_v54 = vperm.slane %v3272_v56, 0  ;;  %v6851_v56 = vld [vmem:[%s8645_s17 + $0x790] sm:$0xff] }
 0xa14   :  { %4633 = vmatpush.bf16.msra.mxu2 %v6821_v47  ;;  %4647 = vmatpush.bf16.msra.mxu3 %v6829_v48  ;;  %v3166_v36 = vpop.f32.mrf.mxu1  ;;  %v6844_v46 = vld [vmem:[%s8645_s17 + $0x758] sm:$0xff]  ;;  %v3277_v55 = vperm.slane %v3275_v39, 0  ;;  %v6859_v39 = vld [vmem:[%s8645_s17 + $0x7d0] sm:$0xff] }
 0xa15   :  { %4582 = vmatmul.bf16.vlgmr.msrb.gmra.mxu2 %v3450_v60  ;;  %4596 = vmatmul.bf16.vlgmr.msrb.gmra.mxu3 %v3451_v61  ;;  %v3294_v15 = vunpack.c.l.bf16 %v3202_v2  ;;  %v3295_v16 = vunpack.c.h.bf16 %v3202_v2  ;;  %v3211_v47 = vpack.c.bf16 %v3166_v36, %v3152_v41  ;;  %v6856_v48 = vld [vmem:[%s8645_s17 + $0x7b8] sm:$0xff]  ;;  %v6855_v60 = vld [vmem:[%s8645_s17 + $0x7b0] sm:$0xff]  ;;  %v6842_v2 = vld [vmem:[%s8645_s17 + $0x748] sm:$0xff] }
 0xa16   :  { %4610 = vmatmul.bf16.vlgmr.msra.gmra.mxu0 %v3452_v34  ;;  %4624 = vmatmul.bf16.vlgmr.msrb.gmra.mxu1 %v3453_v0  ;;  %v6863_v61 = vld [vmem:[%s8645_s17 + $0x7f0] sm:$0xff]  ;;  %v3329_v34 = vunpack.c.l.bf16 %v3277_v55  ;;  %v3192_v0 = vpop.f32.mrf.mxu3 }
 0xa17   :  { %4658 = vmatpush.bf16.msrb.mxu0 %v6840_v10  ;;  %4672 = vmatpush.bf16.msra.mxu1 %v6848_v58  ;;  %v3342_v28 = vadd.f32 %v3326_v17, %v3294_v15  ;;  %v3343_v29 = vadd.f32 %v3327_v18, %v3295_v16  ;;  %v6835_v10 = vld [vmem:[%s8645_s17 + $0x710] sm:$0xff]  ;;  %v3312_v12 = vunpack.c.l.bf16 %v3211_v47  ;;  %v3313_v6 = vunpack.c.h.bf16 %v3211_v47  ;;  %v6833_v16 = vld [vmem:[%s8645_s17 + $0x700] sm:$0xff] }
 0xa18   :  { %4634 = vmatpush.bf16.msra.mxu2 %v6820_v7  ;;  %4648 = vmatpush.bf16.msra.mxu3 %v6828_v1  ;;  %v6843_v58 = vld [vmem:[%s8645_s17 + $0x750] sm:$0xff]  ;;  %v3297_v7 = vunpack.c.h.bf16 %v3203_v53  ;;  %v3328_v1 = vunpack.c.l.bf16 %v3274_v54 }
 0xa19   :  { %v3422_v42 = vmax.f32 %v3342_v28, 0.0  ;;  %v3423_v4 = vmax.f32 %v3343_v29, 0.0  ;;  %v3234_v15 = vld [vmem:[#allocation1 + $0x36] sm:$0xff] }
 0xa1a   :  { %v3124_v21 = vpop.f32.mrf.mxu2  ;;  %v3360_v3 = vadd.f32 %v3328_v1, %v3312_v12 }
 0xa1b   :  { %4659 = vmatpush.bf16.msrb.mxu0 %v6839_v49  ;;  %4673 = vmatpush.bf16.msra.mxu1 %v6847_v8  ;;  %v3210_v22 = vpack.c.bf16 %v3138_v63, %v3124_v21  ;;  %v3361_v49 = vadd.f32 %v3329_v34, %v3313_v6  ;;  %v6854_v8 = vld [vmem:[%s8645_s17 + $0x7a8] sm:$0xff]  ;;  %v6853_v63 = vld [vmem:[%s8645_s17 + $0x7a0] sm:$0xff] }
 0xa1c   :  { %4635 = vmatpush.bf16.msra.mxu2 %v6819_v13  ;;  %4649 = vmatpush.bf16.msra.mxu3 %v6827_v14  ;;  %v3344_v13 = vadd.f32 %v3328_v1, %v3296_v62  ;;  %v3345_v14 = vadd.f32 %v3329_v34, %v3297_v7  ;;  %v6861_v21 = vld [vmem:[%s8645_s17 + $0x7e0] sm:$0xff] }
 0xa1d   :  { %v3310_v30 = vunpack.c.l.bf16 %v3210_v22  ;;  %v3311_v31 = vunpack.c.h.bf16 %v3210_v22  ;;  %v6883_v1 = vld [vmem:[%s8646_s18 + $0x1] ss:$0 sm:$0xff] }
 0xa1e   :  { %v3424_v22 = vmax.f32 %v3344_v13, 0.0  ;;  %v3425_v45 = vmax.f32 %v3345_v14, 0.0 }
 0xa1f   :  { %4660 = vmatpush.bf16.msrb.mxu0 %v6838_v19  ;;  %4674 = vmatpush.bf16.msra.mxu1 %v6846_v20  ;;  %v3358_v37 = vadd.f32 %v3326_v17, %v3310_v30  ;;  %v3359_v38 = vadd.f32 %v3327_v18, %v3311_v31  ;;  %v6841_v17 = vld [vmem:[%s8645_s17 + $0x740] sm:$0xff]  ;;  %v3440_v18 = vmax.f32 %v3360_v3, 0.0  ;;  %v3441_v19 = vmax.f32 %v3361_v49, 0.0  ;;  %v3194_v30 = vpop.f32.mrf.mxu3  ;;  %v6852_v31 = vld [vmem:[%s8645_s17 + $0x798] sm:$0xff] }
 0xa20   :  { %4636 = vmatpush.bf16.msra.mxu2 %v6818_v24  ;;  %4650 = vmatpush.bf16.msra.mxu3 %v6826_v25  ;;  %v3235_v20 = vld [vmem:[#allocation1 + $0x3f] sm:$0xff]  ;;  %v3278_v25 = vpack.i.b16 %v3234_v15, %v3234_v15 }
 0xa21   :  { %v3438_v44 = vmax.f32 %v3358_v37, 0.0  ;;  %v3439_v5 = vmax.f32 %v3359_v38, 0.0  ;;  %v3281_v26 = vpack.i.b16 %v3235_v20, %v3235_v20  ;;  %v3456_v28 = vpack.c.bf16 %v3440_v18, %v3424_v22 }
 0xa22   :  { %v3178_v59 = vpop.f32.mrf.mxu2  ;;  %v3457_v29 = vpack.c.bf16 %v3441_v19, %v3425_v45  ;;  %v3280_v37 = vperm.slane %v3278_v25, 0 }
 0xa23   :  { %4661 = vmatpush.bf16.msrb.mxu0 %v6837_v32  ;;  %4675 = vmatpush.bf16.msra.mxu1 %v6845_v33  ;;  %v3454_v51 = vpack.c.bf16 %v3438_v44, %v3422_v42  ;;  %v3455_v52 = vpack.c.bf16 %v3439_v5, %v3423_v4  ;;  %v6860_v32 = vld [vmem:[%s8645_s17 + $0x7d8] sm:$0xff]  ;;  %v3204_v36 = vpack.c.bf16 %v3192_v0, %v3178_v59  ;;  %v3283_v38 = vperm.slane %v3281_v26, 0  ;;  %v6850_v5 = vld [vmem:[%s8645_s17 + $0x788] sm:$0xff] }
 0xa24   :  { %4637 = vmatpush.bf16.msra.mxu2 %v6817_v27  ;;  %4651 = vmatpush.bf16.msra.mxu3 %v6825_v40  ;;  %v3330_v4 = vunpack.c.l.bf16 %v3280_v37 }
 0xa25   :  { %v3298_v41 = vunpack.c.l.bf16 %v3204_v36  ;;  %v3299_v42 = vunpack.c.h.bf16 %v3204_v36  ;;  %v3331_v44 = vunpack.c.l.bf16 %v3283_v38 }
 0xa27   :  { %4662 = vmatpush.bf16.msrb.mxu0 %v6836_v57  ;;  %4676 = vmatpush.bf16.msra.mxu1 %v6844_v46  ;;  %v6858_v57 = vld [vmem:[%s8645_s17 + $0x7c8] sm:$0xff] }
 0xa28   :  { %4686 = vmatpush.bf16.msrb.mxu2 %v6856_v48  ;;  %4700 = vmatpush.bf16.msrb.mxu3 %v6864_v50  ;;  %v3346_v48 = vadd.f32 %v3330_v4, %v3298_v41  ;;  %v3347_v50 = vadd.f32 %v3331_v44, %v3299_v42 }
 0xa29   :  { %4638 = vmatmul.bf16.vlgmr.msra.gmra.mxu2 %v3454_v51  ;;  %4652 = vmatmul.bf16.vlgmr.msra.gmra.mxu3 %v3455_v52  ;;  %v6849_v51 = vld [vmem:[%s8645_s17 + $0x780] sm:$0xff] }
 0xa2a   :  { %v3180_v24 = vpop.f32.mrf.mxu2  ;;  %v6857_v52 = vld [vmem:[%s8645_s17 + $0x7c0] sm:$0xff]  ;;  %v3426_v55 = vmax.f32 %v3346_v48, 0.0 }
 0xa2b   :  { %4663 = vmatpush.bf16.msrb.mxu0 %v6835_v10  ;;  %4677 = vmatpush.bf16.msra.mxu1 %v6843_v58  ;;  %v3212_v33 = vpack.c.bf16 %v3194_v30, %v3180_v24  ;;  %v3427_v10 = vmax.f32 %v3347_v50, 0.0 }
 0xa2c   :  { %4687 = vmatpush.bf16.msrb.mxu2 %v6855_v60  ;;  %4701 = vmatpush.bf16.msrb.mxu3 %v6863_v61 }
 0xa2d   :  { %v3314_v27 = vunpack.c.l.bf16 %v3212_v33  ;;  %v3315_v40 = vunpack.c.h.bf16 %v3212_v33 }
 0xa2f   :  { %4664 = vmatpush.bf16.msrb.mxu0 %v6834_v35  ;;  %4678 = vmatpush.bf16.msra.mxu1 %v6842_v2  ;;  %v3362_v46 = vadd.f32 %v3330_v4, %v3314_v27  ;;  %v3363_v47 = vadd.f32 %v3331_v44, %v3315_v40 }
 0xa30   :  { %4688 = vmatpush.bf16.msrb.mxu2 %v6854_v8  ;;  %4702 = vmatpush.bf16.msrb.mxu3 %v6862_v9 }
 0xa31   :  { %v3442_v53 = vmax.f32 %v3362_v46, 0.0  ;;  %v3443_v54 = vmax.f32 %v3363_v47, 0.0 }
 0xa33   :  { %4665 = vmatpush.bf16.msrb.mxu0 %v6833_v16  ;;  %4679 = vmatpush.bf16.msra.mxu1 %v6841_v17  ;;  %v3458_v58 = vpack.c.bf16 %v3442_v53, %v3426_v55  ;;  %v3459_v12 = vpack.c.bf16 %v3443_v54, %v3427_v10 }
 0xa34   :  { %4689 = vmatpush.bf16.msrb.mxu2 %v6853_v63  ;;  %4703 = vmatpush.bf16.msrb.mxu3 %v6861_v21 }
 0xa36   :  { %4666 = vmatmul.bf16.vlgmr.msrb.gmra.mxu0 %v3456_v28  ;;  %4680 = vmatmul.bf16.vlgmr.msra.gmra.mxu1 %v3457_v29 }
 0xa38   :  { %4690 = vmatpush.bf16.msrb.mxu2 %v6852_v31  ;;  %4704 = vmatpush.bf16.msrb.mxu3 %v6860_v32 }
 0xa3c   :  { %4691 = vmatpush.bf16.msrb.mxu2 %v6851_v56  ;;  %4705 = vmatpush.bf16.msrb.mxu3 %v6859_v39 }
 0xa40   :  { %4692 = vmatpush.bf16.msrb.mxu2 %v6850_v5  ;;  %4706 = vmatpush.bf16.msrb.mxu3 %v6858_v57 }
 0xa44   :  { %4693 = vmatpush.bf16.msrb.mxu2 %v6849_v51  ;;  %4707 = vmatpush.bf16.msrb.mxu3 %v6857_v52 }
 0xa47   :  { %4694 = vmatmul.bf16.vlgmr.msrb.gmra.mxu2 %v3458_v58  ;;  %4708 = vmatmul.bf16.vlgmr.msrb.gmra.mxu3 %v3459_v12 }
 0xa72   :  { %v4499_v6 = vpop.f32.mrf.mxu0  ;;  %v4513_v59 = vpop.f32.mrf.mxu1 }
 0xa73   :  { %v4500_v2 = vadd.f32 %v6883_v1, %v4499_v6 }
 0xa75   :  { %v4514_v49 = vadd.f32 %v4513_v59, %v4500_v2 }
 0xa7a   :  { %v4501_v60 = vpop.f32.mrf.mxu0  ;;  %v4515_v7 = vpop.f32.mrf.mxu1 }
 0xa7b   :  { %v4502_v15 = vadd.f32 %v6883_v1, %v4501_v60 }
 0xa7d   :  { %v4516_v17 = vadd.f32 %v4515_v7, %v4502_v15 }
 0xa83   :  { %v4555_v34 = vpop.f32.mrf.mxu0  ;;  %v4569_v3 = vpop.f32.mrf.mxu1 }
 0xa88   :  { %v4527_v61 = vpop.f32.mrf.mxu2  ;;  %v4541_v62 = vpop.f32.mrf.mxu3 }
 0xa89   :  { %v4528_v8 = vadd.f32 %v4527_v61, %v4514_v49 }
 0xa8b   :  { %v4557_v9 = vpop.f32.mrf.mxu0  ;;  %v4542_v16 = vadd.f32 %v4541_v62, %v4528_v8  ;;  %v4571_v18 = vpop.f32.mrf.mxu1 }
 0xa8d   :  { %v4556_v19 = vadd.f32 %v4555_v34, %v4542_v16 }
 0xa8f   :  { %v4570_v24 = vadd.f32 %v4569_v3, %v4556_v19 }
 0xa90   :  { %v4529_v0 = vpop.f32.mrf.mxu2  ;;  %v4543_v35 = vpop.f32.mrf.mxu3 }
 0xa91   :  { %v4530_v20 = vadd.f32 %v4529_v0, %v4516_v17 }
 0xa93   :  { %v4611_v63 = vpop.f32.mrf.mxu0  ;;  %v4544_v45 = vadd.f32 %v4543_v35, %v4530_v20  ;;  %v4625_v28 = vpop.f32.mrf.mxu1 }
 0xa95   :  { %v4558_v26 = vadd.f32 %v4557_v9, %v4544_v45 }
 0xa97   :  { %v4572_v31 = vadd.f32 %v4571_v18, %v4558_v26 }
 0xa98   :  { %v4583_v13 = vpop.f32.mrf.mxu2  ;;  %v4597_v14 = vpop.f32.mrf.mxu3 }
 0xa99   :  { %v4584_v25 = vadd.f32 %v4583_v13, %v4570_v24 }
 0xa9b   :  { %v4598_v29 = vadd.f32 %v4597_v14, %v4584_v25  ;;  %v4613_v30 = vpop.f32.mrf.mxu0  ;;  %v4627_v39 = vpop.f32.mrf.mxu1 }
 0xa9d   :  { %v4612_v36 = vadd.f32 %v4611_v63, %v4598_v29 }
 0xa9f   :  { %v4626_v56 = vadd.f32 %v4625_v28, %v4612_v36 }
 0xaa0   :  { %v4585_v21 = vpop.f32.mrf.mxu2  ;;  %v4599_v22 = vpop.f32.mrf.mxu3 }
 0xaa1   :  { %v4586_v37 = vadd.f32 %v4585_v21, %v4572_v31 }
 0xaa3   :  { %v4600_v38 = vadd.f32 %v4599_v22, %v4586_v37 }
 0xaa5   :  { %v4614_v41 = vadd.f32 %v4613_v30, %v4600_v38 }
 0xaa7   :  { %v4628_v57 = vadd.f32 %v4627_v39, %v4614_v41 }
 0xaac   :  { %v4639_v32 = vpop.f32.mrf.mxu2  ;;  %v4653_v33 = vpop.f32.mrf.mxu3 }
 0xaad   :  { %v4640_v27 = vadd.f32 %v4639_v32, %v4626_v56  ;;  %v6885_v56 = vld [vmem:[%s8648_s20 + $0x1] ss:$0 sm:$0xff]  ;;  %s4802_s20 = sshll.u32 %s8649_s21, 4  ;;  %s4803_s20 = int_to_ptr.hbm [resolvable:$true] %s4802_s20 }
 0xaaf   :  { %v4654_v44 = vadd.f32 %v4653_v33, %v4640_v27 }
 0xab3   :  { %v4667_v40 = vpop.f32.mrf.mxu0  ;;  %v4681_v46 = vpop.f32.mrf.mxu1 }
 0xab4   :  { %v4641_v42 = vpop.f32.mrf.mxu2  ;;  %v4655_v4 = vpop.f32.mrf.mxu3  ;;  %v4668_v5 = vadd.f32 %v4667_v40, %v4654_v44 }
 0xab5   :  { %v4642_v47 = vadd.f32 %v4641_v42, %v4628_v57  ;;  %v4774_v42 = vld [vmem:[%s8664_s0] sm:$0xf] }
 0xab6   :  { %v4682_v48 = vadd.f32 %v4681_v46, %v4668_v5 }
 0xab7   :  { %v4656_v53 = vadd.f32 %v4655_v4, %v4642_v47  ;;  %v4776_v4 = vld [vmem:[%s8665_s13] sm:$0xff] }
 0xabb   :  { %v4669_v50 = vpop.f32.mrf.mxu0  ;;  %v4683_v12 = vpop.f32.mrf.mxu1 }
 0xabc   :  { %v4670_v55 = vadd.f32 %v4669_v50, %v4656_v53 }
 0xabe   :  { %v4684_v6 = vadd.f32 %v4683_v12, %v4670_v55 }
 0xaca   :  { %v4695_v51 = vpop.f32.mrf.mxu2  ;;  %v4709_v52 = vpop.f32.mrf.mxu3 }
 0xacb   :  { %v4696_v54 = vadd.f32 %v4695_v51, %v4682_v48 }
 0xacd   :  { %v4710_v10 = vadd.f32 %v4709_v52, %v4696_v54 }
 0xacf   :  { %v4714_v58 = vadd.f32 %v4710_v10, %v8061_v11 }
 0xad1   :  { %v4720_v59 = vsel %vm98_vm0, %v4714_v58, 0.0 }
 0xad2   :  { %v4697_v60 = vpop.f32.mrf.mxu2  ;;  %4721 = vadd.xlane.f32.xlu0 %v4720_v59  ;;  %v4711_v62 = vpop.f32.mrf.mxu3 }
 0xad3   :  { %v4698_v61 = vadd.f32 %v4697_v60, %v4684_v6 }
 0xad5   :  { %v4712_v7 = vadd.f32 %v4711_v62, %v4698_v61 }
 0xad7   :  { %v4715_v1 = vadd.f32 %v4712_v7, %v8063_v23 }
 0xad9   :  { %v4723_v34 = vsel %vm98_vm0, %v4715_v1, 0.0 }
 0xada   :  { %4724 = vadd.xlane.f32.xlu1 %v4723_v34 }
 0xb45   :  { %v4722_v0 = vpop.xlane.xlu0 %4721 }
 0xb46   :  { %v4726_v35 = vmul.f32 %v4722_v0, %v7152_v43 }
 0xb48   :  { %v4728_v2 = vsub.f32 %v4714_v58, %v4726_v35 }
 0xb4a   :  { %v4730_v3 = vmul.f32 %v4728_v2, %v4728_v2 }
 0xb4c   :  { %v4732_v11 = vsel %vm98_vm0, %v4730_v3, 0.0 }
 0xb4d   :  { %v4725_v49 = vpop.xlane.xlu1 %4724  ;;  %4733 = vadd.xlane.f32.xlu2 %v4732_v11 }
 0xb4e   :  { %v4727_v8 = vmul.f32 %v4725_v49, %v7152_v43 }
 0xb50   :  { %v4729_v9 = vsub.f32 %v4715_v1, %v4727_v8 }
 0xb52   :  { %v4731_v13 = vmul.f32 %v4729_v9, %v4729_v9 }
 0xb54   :  { %v4735_v14 = vsel %vm98_vm0, %v4731_v13, 0.0 }
 0xb55   :  { %4736 = vadd.xlane.f32.xlu0 %v4735_v14 }
 0xbc0   :  { %v4734_v23 = vpop.xlane.xlu2 %4733 }
 0xbc1   :  { %v4738_v15 = vmul.f32 %v4734_v23, %v7152_v43 }
 0xbc3   :  { %v4740_v16 = vadd.f32 1e-05, %v4738_v15 }
 0xbc5   :  { %6924 = vrsqrt.f32 %v4740_v16  ;;  %vm4748_vm10 = vweird.f32 %v4740_v16 }
 0xbc8   :  { %v4737_v17 = vpop.xlane.xlu0 %4736 }
 0xbc9   :  { %v4739_v18 = vmul.f32 %v4737_v17, %v7152_v43  ;;  %v6884_v43 = vld [vmem:[%s8647_s19 + $0x1] ss:$0 sm:$0xff] }
 0xbcb   :  { %v6925_v19 = vpop.eup %6924  ;;  %v4741_v20 = vadd.f32 1e-05, %v4739_v18 }
 0xbcc   :  { %v4743_v63 = vmul.f32 %v6925_v19, %v4740_v16  ;;  %vm4749_vm9 = vweird.f32 %v6925_v19 }
 0xbcd   :  { %6926 = vrsqrt.f32 %v4741_v20  ;;  %vm4750_vm11 = vmor %vm4748_vm10, %vm4749_vm9  ;;  %vm4758_vm13 = vweird.f32 %v4741_v20 }
 0xbce   :  { %v4744_v21 = vmul.f32 %v6925_v19, %v4743_v63 }
 0xbd0   :  { %v4745_v22 = vmul.f32 0.5, %v4744_v21 }
 0xbd2   :  { %v4746_v45 = vsub.f32 1.5, %v4745_v22 }
 0xbd3   :  { %v6927_v24 = vpop.eup %6926 }
 0xbd4   :  { %v4747_v25 = vmul.f32 %v6925_v19, %v4746_v45  ;;  %v4753_v26 = vmul.f32 %v6927_v24, %v4741_v20  ;;  %vm4759_vm12 = vweird.f32 %v6927_v24 }
 0xbd5   :  { %vm4760_vm14 = vmor %vm4758_vm13, %vm4759_vm12 }
 0xbd6   :  { %v4754_v28 = vmul.f32 %v6927_v24, %v4753_v26  ;;  %v4751_v29 = vsel %vm4750_vm11, %v6925_v19, %v4747_v25 }
 0xbd7   :  { %v4762_v32 = vmul.f32 %v4751_v29, %v4728_v2 }
 0xbd8   :  { %v4755_v30 = vmul.f32 0.5, %v4754_v28 }
 0xbd9   :  { %v4767_v38 = vmul.f32 %v6884_v43, %v4762_v32 }
 0xbda   :  { %v4756_v31 = vsub.f32 1.5, %v4755_v30 }
 0xbdb   :  { %v4772_v27 = vadd.f32 %v6885_v56, %v4767_v38 }
 0xbdc   :  { %v4757_v33 = vmul.f32 %v6927_v24, %v4756_v31 }
 0xbde   :  { %v4761_v36 = vsel %vm4760_vm14, %v6927_v24, %v4757_v33 }
 0xbdf   :  { %v4763_v37 = vmul.f32 %v4761_v36, %v4729_v9 }
 0xbe1   :  { %v4768_v39 = vmul.f32 %v6884_v43, %v4763_v37 }
 0xbe3   :  { %v4773_v40 = vadd.f32 %v6885_v56, %v4768_v39 }
 0xbe5   :  { %v4775_v41 = vpack.c.bf16 %v4773_v40, %v4772_v27 }
 0xbe7   :  { %4788 = vmatpush.bf16.msra.mxu0 %v4775_v41 }
 0xbea   :  { %6528 = vmatmul.msk.bf16.vlgmr.msra.gmra.mxu0 %vm4777_vm15, %v4774_v42 }
 0xc67   :  { %v4790_v44 = vpop.f32.mrf.mxu0 }
 0xc68   :  { %v4791_v5 = vadd.f32 %v4790_v44, %v4776_v4 }
 0xc6a   :  { %4794 = vst.msk [vmem:[#allocation2] sm:$0xff] %vm98_vm0, %v4791_v5 }
 0xc6b   :  { %4805 = dma.vmem_to_hbm [thread:$0]  %s4801_s7, 128, %s4803_s20, [#allocation3]  }
 0xc6f   :  { %v4792_v57 = vpop.f32.mrf.mxu0 }
 0xc70   :  { %6957 = dma.done.wait [#allocation3], 128  }
 0xc71   :  { %6958 = vsyncadd [#allocation3], 4294967168 }
 0xc72   :  { %4810 = vsyncpa [#allocation3], 1 }

</bundles_post_ra>
